<compile_context>
chip_gen: v7x
topology: tpu7x:2x2x1
jax: 0.10.0
libtpu: 0.0.40
codegen_flags: <defaults>
</compile_context>

<pallas_src>
import jax
import jax.numpy as jnp
from jax import lax
from jax.experimental import pallas as pl
from jax.experimental.pallas import tpu as pltpu

EPS = 1e-5


def _round_up(x, m):
    return (x + m - 1) // m * m


# ---------------------------------------------------------------------------
# Stage kernel: im2col matmul -> folded BatchNorm -> 2x2 maxpool -> ReLU
# Patch rows arrive pre-grouped into 4 pooling-corner blocks of Rp rows each,
# so the pool is an elementwise max over four contiguous, 8-aligned row slices.
# ---------------------------------------------------------------------------
def _stage_kernel(p_ref, w_ref, scale_ref, bias_ref, o_ref):
    # p_ref: (1, 4*Rp, F) bf16   w_ref: (F, Cout) bf16   scale/bias: (1, Cout) f32
    y = jnp.dot(p_ref[0], w_ref[...], preferred_element_type=jnp.float32)
    y = y * scale_ref[...] + bias_ref[...]              # folded (eval) BatchNorm
    rp = o_ref.shape[1]
    pooled = jnp.maximum(jnp.maximum(y[0 * rp:1 * rp], y[1 * rp:2 * rp]),
                         jnp.maximum(y[2 * rp:3 * rp], y[3 * rp:4 * rp]))
    o_ref[0] = jnp.maximum(pooled, 0.0)                 # ReLU


def conv_bn_pool_stage(x_nhwc, w_hwio, scale, bias):
    N, H, W, Cin = x_nhwc.shape
    K, _, _, Cout = w_hwio.shape
    Ho, Wo = H - K + 1, W - K + 1
    Hp, Wp = Ho // 2, Wo // 2
    R = Hp * Wp                       # pooled spatial size (valid rows)
    Rp = _round_up(R, 8)              # sublane-aligned block height
    F = K * K * Cin                   # im2col contraction depth

    # --- wrapper-side im2col (pure data movement, handled by XLA) ----------
    cols = [x_nhwc[:, kh:kh + Ho, kw:kw + Wo, :]
            for kh in range(K) for kw in range(K)]
    patches = jnp.concatenate(cols, axis=-1)            # (N, Ho, Wo, F)
    # Group conv-output rows by pooling corner: block d = dh*2+dw holds corner
    # (dh, dw) of every 2x2 window, rows in (p, q) raster order, zero-padded.
    patches = patches.reshape(N, Hp, 2, Wp, 2, F)
    patches = patches.transpose(0, 2, 4, 1, 3, 5).reshape(N, 4, R, F)
    patches = jnp.pad(patches, ((0, 0), (0, 0), (0, Rp - R), (0, 0)))
    patches = patches.reshape(N, 4 * Rp, F).astype(jnp.bfloat16)

    w_flat = w_hwio.reshape(F, Cout).astype(jnp.bfloat16)

    out = pl.pallas_call(
        _stage_kernel,
        out_shape=jax.ShapeDtypeStruct((N, Rp, Cout), jnp.float32),
        grid_spec=pltpu.PrefetchScalarGridSpec(
            num_scalar_prefetch=0,
            grid=(N,),
            in_specs=[
                pl.BlockSpec((1, 4 * Rp, F), lambda b: (b, 0, 0)),
                pl.BlockSpec((F, Cout), lambda b: (0, 0)),
                pl.BlockSpec((1, Cout), lambda b: (0, 0)),
                pl.BlockSpec((1, Cout), lambda b: (0, 0)),
            ],
            out_specs=pl.BlockSpec((1, Rp, Cout), lambda b: (b, 0, 0)),
        ),
        compiler_params=pltpu.CompilerParams(
            dimension_semantics=("parallel",)),
    )(patches, w_flat, scale, bias)
    return out[:, :R, :].reshape(N, Hp, Wp, Cout)


# ---------------------------------------------------------------------------
# Head kernel: conv3 (kernel == spatial extent) -> folded BN -> sigmoid
# ---------------------------------------------------------------------------
def _head_kernel(x_ref, w_ref, scale_ref, bias_ref, o_ref):
    y = jnp.dot(x_ref[...], w_ref[...], preferred_element_type=jnp.float32)
    y = y * scale_ref[...] + bias_ref[...]
    # Overflow-free sigmoid (exp argument always <= 0).
    t = jnp.exp(-jnp.abs(y))
    o_ref[...] = jnp.where(y >= 0, 1.0 / (1.0 + t), t / (1.0 + t))


def conv_bn_sigmoid_head(x_nhwc, w_hwio, scale, bias):
    N, H, W, Cin = x_nhwc.shape
    K, K2, _, Cout = w_hwio.shape
    assert H == K and W == K2      # 5x5 kernel over a 5x5 map -> single matmul
    xf = x_nhwc.reshape(N, H * W * Cin).astype(jnp.bfloat16)
    wf = w_hwio.reshape(K * K * Cin, Cout).astype(jnp.bfloat16)
    F = xf.shape[1]
    return pl.pallas_call(
        _head_kernel,
        out_shape=jax.ShapeDtypeStruct((N, Cout), jnp.float32),
        grid_spec=pltpu.PrefetchScalarGridSpec(
            num_scalar_prefetch=0,
            grid=(1,),
            in_specs=[
                pl.BlockSpec((N, F), lambda i: (0, 0)),
                pl.BlockSpec((F, Cout), lambda i: (0, 0)),
                pl.BlockSpec((1, Cout), lambda i: (0, 0)),
                pl.BlockSpec((1, Cout), lambda i: (0, 0)),
            ],
            out_specs=pl.BlockSpec((N, Cout), lambda i: (0, 0)),
        ),
    )(xf, wf, scale, bias)


# ---------------------------------------------------------------------------
# Full forward pass
# ---------------------------------------------------------------------------
def _fold_bn(conv_bias, gamma, beta, mean, var):
    s = gamma / jnp.sqrt(var + EPS)
    return s.reshape(1, -1), (beta + s * (conv_bias - mean)).reshape(1, -1)


@jax.jit
def feature_extractor_digits(x_nchw, params):
    x = jnp.transpose(x_nchw, (0, 2, 3, 1)).astype(jnp.float32)  # NCHW -> NHWC
    s1, b1 = _fold_bn(params["b1"], *params["bn1"])
    s2, b2 = _fold_bn(params["b2"], *params["bn2"])
    s3, b3 = _fold_bn(params["b3"], *params["bn3"])
    x = conv_bn_pool_stage(x, params["w1"], s1, b1)        # (N, 14, 14, 64)
    x = conv_bn_pool_stage(x, params["w2"], s2, b2)        # (N, 5, 5, 64)
    return conv_bn_sigmoid_head(x, params["w3"], s3, b3)   # (N, 128)


# ---------------------------------------------------------------------------
# Pure-JAX reference (same math as the PyTorch module in eval mode)
# ---------------------------------------------------------------------------
def reference_forward(x_nchw, params):
    hp = lax.Precision.HIGHEST

    def conv(x, w, b):
        y = lax.conv_general_dilated(
            x, w, (1, 1), "VALID",
            dimension_numbers=("NCHW", "HWIO", "NCHW"), precision=hp)
        return y + b[None, :, None, None]

    def bn(x, p):
        g, bt, m, v = p
        return (g[None, :, None, None] * (x - m[None, :, None, None])
                / jnp.sqrt(v[None, :, None, None] + EPS)
                + bt[None, :, None, None])

    def pool(x):
        N, C, H, W = x.shape
        return x.reshape(N, C, H // 2, 2, W // 2, 2).max(axis=(3, 5))

    x = bn(conv(x_nchw, params["w1"], params["b1"]), params["bn1"])
    x = jax.nn.relu(pool(x))
    x = bn(conv(x, params["w2"], params["b2"]), params["bn2"])
    x = jax.nn.relu(pool(x))
    x = jax.nn.sigmoid(bn(conv(x, params["w3"], params["b3"]), params["bn3"]))
    return x.reshape(x.shape[0], -1)


if __name__ == "__main__":
    key = jax.random.PRNGKey(0)
    k = jax.random.split(key, 16)
    C = 3   # input channels

    def bn_init(kk, c):
        k1, k2, k3, k4 = jax.random.split(kk, 4)
        return (1.0 + 0.1 * jax.random.normal(k1, (c,), jnp.float32),   # gamma
                0.1 * jax.random.normal(k2, (c,), jnp.float32),          # beta
                0.1 * jax.random.normal(k3, (c,), jnp.float32),          # running_mean
                1.0 + 0.1 * jax.random.uniform(k4, (c,), jnp.float32))   # running_var

    params = {
        "w1": 0.05 * jax.random.normal(k[0], (5, 5, C, 64), jnp.float32),
        "b1": 0.1 * jax.random.normal(k[1], (64,), jnp.float32),
        "bn1": bn_init(k[2], 64),
        "w2": 0.05 * jax.random.normal(k[3], (5, 5, 64, 64), jnp.float32),
        "b2": 0.1 * jax.random.normal(k[4], (64,), jnp.float32),
        "bn2": bn_init(k[5], 64),
        "w3": 0.05 * jax.random.normal(k[6], (5, 5, 64, 128), jnp.float32),
        "b3": 0.1 * jax.random.normal(k[7], (128,), jnp.float32),
        "bn3": bn_init(k[8], 128),
    }

    # NCHW input, same convention as the PyTorch module (32x32 "digits" images).
    x = jax.random.normal(k[9], (2, C, 32, 32), jnp.float32)

    out = feature_extractor_digits(x, params)
    out = jax.block_until_ready(out)
    assert out.shape == (2, 128), out.shape

    ref = reference_forward(x, params)
    err = float(jnp.max(jnp.abs(out - ref)))
    assert err < 5e-2, f"max abs error vs reference too large: {err}"
    print("KERNEL_OK")
</pallas_src>

<mosaic_0001>
module attributes {stable_mosaic.version = 11 : i64} {
  func.func @_stage_kernel(%arg0: i32, %arg1: memref<1x800x75xbf16, #tpu.memory_space<vmem>>, %arg2: memref<75x64xbf16, #tpu.memory_space<vmem>>, %arg3: memref<1x64xf32, #tpu.memory_space<vmem>>, %arg4: memref<1x64xf32, #tpu.memory_space<vmem>>, %arg5: memref<1x200x64xf32, #tpu.memory_space<vmem>>) attributes {dimension_semantics = [#tpu.dimension_semantics<parallel>], iteration_bounds = array<i64: 2>, scalar_prefetch = 0 : i64, scratch_operands = 0 : i64, tpu.core_type = #tpu.core_type<tc>, window_params = [{transform_indices = @transform_0, window_bounds = array<i64: 1, 800, 75>}, {pipeline_mode = #tpu.pipeline_mode<synchronous>, transform_indices = @transform_1, window_bounds = array<i64: 75, 64>}, {pipeline_mode = #tpu.pipeline_mode<synchronous>, transform_indices = @transform_2, window_bounds = array<i64: 1, 64>}, {pipeline_mode = #tpu.pipeline_mode<synchronous>, transform_indices = @transform_3, window_bounds = array<i64: 1, 64>}, {transform_indices = @transform_4, window_bounds = array<i64: 1, 200, 64>}]} {
    %c0 = arith.constant 0 : index
    %c0_0 = arith.constant 0 : index
    %c0_1 = arith.constant 0 : index
    %0 = vector.load %arg1[%c0, %c0_0, %c0_1] : memref<1x800x75xbf16, #tpu.memory_space<vmem>>, vector<1x800x75xbf16>
    %1 = vector.shape_cast %0 : vector<1x800x75xbf16> to vector<800x75xbf16>
    %c0_2 = arith.constant 0 : index
    %c0_3 = arith.constant 0 : index
    %2 = vector.load %arg2[%c0_2, %c0_3] : memref<75x64xbf16, #tpu.memory_space<vmem>>, vector<75x64xbf16>
    %cst = arith.constant dense<0.000000e+00> : vector<800x64xf32>
    %3 = tpu.matmul %1, %2, %cst {dimension_numbers = #tpu.dot_dimension_numbers<[1], [0], [0], [1], [0, 0, 1, 1], [], []>} : vector<800x75xbf16>, vector<75x64xbf16>, vector<800x64xf32> -> vector<800x64xf32>
    %c0_4 = arith.constant 0 : index
    %c0_5 = arith.constant 0 : index
    %4 = vector.load %arg3[%c0_4, %c0_5] : memref<1x64xf32, #tpu.memory_space<vmem>>, vector<1x64xf32>
    %5 = vector.broadcast %4 : vector<1x64xf32> to vector<800x64xf32>
    %6 = arith.mulf %3, %5 : vector<800x64xf32>
    %c0_6 = arith.constant 0 : index
    %c0_7 = arith.constant 0 : index
    %7 = vector.load %arg4[%c0_6, %c0_7] : memref<1x64xf32, #tpu.memory_space<vmem>>, vector<1x64xf32>
    %8 = vector.broadcast %7 : vector<1x64xf32> to vector<800x64xf32>
    %9 = arith.addf %6, %8 : vector<800x64xf32>
    %10 = vector.extract_strided_slice %9 {offsets = [0, 0], sizes = [200, 64], strides = [1, 1]} : vector<800x64xf32> to vector<200x64xf32>
    %11 = vector.extract_strided_slice %9 {offsets = [200, 0], sizes = [200, 64], strides = [1, 1]} : vector<800x64xf32> to vector<200x64xf32>
    %12 = arith.maximumf %10, %11 : vector<200x64xf32>
    %13 = vector.extract_strided_slice %9 {offsets = [400, 0], sizes = [200, 64], strides = [1, 1]} : vector<800x64xf32> to vector<200x64xf32>
    %14 = vector.extract_strided_slice %9 {offsets = [600, 0], sizes = [200, 64], strides = [1, 1]} : vector<800x64xf32> to vector<200x64xf32>
    %15 = arith.maximumf %13, %14 : vector<200x64xf32>
    %16 = arith.maximumf %12, %15 : vector<200x64xf32>
    %cst_8 = arith.constant 0.000000e+00 : f32
    %17 = vector.broadcast %cst_8 : f32 to vector<200x64xf32>
    %18 = arith.maximumf %16, %17 : vector<200x64xf32>
    %c0_9 = arith.constant 0 : index
    %c0_10 = arith.constant 0 : index
    %c0_11 = arith.constant 0 : index
    %19 = vector.load %arg5[%c0_9, %c0_10, %c0_11] : memref<1x200x64xf32, #tpu.memory_space<vmem>>, vector<1x200x64xf32>
    %20 = vector.shape_cast %19 : vector<1x200x64xf32> to vector<200x64xf32>
    %21 = vector.shape_cast %18 : vector<200x64xf32> to vector<1x200x64xf32>
    tpu.vector_store %arg5[%c0_9, %c0_10, %c0_11], %21 {strides = array<i32>} : memref<1x200x64xf32, #tpu.memory_space<vmem>>, vector<1x200x64xf32>,
    return
  }
  func.func @transform_0(%arg0: i32) -> (i32, i32, i32) {
    %c0_i32 = arith.constant 0 : i32
    %c0_i32_0 = arith.constant 0 : i32
    %c0_i32_1 = arith.constant 0 : i32
    return %arg0, %c0_i32, %c0_i32_0 : i32, i32, i32
  }
  func.func @transform_1(%arg0: i32) -> (i32, i32) {
    %c0_i32 = arith.constant 0 : i32
    %c0_i32_0 = arith.constant 0 : i32
    %c0_i32_1 = arith.constant 0 : i32
    return %c0_i32, %c0_i32_0 : i32, i32
  }
  func.func @transform_2(%arg0: i32) -> (i32, i32) {
    %c0_i32 = arith.constant 0 : i32
    %c0_i32_0 = arith.constant 0 : i32
    %c0_i32_1 = arith.constant 0 : i32
    return %c0_i32, %c0_i32_0 : i32, i32
  }
  func.func @transform_3(%arg0: i32) -> (i32, i32) {
    %c0_i32 = arith.constant 0 : i32
    %c0_i32_0 = arith.constant 0 : i32
    %c0_i32_1 = arith.constant 0 : i32
    return %c0_i32, %c0_i32_0 : i32, i32
  }
  func.func @transform_4(%arg0: i32) -> (i32, i32, i32) {
    %c0_i32 = arith.constant 0 : i32
    %c0_i32_0 = arith.constant 0 : i32
    %c0_i32_1 = arith.constant 0 : i32
    return %arg0, %c0_i32, %c0_i32_0 : i32, i32, i32
  }
}

module attributes {stable_mosaic.version = 11 : i64} {
  func.func @_stage_kernel(%arg0: i32, %arg1: memref<1x128x1600xbf16, #tpu.memory_space<vmem>>, %arg2: memref<1600x64xbf16, #tpu.memory_space<vmem>>, %arg3: memref<1x64xf32, #tpu.memory_space<vmem>>, %arg4: memref<1x64xf32, #tpu.memory_space<vmem>>, %arg5: memref<1x32x64xf32, #tpu.memory_space<vmem>>) attributes {dimension_semantics = [#tpu.dimension_semantics<parallel>], iteration_bounds = array<i64: 2>, scalar_prefetch = 0 : i64, scratch_operands = 0 : i64, tpu.core_type = #tpu.core_type<tc>, window_params = [{transform_indices = @transform_0, window_bounds = array<i64: 1, 128, 1600>}, {pipeline_mode = #tpu.pipeline_mode<synchronous>, transform_indices = @transform_1, window_bounds = array<i64: 1600, 64>}, {pipeline_mode = #tpu.pipeline_mode<synchronous>, transform_indices = @transform_2, window_bounds = array<i64: 1, 64>}, {pipeline_mode = #tpu.pipeline_mode<synchronous>, transform_indices = @transform_3, window_bounds = array<i64: 1, 64>}, {transform_indices = @transform_4, window_bounds = array<i64: 1, 32, 64>}]} {
    %c0 = arith.constant 0 : index
    %c0_0 = arith.constant 0 : index
    %c0_1 = arith.constant 0 : index
    %0 = vector.load %arg1[%c0, %c0_0, %c0_1] : memref<1x128x1600xbf16, #tpu.memory_space<vmem>>, vector<1x128x1600xbf16>
    %1 = vector.shape_cast %0 : vector<1x128x1600xbf16> to vector<128x1600xbf16>
    %c0_2 = arith.constant 0 : index
    %c0_3 = arith.constant 0 : index
    %2 = vector.load %arg2[%c0_2, %c0_3] : memref<1600x64xbf16, #tpu.memory_space<vmem>>, vector<1600x64xbf16>
    %cst = arith.constant dense<0.000000e+00> : vector<128x64xf32>
    %3 = tpu.matmul %1, %2, %cst {dimension_numbers = #tpu.dot_dimension_numbers<[1], [0], [0], [1], [0, 0, 1, 1], [], []>} : vector<128x1600xbf16>, vector<1600x64xbf16>, vector<128x64xf32> -> vector<128x64xf32>
    %c0_4 = arith.constant 0 : index
    %c0_5 = arith.constant 0 : index
    %4 = vector.load %arg3[%c0_4, %c0_5] : memref<1x64xf32, #tpu.memory_space<vmem>>, vector<1x64xf32>
    %5 = vector.broadcast %4 : vector<1x64xf32> to vector<128x64xf32>
    %6 = arith.mulf %3, %5 : vector<128x64xf32>
    %c0_6 = arith.constant 0 : index
    %c0_7 = arith.constant 0 : index
    %7 = vector.load %arg4[%c0_6, %c0_7] : memref<1x64xf32, #tpu.memory_space<vmem>>, vector<1x64xf32>
    %8 = vector.broadcast %7 : vector<1x64xf32> to vector<128x64xf32>
    %9 = arith.addf %6, %8 : vector<128x64xf32>
    %10 = vector.extract_strided_slice %9 {offsets = [0, 0], sizes = [32, 64], strides = [1, 1]} : vector<128x64xf32> to vector<32x64xf32>
    %11 = vector.extract_strided_slice %9 {offsets = [32, 0], sizes = [32, 64], strides = [1, 1]} : vector<128x64xf32> to vector<32x64xf32>
    %12 = arith.maximumf %10, %11 : vector<32x64xf32>
    %13 = vector.extract_strided_slice %9 {offsets = [64, 0], sizes = [32, 64], strides = [1, 1]} : vector<128x64xf32> to vector<32x64xf32>
    %14 = vector.extract_strided_slice %9 {offsets = [96, 0], sizes = [32, 64], strides = [1, 1]} : vector<128x64xf32> to vector<32x64xf32>
    %15 = arith.maximumf %13, %14 : vector<32x64xf32>
    %16 = arith.maximumf %12, %15 : vector<32x64xf32>
    %cst_8 = arith.constant 0.000000e+00 : f32
    %17 = vector.broadcast %cst_8 : f32 to vector<32x64xf32>
    %18 = arith.maximumf %16, %17 : vector<32x64xf32>
    %c0_9 = arith.constant 0 : index
    %c0_10 = arith.constant 0 : index
    %c0_11 = arith.constant 0 : index
    %19 = vector.load %arg5[%c0_9, %c0_10, %c0_11] : memref<1x32x64xf32, #tpu.memory_space<vmem>>, vector<1x32x64xf32>
    %20 = vector.shape_cast %19 : vector<1x32x64xf32> to vector<32x64xf32>
    %21 = vector.shape_cast %18 : vector<32x64xf32> to vector<1x32x64xf32>
    tpu.vector_store %arg5[%c0_9, %c0_10, %c0_11], %21 {strides = array<i32>} : memref<1x32x64xf32, #tpu.memory_space<vmem>>, vector<1x32x64xf32>,
    return
  }
  func.func @transform_0(%arg0: i32) -> (i32, i32, i32) {
    %c0_i32 = arith.constant 0 : i32
    %c0_i32_0 = arith.constant 0 : i32
    %c0_i32_1 = arith.constant 0 : i32
    return %arg0, %c0_i32, %c0_i32_0 : i32, i32, i32
  }
  func.func @transform_1(%arg0: i32) -> (i32, i32) {
    %c0_i32 = arith.constant 0 : i32
    %c0_i32_0 = arith.constant 0 : i32
    %c0_i32_1 = arith.constant 0 : i32
    return %c0_i32, %c0_i32_0 : i32, i32
  }
  func.func @transform_2(%arg0: i32) -> (i32, i32) {
    %c0_i32 = arith.constant 0 : i32
    %c0_i32_0 = arith.constant 0 : i32
    %c0_i32_1 = arith.constant 0 : i32
    return %c0_i32, %c0_i32_0 : i32, i32
  }
  func.func @transform_3(%arg0: i32) -> (i32, i32) {
    %c0_i32 = arith.constant 0 : i32
    %c0_i32_0 = arith.constant 0 : i32
    %c0_i32_1 = arith.constant 0 : i32
    return %c0_i32, %c0_i32_0 : i32, i32
  }
  func.func @transform_4(%arg0: i32) -> (i32, i32, i32) {
    %c0_i32 = arith.constant 0 : i32
    %c0_i32_0 = arith.constant 0 : i32
    %c0_i32_1 = arith.constant 0 : i32
    return %arg0, %c0_i32, %c0_i32_0 : i32, i32, i32
  }
}

module attributes {stable_mosaic.version = 11 : i64} {
  func.func @_head_kernel(%arg0: i32, %arg1: memref<2x1600xbf16, #tpu.memory_space<vmem>>, %arg2: memref<1600x128xbf16, #tpu.memory_space<vmem>>, %arg3: memref<1x128xf32, #tpu.memory_space<vmem>>, %arg4: memref<1x128xf32, #tpu.memory_space<vmem>>, %arg5: memref<2x128xf32, #tpu.memory_space<vmem>>) attributes {dimension_semantics = [#tpu.dimension_semantics<arbitrary>], iteration_bounds = array<i64: 1>, scalar_prefetch = 0 : i64, scratch_operands = 0 : i64, tpu.core_type = #tpu.core_type<tc>, window_params = [{pipeline_mode = #tpu.pipeline_mode<synchronous>, transform_indices = @transform_0, window_bounds = array<i64: 2, 1600>}, {pipeline_mode = #tpu.pipeline_mode<synchronous>, transform_indices = @transform_1, window_bounds = array<i64: 1600, 128>}, {pipeline_mode = #tpu.pipeline_mode<synchronous>, transform_indices = @transform_2, window_bounds = array<i64: 1, 128>}, {pipeline_mode = #tpu.pipeline_mode<synchronous>, transform_indices = @transform_3, window_bounds = array<i64: 1, 128>}, {pipeline_mode = #tpu.pipeline_mode<synchronous>, transform_indices = @transform_4, window_bounds = array<i64: 2, 128>}]} {
    %c0 = arith.constant 0 : index
    %c0_0 = arith.constant 0 : index
    %0 = vector.load %arg1[%c0, %c0_0] : memref<2x1600xbf16, #tpu.memory_space<vmem>>, vector<2x1600xbf16>
    %c0_1 = arith.constant 0 : index
    %c0_2 = arith.constant 0 : index
    %1 = vector.load %arg2[%c0_1, %c0_2] : memref<1600x128xbf16, #tpu.memory_space<vmem>>, vector<1600x128xbf16>
    %cst = arith.constant dense<0.000000e+00> : vector<2x128xf32>
    %2 = tpu.matmul %0, %1, %cst {dimension_numbers = #tpu.dot_dimension_numbers<[1], [0], [0], [1], [0, 0, 1, 1], [], []>} : vector<2x1600xbf16>, vector<1600x128xbf16>, vector<2x128xf32> -> vector<2x128xf32>
    %c0_3 = arith.constant 0 : index
    %c0_4 = arith.constant 0 : index
    %3 = vector.load %arg3[%c0_3, %c0_4] : memref<1x128xf32, #tpu.memory_space<vmem>>, vector<1x128xf32>
    %4 = vector.broadcast %3 : vector<1x128xf32> to vector<2x128xf32>
    %5 = arith.mulf %2, %4 : vector<2x128xf32>
    %c0_5 = arith.constant 0 : index
    %c0_6 = arith.constant 0 : index
    %6 = vector.load %arg4[%c0_5, %c0_6] : memref<1x128xf32, #tpu.memory_space<vmem>>, vector<1x128xf32>
    %7 = vector.broadcast %6 : vector<1x128xf32> to vector<2x128xf32>
    %8 = arith.addf %5, %7 : vector<2x128xf32>
    %9 = math.absf %8 : vector<2x128xf32>
    %cst_7 = arith.constant 0.000000e+00 : f32
    %10 = vector.broadcast %cst_7 : f32 to vector<2x128xf32>
    %11 = arith.subf %10, %9 : vector<2x128xf32>
    %12 = math.exp %11 : vector<2x128xf32>
    %cst_8 = arith.constant 0.000000e+00 : f32
    %13 = vector.broadcast %cst_8 : f32 to vector<2x128xf32>
    %14 = arith.cmpf oge, %8, %13 : vector<2x128xf32>
    %cst_9 = arith.constant 1.000000e+00 : f32
    %15 = vector.broadcast %cst_9 : f32 to vector<2x128xf32>
    %16 = arith.addf %15, %12 : vector<2x128xf32>
    %cst_10 = arith.constant 1.000000e+00 : f32
    %17 = vector.broadcast %cst_10 : f32 to vector<2x128xf32>
    %18 = arith.divf %17, %16 : vector<2x128xf32>
    %cst_11 = arith.constant 1.000000e+00 : f32
    %19 = vector.broadcast %cst_11 : f32 to vector<2x128xf32>
    %20 = arith.addf %19, %12 : vector<2x128xf32>
    %21 = arith.divf %12, %20 : vector<2x128xf32>
    %22 = arith.select %14, %18, %21 : vector<2x128xi1>, vector<2x128xf32>
    %c0_12 = arith.constant 0 : index
    %c0_13 = arith.constant 0 : index
    %23 = vector.load %arg5[%c0_12, %c0_13] : memref<2x128xf32, #tpu.memory_space<vmem>>, vector<2x128xf32>
    tpu.vector_store %arg5[%c0_12, %c0_13], %22 {strides = array<i32>} : memref<2x128xf32, #tpu.memory_space<vmem>>, vector<2x128xf32>,
    return
  }
  func.func @transform_0(%arg0: i32) -> (i32, i32) {
    %c0_i32 = arith.constant 0 : i32
    %c0_i32_0 = arith.constant 0 : i32
    %c0_i32_1 = arith.constant 0 : i32
    return %c0_i32, %c0_i32_0 : i32, i32
  }
  func.func @transform_1(%arg0: i32) -> (i32, i32) {
    %c0_i32 = arith.constant 0 : i32
    %c0_i32_0 = arith.constant 0 : i32
    %c0_i32_1 = arith.constant 0 : i32
    return %c0_i32, %c0_i32_0 : i32, i32
  }
  func.func @transform_2(%arg0: i32) -> (i32, i32) {
    %c0_i32 = arith.constant 0 : i32
    %c0_i32_0 = arith.constant 0 : i32
    %c0_i32_1 = arith.constant 0 : i32
    return %c0_i32, %c0_i32_0 : i32, i32
  }
  func.func @transform_3(%arg0: i32) -> (i32, i32) {
    %c0_i32 = arith.constant 0 : i32
    %c0_i32_0 = arith.constant 0 : i32
    %c0_i32_1 = arith.constant 0 : i32
    return %c0_i32, %c0_i32_0 : i32, i32
  }
  func.func @transform_4(%arg0: i32) -> (i32, i32) {
    %c0_i32 = arith.constant 0 : i32
    %c0_i32_0 = arith.constant 0 : i32
    %c0_i32_1 = arith.constant 0 : i32
    return %c0_i32, %c0_i32_0 : i32, i32
  }
}

</mosaic_0001>

<bundles_post_ra>
// kernel: feature_extractor_digits.3
= control target key start
LH: loop header
LB: loop body
LE: loop exit
PB: predicated region body
PF: predicated region fallthrough
CT: control target
= control target key end

     0   :  { %s1965_s15 = smov 0   ;;  %s2626_s0 = inlined_call_operand.vmem [shape: bf16[2,800,75], index: 0, kind: input, shape index: {}]   ;;  %s2627_s1 = inlined_call_operand.vmem [shape: bf16[75,64], index: 1, kind: input, shape index: {}]   ;;  %s2628_s2 = inlined_call_operand.vmem [shape: f32[1,64], index: 2, kind: input, shape index: {}]   ;;  %s2629_s3 = inlined_call_operand.vmem [shape: f32[1,64], index: 3, kind: input, shape index: {}]   ;;  %s2630_s4 = inlined_call_operand.vmem [shape: f32[2,200,64], index: 4, kind: output, shape index: {}]  }
   0x1 LB: > { %s1574_s16 = sadd.s32 4294967295, %s1937_s15   ;;  %p1578_p0 = scmp.ge.s32.totalorder %s1937_s15, 1  ;;  %s1937_s15 = sphi %s1965_s15, %s14_s15  }
   0x2   : > { %p162_p1 = scmp.lt.s32.totalorder %s1937_s15, 3 }
   0x4   : > { %p163_p2 = pnand %p1578_p0, %p162_p1 }
   0x6   : > { %166 = sbr.rel (%p163_p2) target bundleno = 357 (0x165), region = 36 }
   0xd   : > { %v1876_v0 = vld [vmem:[%s2627_s1] sm:$0xff]   ;;  %v1877_v1 = vld [vmem:[%s2627_s1 + $0x8] sm:$0xff]   ;;  %vm739_vm0 = vcmask 1044480   ;;  %v1878_v2 = vld [vmem:[%s2627_s1 + $0x10] sm:$0xff]   ;;  %p188_p3 = scmp.lt.s32.totalorder %s1574_s16, 1  ;;  %vm740_vm1 = vcmask 1045504  }
   0xe   : > { %1745 = vmatprep.subr.bf16.mxu0 %v1876_v0  ;;  %1855 = vmatprep.subr.bf16.mxu1 %v1876_v0  ;;  %v1939_v3 = vmov 65535   ;;  %v1879_v5 = vld [vmem:[%s2627_s1 + $0x18] sm:$0xff]   ;;  %v1880_v6 = vld [vmem:[%s2627_s1 + $0x20] sm:$0x3f]   ;;  %vm588_vm2 = vcmask 613376   ;;  %vm1493_vm3 = vcmask 523264  }
   0xf   : > { %1746 = vmatpush3.bf16.msra.mxu0 %v1876_v0  ;;  %1860 = vmatpush3.bf16.msra.mxu1 %v1876_v0  ;;  %v741_v4 = vsel %vm739_vm0, 4294967295, %v1939_v3  ;;  %s2650_s16 = smov (!%p188_p3, %s1574_s16), 1 }
  0x10   : > { %1747 = vmatprep.subr.bf16.mxu0 %v1877_v1  ;;  %1856 = vmatprep.subr.bf16.mxu1 %v1877_v1  ;;  %v742_v7 = vsel %vm740_vm1, %v741_v4, 0  ;;  %s1865_s27 = smul.u32 400, %s2650_s16 }
  0x11   : > { %v744_v8 = vand.u32 %v1880_v6, %v742_v7  ;;  %s1866_s9 = smul.u32 200, %s2650_s16 }
  0x12   : > { %s1994_s30 = scalar_lea.vmem %s2626_s0, %s1865_s27 }
  0x13   : > { %1748 = vmatpush3.bf16.msra.mxu0 %v1877_v1  ;;  %1861 = vmatpush3.bf16.msra.mxu1 %v1877_v1  ;;  %v1881_v9 = vld [vmem:[%s1994_s30] sm:$0xff]   ;;  %v1882_v10 = vld [vmem:[%s1994_s30 + $0xd0] sm:$0xff]   ;;  %v1883_v11 = vld [vmem:[%s1994_s30 + $0x8] sm:$0xff]   ;;  %s2378_s12 = scalar_lea.vmem %s2630_s4, %s1866_s9 }
  0x14   : > { %1749 = vmatprep.subr.bf16.mxu0 %v1878_v2  ;;  %1857 = vmatprep.subr.bf16.mxu1 %v1878_v2  ;;  %v1884_v12 = vld [vmem:[%s1994_s30 + $0xd8] sm:$0xff]   ;;  %v1885_v13 = vld [vmem:[%s1994_s30 + $0x10] sm:$0xff]   ;;  %v1886_v14 = vld [vmem:[%s1994_s30 + $0xe0] sm:$0xff]  }
  0x15   : > { %1755 = vmatprep.mubr.msk.bf16.mxu0 %vm588_vm2, %v1881_v9  ;;  %1807 = vmatprep.mubr.msk.bf16.mxu1 %vm588_vm2, %v1882_v10  ;;  %v1887_v15 = vld [vmem:[%s1994_s30 + $0x18] sm:$0xff]   ;;  %v1888_v16 = vld [vmem:[%s1994_s30 + $0xe8] sm:$0xff]   ;;  %v1889_v17 = vld [vmem:[%s1994_s30 + $0x20] sm:$0xff]  }
  0x16   : > { %v1890_v18 = vld [vmem:[%s1994_s30 + $0xf0] sm:$0xff]   ;;  %v1891_v19 = vld [vmem:[%s1994_s30 + $0x28] sm:$0xff]   ;;  %v1892_v20 = vld [vmem:[%s1994_s30 + $0xf8] sm:$0xff]  }
  0x17   : > { %1750 = vmatpush3.bf16.msra.mxu0 %v1878_v2  ;;  %1862 = vmatpush3.bf16.msra.mxu1 %v1878_v2  ;;  %v1893_v21 = vld [vmem:[%s1994_s30 + $0x30] sm:$0xff]   ;;  %v1894_v22 = vld [vmem:[%s1994_s30 + $0x100] sm:$0xff]   ;;  %v1895_v23 = vld [vmem:[%s1994_s30 + $0x38] sm:$0xff]  }
  0x18   : > { %1751 = vmatprep.subr.bf16.mxu0 %v1879_v5  ;;  %1858 = vmatprep.subr.bf16.mxu1 %v1879_v5  ;;  %v1896_v24 = vld [vmem:[%s1994_s30 + $0x108] sm:$0xff]   ;;  %v1897_v25 = vld [vmem:[%s1994_s30 + $0x40] sm:$0xff]   ;;  %v1898_v26 = vld [vmem:[%s1994_s30 + $0x110] sm:$0xff]  }
  0x19   : > { %v1899_v27 = vld [vmem:[%s1994_s30 + $0x48] sm:$0xff]   ;;  %v1900_v28 = vld [vmem:[%s1994_s30 + $0x118] sm:$0xff]   ;;  %v1901_v29 = vld [vmem:[%s1994_s30 + $0x50] sm:$0xff]  }
  0x1a   : > { %v1902_v30 = vld [vmem:[%s1994_s30 + $0x120] sm:$0xff]   ;;  %v1903_v31 = vld [vmem:[%s1994_s30 + $0x58] sm:$0xff]   ;;  %v1904_v32 = vld [vmem:[%s1994_s30 + $0x128] sm:$0xff]  }
  0x1b   : > { %1752 = vmatpush3.bf16.msra.mxu0 %v1879_v5  ;;  %1863 = vmatpush3.bf16.msra.mxu1 %v1879_v5  ;;  %v1905_v33 = vld [vmem:[%s1994_s30 + $0x60] sm:$0xff]   ;;  %v1906_v34 = vld [vmem:[%s1994_s30 + $0x130] sm:$0xff]   ;;  %v1907_v35 = vld [vmem:[%s1994_s30 + $0x68] sm:$0xff]  }
  0x1c   : > { %1753 = vmatprep.subr.bf16.mxu0 %v744_v8  ;;  %1859 = vmatprep.subr.bf16.mxu1 %v744_v8  ;;  %v1908_v36 = vld [vmem:[%s1994_s30 + $0x138] sm:$0xff]   ;;  %v1909_v37 = vld [vmem:[%s1994_s30 + $0x70] sm:$0xff]   ;;  %v1910_v38 = vld [vmem:[%s1994_s30 + $0x140] sm:$0xff]  }
  0x1d   : > { %v1911_v39 = vld [vmem:[%s1994_s30 + $0x78] sm:$0xff]   ;;  %v1912_v40 = vld [vmem:[%s1994_s30 + $0x148] sm:$0xff]   ;;  %v1913_v41 = vld [vmem:[%s1994_s30 + $0x80] sm:$0xff]  }
  0x1e   : > { %v1914_v42 = vld [vmem:[%s1994_s30 + $0x150] sm:$0xff]   ;;  %v1915_v43 = vld [vmem:[%s1994_s30 + $0x88] sm:$0xff]   ;;  %v1916_v44 = vld [vmem:[%s1994_s30 + $0x158] sm:$0xff]  }
  0x1f   : > { %1754 = vmatpush3.bf16.msra.mxu0 %v744_v8  ;;  %1864 = vmatpush3.bf16.msra.mxu1 %v744_v8  ;;  %v1917_v45 = vld [vmem:[%s1994_s30 + $0x90] sm:$0xff]   ;;  %v1918_v46 = vld [vmem:[%s1994_s30 + $0x160] sm:$0xff]   ;;  %v1919_v47 = vld [vmem:[%s1994_s30 + $0x98] sm:$0xff]  }
  0x20   : > { %v1920_v48 = vld [vmem:[%s1994_s30 + $0x168] sm:$0xff]   ;;  %v1921_v49 = vld [vmem:[%s1994_s30 + $0xa0] sm:$0xff]   ;;  %v1922_v50 = vld [vmem:[%s1994_s30 + $0x170] sm:$0xff]  }
  0x21   : > { %v1923_v51 = vld [vmem:[%s1994_s30 + $0xa8] sm:$0xff]   ;;  %v1924_v52 = vld [vmem:[%s1994_s30 + $0x178] sm:$0xff]   ;;  %v1925_v53 = vld [vmem:[%s1994_s30 + $0xb0] sm:$0xff]  }
  0x22   : > { %1756 = vmatmul.mubr.msk.bf16.vlgmr.msra.gmra.mrb[0].mxu0 %vm588_vm2, %v1883_v11  ;;  %1808 = vmatmul.mubr.msk.bf16.vlgmr.msra.gmra.mrb[0].mxu1 %vm588_vm2, %v1884_v12  ;;  %v1926_v54 = vld [vmem:[%s1994_s30 + $0x180] sm:$0xff]   ;;  %v1927_v55 = vld [vmem:[%s1994_s30 + $0xb8] sm:$0xff]   ;;  %v1928_v56 = vld [vmem:[%s1994_s30 + $0x188] sm:$0xff]  }
  0x23   : > { %1759 = vmatprep.mubr.msk.bf16.mxu0 %vm588_vm2, %v1885_v13  ;;  %1811 = vmatprep.mubr.msk.bf16.mxu1 %vm588_vm2, %v1886_v14  ;;  %v1929_v57 = vld [vmem:[%s1994_s30 + $0xc0] sm:$0xff]   ;;  %v1930_v58 = vld [vmem:[%s1994_s30 + $0xc8] sm:$0xff]  }
  0x2a   : > { %1760 = vmatmul.mubr.msk.bf16.gmra.mrb[4].mxu0 %vm588_vm2, %v1887_v15  ;;  %1812 = vmatmul.mubr.msk.bf16.gmra.mrb[4].mxu1 %vm588_vm2, %v1888_v16 }
  0x2b   : > { %1763 = vmatprep.mubr.msk.bf16.mxu0 %vm588_vm2, %v1889_v17  ;;  %1815 = vmatprep.mubr.msk.bf16.mxu1 %vm588_vm2, %v1890_v18 }
  0x32   : > { %1764 = vmatmul.mubr.msk.bf16.gmra.mrb[8].mxu0 %vm588_vm2, %v1891_v19  ;;  %1816 = vmatmul.mubr.msk.bf16.gmra.mrb[8].mxu1 %vm588_vm2, %v1892_v20 }
  0x33   : > { %1767 = vmatprep.mubr.msk.bf16.mxu0 %vm588_vm2, %v1893_v21  ;;  %1819 = vmatprep.mubr.msk.bf16.mxu1 %vm588_vm2, %v1894_v22  ;;  %v2105_v21 = vld [vmem:[%s2628_s2] ss:$0 sm:$0xff] }
  0x3a   : > { %1768 = vmatmul.mubr.msk.bf16.gmra.mrb[12].mxu0 %vm588_vm2, %v1895_v23  ;;  %1820 = vmatmul.mubr.msk.bf16.gmra.mrb[12].mxu1 %vm588_vm2, %v1896_v24 }
  0x3b   : > { %1771 = vmatprep.mubr.msk.bf16.mxu0 %vm588_vm2, %v1897_v25  ;;  %1823 = vmatprep.mubr.msk.bf16.mxu1 %vm588_vm2, %v1898_v26 }
  0x42   : > { %1772 = vmatmul.mubr.msk.bf16.gmra.mrb[16].mxu0 %vm588_vm2, %v1899_v27  ;;  %1824 = vmatmul.mubr.msk.bf16.gmra.mrb[16].mxu1 %vm588_vm2, %v1900_v28 }
  0x43   : > { %1775 = vmatprep.mubr.msk.bf16.mxu0 %vm588_vm2, %v1901_v29  ;;  %1827 = vmatprep.mubr.msk.bf16.mxu1 %vm588_vm2, %v1902_v30  ;;  %v2124_v30 = vld [vmem:[%s2629_s3] ss:$0 sm:$0xff] }
  0x4a   : > { %1776 = vmatmul.mubr.msk.bf16.gmra.mrb[20].mxu0 %vm588_vm2, %v1903_v31  ;;  %1828 = vmatmul.mubr.msk.bf16.gmra.mrb[20].mxu1 %vm588_vm2, %v1904_v32 }
  0x4b   : > { %1779 = vmatprep.mubr.msk.bf16.mxu0 %vm588_vm2, %v1905_v33  ;;  %1831 = vmatprep.mubr.msk.bf16.mxu1 %vm588_vm2, %v1906_v34 }
  0x52   : > { %1780 = vmatmul.mubr.msk.bf16.gmra.mrb[24].mxu0 %vm588_vm2, %v1907_v35  ;;  %1832 = vmatmul.mubr.msk.bf16.gmra.mrb[24].mxu1 %vm588_vm2, %v1908_v36 }
  0x53   : > { %1783 = vmatprep.mubr.msk.bf16.mxu0 %vm588_vm2, %v1909_v37  ;;  %1835 = vmatprep.mubr.msk.bf16.mxu1 %vm588_vm2, %v1910_v38 }
  0x5a   : > { %1784 = vmatmul.mubr.msk.bf16.gmra.mrb[28].mxu0 %vm588_vm2, %v1911_v39  ;;  %1836 = vmatmul.mubr.msk.bf16.gmra.mrb[28].mxu1 %vm588_vm2, %v1912_v40 }
  0x5b   : > { %1787 = vmatprep.mubr.msk.bf16.mxu0 %vm588_vm2, %v1913_v41  ;;  %1839 = vmatprep.mubr.msk.bf16.mxu1 %vm588_vm2, %v1914_v42 }
  0x62   : > { %1788 = vmatmul.mubr.msk.bf16.gmra.mrb[32].mxu0 %vm588_vm2, %v1915_v43  ;;  %1840 = vmatmul.mubr.msk.bf16.gmra.mrb[32].mxu1 %vm588_vm2, %v1916_v44 }
  0x63   : > { %1791 = vmatprep.mubr.msk.bf16.mxu0 %vm588_vm2, %v1917_v45  ;;  %1843 = vmatprep.mubr.msk.bf16.mxu1 %vm588_vm2, %v1918_v46 }
  0x6a   : > { %1792 = vmatmul.mubr.msk.bf16.gmra.mrb[36].mxu0 %vm588_vm2, %v1919_v47  ;;  %1844 = vmatmul.mubr.msk.bf16.gmra.mrb[36].mxu1 %vm588_vm2, %v1920_v48 }
  0x6b   : > { %1795 = vmatprep.mubr.msk.bf16.mxu0 %vm588_vm2, %v1921_v49  ;;  %1847 = vmatprep.mubr.msk.bf16.mxu1 %vm588_vm2, %v1922_v50 }
  0x72   : > { %1796 = vmatmul.mubr.msk.bf16.gmra.mrb[40].mxu0 %vm588_vm2, %v1923_v51  ;;  %1848 = vmatmul.mubr.msk.bf16.gmra.mrb[40].mxu1 %vm588_vm2, %v1924_v52 }
  0x73   : > { %1799 = vmatprep.mubr.msk.bf16.mxu0 %vm588_vm2, %v1925_v53  ;;  %1851 = vmatprep.mubr.msk.bf16.mxu1 %vm588_vm2, %v1926_v54 }
  0x7a   : > { %1800 = vmatmul.mubr.msk.bf16.gmra.mrb[44].mxu0 %vm588_vm2, %v1927_v55  ;;  %1852 = vmatmul.mubr.msk.bf16.gmra.mrb[44].mxu1 %vm588_vm2, %v1928_v56 }
  0x7b   : > { %1803 = vmatprep.mubr.msk.bf16.mxu0 %vm588_vm2, %v1929_v57 }
  0x82   : > { %1804 = vmatmul.mubr.msk.bf16.gmra.mrb[48].mxu0 %vm588_vm2, %v1930_v58 }
  0xf5   : > { %v1757_v59 = vpop.f32.mrb[0].mxu0  ;;  %v1809_v60 = vpop.f32.mrb[0].mxu1 }
  0xf6   : > { %v780_v61 = vpop.f32.mrb[1].mxu0  ;;  %v988_v62 = vpop.f32.mrb[1].mxu1  ;;  %v1188_v28 = vmul.f32 %v1757_v59, %v2105_v21  ;;  %v1240_v29 = vmul.f32 %v1809_v60, %v2105_v21 }
  0xf7   : > { %v1758_v63 = vpop.f32.mrb[2].mxu0  ;;  %v1810_v0 = vpop.f32.mrb[2].mxu1  ;;  %v1186_v31 = vmul.f32 %v2105_v21, %v780_v61  ;;  %v1238_v33 = vmul.f32 %v2105_v21, %v988_v62 }
  0xf8   : > { %v783_v1 = vpop.f32.mrb[3].mxu0  ;;  %v991_v2 = vpop.f32.mrb[3].mxu1  ;;  %v1189_v32 = vmul.f32 %v1758_v63, %v2105_v21  ;;  %v1241_v34 = vmul.f32 %v1810_v0, %v2105_v21  ;;  %v2131_v35 = vadd.f32 %v2124_v30, %v1188_v28  ;;  %v2134_v36 = vadd.f32 %v2124_v30, %v1240_v29 }
  0xf9   : > { %v2137_v39 = vadd.f32 %v2124_v30, %v1186_v31  ;;  %v1187_v40 = vmul.f32 %v2105_v21, %v783_v1  ;;  %v1239_v42 = vmul.f32 %v2105_v21, %v991_v2  ;;  %v2148_v46 = vadd.f32 %v2124_v30, %v1238_v33 }
  0xfa   : > { %v2145_v45 = vadd.f32 %v2124_v30, %v1189_v32  ;;  %v2151_v47 = vadd.f32 %v2124_v30, %v1241_v34 }
  0xfb   : > { %2635 = vst [vmem:[#allocation2_spill] sm:$0xff] %v2137_v39  ;;  %v2167_v61 = vadd.f32 %v2124_v30, %v1187_v40  ;;  %v2173_v63 = vadd.f32 %v2124_v30, %v1239_v42 }
  0xfd   : > { %v1761_v3 = vpop.f32.mrb[4].mxu0  ;;  %v1813_v4 = vpop.f32.mrb[4].mxu1  ;;  %2636 = vst [vmem:[#allocation3_spill] sm:$0xff] %v2167_v61 }
  0xfe   : > { %v796_v5 = vpop.f32.mrb[5].mxu0  ;;  %v1004_v6 = vpop.f32.mrb[5].mxu1  ;;  %v1192_v41 = vmul.f32 %v1761_v3, %v2105_v21  ;;  %v1244_v48 = vmul.f32 %v1813_v4, %v2105_v21 }
  0xff   : > { %v1762_v7 = vpop.f32.mrb[6].mxu0  ;;  %v1814_v8 = vpop.f32.mrb[6].mxu1  ;;  %v1190_v51 = vmul.f32 %v2105_v21, %v796_v5  ;;  %v1242_v53 = vmul.f32 %v2105_v21, %v1004_v6 }
 0x100   : > { %v799_v9 = vpop.f32.mrb[7].mxu0  ;;  %v1007_v10 = vpop.f32.mrb[7].mxu1  ;;  %v1193_v52 = vmul.f32 %v1762_v7, %v2105_v21  ;;  %v1245_v54 = vmul.f32 %v1814_v8, %v2105_v21  ;;  %v2170_v62 = vadd.f32 %v2124_v30, %v1192_v41  ;;  %v2177_v1 = vadd.f32 %v2124_v30, %v1244_v48 }
 0x101   : > { %v1191_v57 = vmul.f32 %v2105_v21, %v799_v9  ;;  %v1243_v59 = vmul.f32 %v2105_v21, %v1007_v10  ;;  %v2183_v5 = vadd.f32 %v2124_v30, %v1190_v51  ;;  %v2189_v7 = vadd.f32 %v2124_v30, %v1242_v53 }
 0x102   : > { %v2186_v6 = vadd.f32 %v2124_v30, %v1193_v52  ;;  %v2192_v8 = vadd.f32 %v2124_v30, %v1245_v54 }
 0x103   : > { %v2195_v9 = vadd.f32 %v2124_v30, %v1191_v57 }
 0x105   : > { %v1765_v11 = vpop.f32.mrb[8].mxu0  ;;  %v1817_v12 = vpop.f32.mrb[8].mxu1 }
 0x106   : > { %v812_v13 = vpop.f32.mrb[9].mxu0  ;;  %v1020_v14 = vpop.f32.mrb[9].mxu1  ;;  %v1196_v58 = vmul.f32 %v1765_v11, %v2105_v21  ;;  %v1248_v60 = vmul.f32 %v1817_v12, %v2105_v21  ;;  %v2201_v11 = vadd.f32 %v2124_v30, %v1243_v59 }
 0x107   : > { %v1766_v15 = vpop.f32.mrb[10].mxu0  ;;  %v1818_v16 = vpop.f32.mrb[10].mxu1  ;;  %v1194_v0 = vmul.f32 %v2105_v21, %v812_v13  ;;  %v1246_v3 = vmul.f32 %v2105_v21, %v1020_v14 }
 0x108   : > { %v2096_v17 = vpop.f32.mrb[11].mxu0  ;;  %v2098_v18 = vpop.f32.mrb[11].mxu1  ;;  %v1197_v2 = vmul.f32 %v1766_v15, %v2105_v21  ;;  %v1249_v4 = vmul.f32 %v1818_v16, %v2105_v21  ;;  %v2198_v10 = vadd.f32 %v2124_v30, %v1196_v58  ;;  %v2204_v12 = vadd.f32 %v2124_v30, %v1248_v60 }
 0x109   : > { %v2207_v15 = vadd.f32 %v2124_v30, %v1194_v0  ;;  %v1195_v16 = vmul.f32 %v2105_v21, %v2096_v17  ;;  %v1247_v29 = vmul.f32 %v2105_v21, %v2098_v18  ;;  %v2222_v34 = vadd.f32 %v2124_v30, %v1246_v3 }
 0x10a   : > { %v2219_v33 = vadd.f32 %v2124_v30, %v1197_v2  ;;  %v2225_v40 = vadd.f32 %v2124_v30, %v1249_v4 }
 0x10b   : > { %v2252_v57 = vadd.f32 %v2124_v30, %v1195_v16 }
 0x10d   : > { %v1769_v19 = vpop.f32.mrb[12].mxu0  ;;  %v2100_v20 = vpop.f32.mrb[12].mxu1 }
 0x10e   : > { %v2107_v22 = vpop.f32.mrb[13].mxu0  ;;  %v2109_v23 = vpop.f32.mrb[13].mxu1  ;;  %v1200_v28 = vmul.f32 %v1769_v19, %v2105_v21  ;;  %v1252_v17 = vmul.f32 %v2100_v20, %v2105_v21 }
 0x10f   : > { %v2111_v24 = vpop.f32.mrb[14].mxu0  ;;  %v2113_v25 = vpop.f32.mrb[14].mxu1  ;;  %v1198_v18 = vmul.f32 %v2105_v21, %v2107_v22  ;;  %v1250_v48 = vmul.f32 %v2105_v21, %v2109_v23 }
 0x110   : > { %v2115_v26 = vpop.f32.mrb[15].mxu0  ;;  %v2117_v27 = vpop.f32.mrb[15].mxu1  ;;  %v1201_v42 = vmul.f32 %v2111_v24, %v2105_v21  ;;  %v1253_v51 = vmul.f32 %v2113_v25, %v2105_v21  ;;  %v2255_v23 = vadd.f32 %v2124_v30, %v1200_v28  ;;  %v2258_v25 = vadd.f32 %v2124_v30, %v1247_v29 }
 0x111   : > { %v1199_v20 = vmul.f32 %v2105_v21, %v2115_v26  ;;  %v1251_v22 = vmul.f32 %v2105_v21, %v2117_v27  ;;  %v2262_v26 = vadd.f32 %v2124_v30, %v1252_v17  ;;  %v2269_v59 = vadd.f32 %v2124_v30, %v1198_v18 }
 0x112   : > { %v2272_v60 = vadd.f32 %v2124_v30, %v1201_v42  ;;  %v2275_v0 = vadd.f32 %v2124_v30, %v1250_v48 }
 0x113   : > { %v2281_v2 = vadd.f32 %v2124_v30, %v1199_v20 }
 0x115   : > { %v1773_v37 = vpop.f32.mrb[16].mxu0  ;;  %v1825_v38 = vpop.f32.mrb[16].mxu1 }
 0x116   : > { %v844_v43 = vpop.f32.mrb[17].mxu0  ;;  %v2142_v44 = vpop.f32.mrb[17].mxu1  ;;  %v1204_v54 = vmul.f32 %v1773_v37, %v2105_v21  ;;  %v1256_v24 = vmul.f32 %v1825_v38, %v2105_v21 }
 0x117   : > { %v1774_v49 = vpop.f32.mrb[18].mxu0  ;;  %v1826_v50 = vpop.f32.mrb[18].mxu1  ;;  %v1202_v58 = vmul.f32 %v2105_v21, %v844_v43  ;;  %v1254_v27 = vmul.f32 %v2105_v21, %v2142_v44  ;;  %v2278_v43 = vadd.f32 %v2124_v30, %v1253_v51  ;;  %v2287_v44 = vadd.f32 %v2124_v30, %v1251_v22 }
 0x118   : > { %v2158_v55 = vpop.f32.mrb[19].mxu0  ;;  %v2160_v56 = vpop.f32.mrb[19].mxu1  ;;  %v1205_v37 = vmul.f32 %v1774_v49, %v2105_v21  ;;  %v1257_v38 = vmul.f32 %v1826_v50, %v2105_v21  ;;  %v2284_v49 = vadd.f32 %v2124_v30, %v1204_v54  ;;  %v2290_v50 = vadd.f32 %v2124_v30, %v1256_v24 }
 0x119   : > { %v2293_v16 = vadd.f32 %v2124_v30, %v1202_v58  ;;  %v1203_v28 = vmul.f32 %v2105_v21, %v2158_v55  ;;  %v2307_v51 = vadd.f32 %v2124_v30, %v1254_v27  ;;  %v1255_v55 = vmul.f32 %v2105_v21, %v2160_v56 }
 0x11a   : > { %v2304_v48 = vadd.f32 %v2124_v30, %v1205_v37  ;;  %v2310_v20 = vadd.f32 %v2124_v30, %v1257_v38 }
 0x11c   : > { %2637 = vst [vmem:[#allocation4_spill] sm:$0xff] %v2304_v48  ;;  %2638 = vst [vmem:[#allocation5_spill] sm:$0xff] %v2310_v20 }
 0x11d   : > { %v1777_v13 = vpop.f32.mrb[20].mxu0  ;;  %v1829_v14 = vpop.f32.mrb[20].mxu1 }
 0x11e   : > { %v2214_v31 = vpop.f32.mrb[21].mxu0  ;;  %v2216_v32 = vpop.f32.mrb[21].mxu1  ;;  %v1208_v38 = vmul.f32 %v1777_v13, %v2105_v21  ;;  %v1260_v56 = vmul.f32 %v1829_v14, %v2105_v21  ;;  %v2335_v13 = vadd.f32 %v2124_v30, %v1203_v28  ;;  %v2338_v14 = vadd.f32 %v2124_v30, %v1255_v55 }
 0x11f   : > { %v2229_v19 = vpop.f32.mrb[22].mxu0  ;;  %v2231_v41 = vpop.f32.mrb[22].mxu1 }
 0x120   : > { %v2241_v52 = vpop.f32.mrb[23].mxu0  ;;  %v2243_v53 = vpop.f32.mrb[23].mxu1  ;;  %v2353_v55 = vadd.f32 %v2124_v30, %v1208_v38 }
 0x125   : > { %v1781_v3 = vpop.f32.mrb[24].mxu0  ;;  %v1833_v4 = vpop.f32.mrb[24].mxu1 }
 0x126   : > { %v1212_v29 = vmul.f32 %v1781_v3, %v2105_v21  ;;  %v1264_v17 = vmul.f32 %v1833_v4, %v2105_v21  ;;  %v2299_v18 = vpop.f32.mrb[25].mxu0  ;;  %v2301_v42 = vpop.f32.mrb[25].mxu1 }
 0x127   : > { %v1782_v54 = vpop.f32.mrb[26].mxu0  ;;  %v1834_v22 = vpop.f32.mrb[26].mxu1 }
 0x128   : > { %v2315_v24 = vadd.f32 %v2124_v30, %v1212_v29  ;;  %v2318_v58 = vadd.f32 %v2124_v30, %v1264_v17  ;;  %v1213_v37 = vmul.f32 %v1782_v54, %v2105_v21  ;;  %v1265_v3 = vmul.f32 %v1834_v22, %v2105_v21  ;;  %v879_v27 = vpop.f32.mrb[27].mxu0  ;;  %v1087_v4 = vpop.f32.mrb[27].mxu1 }
 0x129   : > { %v1211_v20 = vmul.f32 %v2105_v21, %v879_v27  ;;  %v1263_v29 = vmul.f32 %v2105_v21, %v1087_v4  ;;  %v1206_v17 = vmul.f32 %v2105_v21, %v2214_v31 }
 0x12a   : > { %2639 = vst [vmem:[#allocation6_spill] sm:$0xff] %v2315_v24  ;;  %v1421_v54 = vmax.f32 %v2173_v63, %v2318_v58  ;;  %v1320_v22 = vadd.f32 %v2124_v30, %v1213_v37  ;;  %v2332_v48 = vadd.f32 %v2124_v30, %v1265_v3  ;;  %v1258_v63 = vmul.f32 %v2105_v21, %v2216_v32 }
 0x12b   : > { %v2341_v27 = vadd.f32 %v2124_v30, %v1211_v20  ;;  %v1370_v4 = vadd.f32 %v2124_v30, %v1263_v29  ;;  %v2357_v20 = vmul.f32 %v2229_v19, %v2105_v21 }
 0x12c   : > { %v1395_v58 = vmax.f32 %v2131_v35, %v1320_v22  ;;  %v1422_v28 = vmax.f32 %v2134_v36, %v2332_v48  ;;  %v2363_v35 = vadd.f32 %v2124_v30, %v1260_v56  ;;  %v2367_v36 = vmul.f32 %v2231_v41, %v2105_v21 }
 0x12d   : > { %2640 = vst [vmem:[#allocation7_spill] sm:$0xff] %v2341_v27  ;;  %v1420_v31 = vmax.f32 %v2148_v46, %v1370_v4  ;;  %v1785_v3 = vpop.f32.mrb[28].mxu0  ;;  %v1837_v32 = vpop.f32.mrb[28].mxu1  ;;  %v1207_v22 = vmul.f32 %v2105_v21, %v2241_v52 }
 0x12e   : > { %v1216_v48 = vmul.f32 %v1785_v3, %v2105_v21  ;;  %v1268_v38 = vmul.f32 %v1837_v32, %v2105_v21  ;;  %v892_v19 = vpop.f32.mrb[29].mxu0  ;;  %v1100_v29 = vpop.f32.mrb[29].mxu1 }
 0x12f   : > { %v1445_v37 = vmax.f32 %v1395_v58, %v1420_v31  ;;  %v1214_v46 = vmul.f32 %v2105_v21, %v892_v19  ;;  %v1266_v4 = vmul.f32 %v2105_v21, %v1100_v29  ;;  %v1786_v56 = vpop.f32.mrb[30].mxu0  ;;  %v1838_v24 = vpop.f32.mrb[30].mxu1 }
 0x130   : > { %v1323_v41 = vadd.f32 %v2124_v30, %v1216_v48  ;;  %v2382_v3 = vadd.f32 %v2124_v30, %v1268_v38  ;;  %v1217_v52 = vmul.f32 %v1786_v56, %v2105_v21  ;;  %v1269_v58 = vmul.f32 %v1838_v24, %v2105_v21  ;;  %v895_v31 = vpop.f32.mrb[31].mxu0  ;;  %v1103_v32 = vpop.f32.mrb[31].mxu1 }
 0x131   : > { %v1470_v19 = vmax.f32 %v1445_v37, 0.0  ;;  %v1321_v29 = vadd.f32 %v2124_v30, %v1214_v46  ;;  %v1373_v61 = vadd.f32 %v2124_v30, %v1266_v4  ;;  %v1215_v27 = vmul.f32 %v2105_v21, %v895_v31 }
 0x132   : > { %v1398_v39 = vmax.f32 %v2195_v9, %v1323_v41  ;;  %v1425_v48 = vmax.f32 %v2201_v11, %v2382_v3  ;;  %v1324_v38 = vadd.f32 %v2124_v30, %v1217_v52  ;;  %v2394_v56 = vadd.f32 %v2124_v30, %v1269_v58 }
 0x133   : > { %1496 = vst.msk [vmem:[%s2378_s12 + $0x10] sm:$0xff] %vm1493_vm3, %v1470_v19  ;;  %v1396_v24 = vmax.f32 %v2145_v45, %v1321_v29  ;;  %v1423_v37 = vmax.f32 %v2151_v47, %v1373_v61  ;;  %v1322_v46 = vadd.f32 %v2124_v30, %v1215_v27  ;;  %v1267_v4 = vmul.f32 %v2105_v21, %v1103_v32 }
 0x134   : > { %v2403_v9 = vadd.f32 %v2124_v30, %v1206_v17  ;;  %v2406_v11 = vadd.f32 %v2124_v30, %v1258_v63  ;;  %v1399_v41 = vmax.f32 %v2170_v62, %v1324_v38  ;;  %v1426_v3 = vmax.f32 %v2177_v1, %v2394_v56 }
 0x135   : > { %v1446_v52 = vmax.f32 %v1396_v24, %v1421_v54  ;;  %v1448_v58 = vmax.f32 %v1398_v39, %v1423_v37  ;;  %v1397_v45 = vmax.f32 %v2183_v5, %v1322_v46  ;;  %v1374_v47 = vadd.f32 %v2124_v30, %v1267_v4  ;;  %v1789_v61 = vpop.f32.mrb[32].mxu0  ;;  %v1841_v27 = vpop.f32.mrb[32].mxu1 }
 0x136   : > { %v2414_v31 = vadd.f32 %v2124_v30, %v1207_v22  ;;  %v1259_v17 = vmul.f32 %v2105_v21, %v2243_v53  ;;  %v1220_v63 = vmul.f32 %v1789_v61, %v2105_v21  ;;  %v1272_v62 = vmul.f32 %v1841_v27, %v2105_v21  ;;  %v908_v54 = vpop.f32.mrb[33].mxu0  ;;  %v1116_v39 = vpop.f32.mrb[33].mxu1 }
 0x137   : > { %v1471_v32 = vmax.f32 %v1446_v52, 0.0  ;;  %v1473_v5 = vmax.f32 %v1448_v58, 0.0  ;;  %v1447_v19 = vmax.f32 %v1397_v45, %v1422_v28  ;;  %v1424_v29 = vmax.f32 %v2189_v7, %v1374_v47  ;;  %v1790_v38 = vpop.f32.mrb[34].mxu0  ;;  %v1842_v24 = vpop.f32.mrb[34].mxu1 }
 0x138   : > { %v1327_v22 = vadd.f32 %v2124_v30, %v1220_v63  ;;  %v2423_v53 = vadd.f32 %v2124_v30, %v1272_v62  ;;  %v1218_v37 = vmul.f32 %v2105_v21, %v908_v54  ;;  %v1270_v46 = vmul.f32 %v2105_v21, %v1116_v39  ;;  %v911_v4 = vpop.f32.mrb[35].mxu0  ;;  %v1119_v61 = vpop.f32.mrb[35].mxu1 }
 0x139   : > { %1497 = vst.msk [vmem:[%s2378_s12 + $0x18] sm:$0xff] %vm1493_vm3, %v1471_v32  ;;  %1499 = vst.msk [vmem:[%s2378_s12 + $0x28] sm:$0xff] %vm1493_vm3, %v1473_v5  ;;  %v1472_v28 = vmax.f32 %v1447_v19, 0.0  ;;  %v1449_v7 = vmax.f32 %v1399_v41, %v1424_v29  ;;  %v1221_v52 = vmul.f32 %v1790_v38, %v2105_v21  ;;  %v1273_v58 = vmul.f32 %v1842_v24, %v2105_v21 }
 0x13a   : > { %v1402_v45 = vmax.f32 %v2252_v57, %v1327_v22  ;;  %v1429_v47 = vmax.f32 %v2258_v25, %v2423_v53  ;;  %v1325_v27 = vadd.f32 %v2124_v30, %v1218_v37  ;;  %v1377_v63 = vadd.f32 %v2124_v30, %v1270_v46 }
 0x13b   : > { %1498 = vst.msk [vmem:[%s2378_s12 + $0x20] sm:$0xff] %vm1493_vm3, %v1472_v28  ;;  %v1474_v62 = vmax.f32 %v1449_v7, 0.0  ;;  %v1328_v54 = vadd.f32 %v2124_v30, %v1221_v52  ;;  %v2442_v41 = vadd.f32 %v2124_v30, %v1273_v58  ;;  %v1219_v39 = vmul.f32 %v2105_v21, %v911_v4 }
 0x13c   : > { %v2446_v32 = vadd.f32 %v2124_v30, %v1259_v17  ;;  %v1400_v57 = vmax.f32 %v2186_v6, %v1325_v27  ;;  %v1427_v25 = vmax.f32 %v2192_v8, %v1377_v63  ;;  %v1271_v5 = vmul.f32 %v2105_v21, %v1119_v61 }
 0x13d   : > { %v2453_v19 = vmul.f32 %v2105_v21, %v2299_v18  ;;  %1500 = vst.msk [vmem:[%s2378_s12 + $0x30] sm:$0xff] %vm1493_vm3, %v1474_v62  ;;  %v1403_v29 = vmax.f32 %v2198_v10, %v1328_v54  ;;  %v1430_v38 = vmax.f32 %v2204_v12, %v2442_v41  ;;  %v1326_v17 = vadd.f32 %v2124_v30, %v1219_v39  ;;  %v1793_v24 = vpop.f32.mrb[36].mxu0  ;;  %v1845_v22 = vpop.f32.mrb[36].mxu1 }
 0x13e   : > { %v1450_v6 = vmax.f32 %v1400_v57, %v1425_v48  ;;  %v1452_v53 = vmax.f32 %v1402_v45, %v1427_v25  ;;  %v1378_v8 = vadd.f32 %v2124_v30, %v1271_v5  ;;  %v1224_v37 = vmul.f32 %v1793_v24, %v2105_v21  ;;  %v924_v46 = vpop.f32.mrb[37].mxu0  ;;  %v1132_v18 = vpop.f32.mrb[37].mxu1 }
 0x13f   : > { %v1401_v4 = vmax.f32 %v2207_v15, %v1326_v17  ;;  %v1276_v10 = vmul.f32 %v1845_v22, %v2105_v21  ;;  %v1222_v61 = vmul.f32 %v2105_v21, %v924_v46  ;;  %v1274_v28 = vmul.f32 %v2105_v21, %v1132_v18  ;;  %v1794_v7 = vpop.f32.mrb[38].mxu0  ;;  %v1846_v52 = vpop.f32.mrb[38].mxu1 }
 0x140   : > { %v1475_v48 = vmax.f32 %v1450_v6, 0.0  ;;  %v1477_v58 = vmax.f32 %v1452_v53, 0.0  ;;  %v1428_v45 = vmax.f32 %v2222_v34, %v1378_v8  ;;  %v1331_v27 = vadd.f32 %v2124_v30, %v1224_v37  ;;  %v927_v63 = vpop.f32.mrb[39].mxu0  ;;  %v1135_v62 = vpop.f32.mrb[39].mxu1 }
 0x141   : > { %v1451_v15 = vmax.f32 %v1401_v4, %v1426_v3  ;;  %v2473_v54 = vadd.f32 %v2124_v30, %v1276_v10  ;;  %v1329_v39 = vadd.f32 %v2124_v30, %v1222_v61  ;;  %v1381_v57 = vadd.f32 %v2124_v30, %v1274_v28 }
 0x142   : > { %1501 = vst.msk [vmem:[%s2378_s12 + $0x38] sm:$0xff] %vm1493_vm3, %v1475_v48  ;;  %1503 = vst.msk [vmem:[%s2378_s12 + $0x48] sm:$0xff] %vm1493_vm3, %v1477_v58  ;;  %v1453_v34 = vmax.f32 %v1403_v29, %v1428_v45  ;;  %v1406_v25 = vmax.f32 %v2281_v2, %v1331_v27  ;;  %v1225_v5 = vmul.f32 %v1794_v7, %v2105_v21 }
 0x143   : > { %v1277_v1 = vmul.f32 %v1846_v52, %v2105_v21  ;;  %v1476_v56 = vmax.f32 %v1451_v15, 0.0  ;;  %v1433_v3 = vmax.f32 %v2287_v44, %v2473_v54  ;;  %v1404_v17 = vmax.f32 %v2219_v33, %v1329_v39 }
 0x144   : > { %v1431_v24 = vmax.f32 %v2225_v40, %v1381_v57  ;;  %v1478_v22 = vmax.f32 %v1453_v34, 0.0  ;;  %v1332_v6 = vadd.f32 %v2124_v30, %v1225_v5  ;;  %v1223_v2 = vmul.f32 %v2105_v21, %v927_v63 }
 0x145   : > { %v2490_v29 = vadd.f32 %v2124_v30, %v1277_v1  ;;  %v2495_v53 = vmul.f32 %v2105_v21, %v2301_v42  ;;  %1502 = vst.msk [vmem:[%s2378_s12 + $0x40] sm:$0xff] %vm1493_vm3, %v1476_v56  ;;  %v1454_v8 = vmax.f32 %v1404_v17, %v1429_v47  ;;  %v1275_v33 = vmul.f32 %v2105_v21, %v1135_v62  ;;  %v1797_v37 = vpop.f32.mrb[40].mxu0  ;;  %v1849_v40 = vpop.f32.mrb[40].mxu1 }
 0x146   : > { %v1456_v44 = vmax.f32 %v1406_v25, %v1431_v24  ;;  %1504 = vst.msk [vmem:[%s2378_s12 + $0x50] sm:$0xff] %vm1493_vm3, %v1478_v22  ;;  %v1407_v46 = vmax.f32 %v2255_v23, %v1332_v6  ;;  %v1330_v4 = vadd.f32 %v2124_v30, %v1223_v2  ;;  %v1228_v42 = vmul.f32 %v1797_v37, %v2105_v21  ;;  %v940_v10 = vpop.f32.mrb[41].mxu0  ;;  %v1148_v47 = vpop.f32.mrb[41].mxu1 }
 0x147   : > { %v1434_v18 = vmax.f32 %v2262_v26, %v2490_v29  ;;  %v1479_v61 = vmax.f32 %v1454_v8, 0.0  ;;  %v1382_v7 = vadd.f32 %v2124_v30, %v1275_v33  ;;  %v1280_v52 = vmul.f32 %v1849_v40, %v2105_v21  ;;  %v1798_v48 = vpop.f32.mrb[42].mxu0  ;;  %v1850_v58 = vpop.f32.mrb[42].mxu1 }
 0x148   : > { %v1481_v28 = vmax.f32 %v1456_v44, 0.0  ;;  %v1405_v23 = vmax.f32 %v2269_v59, %v1330_v4  ;;  %v1335_v45 = vadd.f32 %v2124_v30, %v1228_v42  ;;  %v1226_v27 = vmul.f32 %v2105_v21, %v940_v10  ;;  %v943_v62 = vpop.f32.mrb[43].mxu0  ;;  %v1151_v15 = vpop.f32.mrb[43].mxu1 }
 0x149   : > { %v1278_v63 = vmul.f32 %v2105_v21, %v1148_v47  ;;  %1505 = vst.msk [vmem:[%s2378_s12 + $0x58] sm:$0xff] %vm1493_vm3, %v1479_v61  ;;  %v1432_v54 = vmax.f32 %v2275_v0, %v1382_v7  ;;  %v1387_v39 = vadd.f32 %v2124_v30, %v1280_v52  ;;  %v1229_v57 = vmul.f32 %v1798_v48, %v2105_v21 }
 0x14a   : > { %1507 = vst.msk [vmem:[%s2378_s12 + $0x68] sm:$0xff] %vm1493_vm3, %v1481_v28  ;;  %v1281_v59 = vmul.f32 %v1850_v58, %v2105_v21  ;;  %v1455_v34 = vmax.f32 %v1405_v23, %v1430_v38  ;;  %v1410_v25 = vmax.f32 %v2335_v13, %v1335_v45  ;;  %v1333_v5 = vadd.f32 %v2124_v30, %v1226_v27 }
 0x14b   : > { %v1385_v1 = vadd.f32 %v2124_v30, %v1278_v63  ;;  %v1457_v56 = vmax.f32 %v1407_v46, %v1432_v54  ;;  %v1437_v0 = vmax.f32 %v2338_v14, %v1387_v39  ;;  %v1336_v17 = vadd.f32 %v2124_v30, %v1229_v57  ;;  %v2641_v57 = vld [vmem:[#allocation4_spill] sm:$0xff] }
 0x14c   : > { %v2530_v24 = vadd.f32 %v2124_v30, %v1281_v59  ;;  %v1480_v22 = vmax.f32 %v1455_v34, 0.0  ;;  %v1408_v6 = vmax.f32 %v2272_v60, %v1333_v5  ;;  %v1227_v13 = vmul.f32 %v2105_v21, %v943_v62  ;;  %v2642_v34 = vld [vmem:[#allocation5_spill] sm:$0xff] }
 0x14d   : > { %v1435_v12 = vmax.f32 %v2278_v43, %v1385_v1  ;;  %v1482_v41 = vmax.f32 %v1457_v56, 0.0  ;;  %v1411_v38 = vmax.f32 %v2284_v49, %v1336_v17  ;;  %v1279_v14 = vmul.f32 %v2105_v21, %v1151_v15  ;;  %v1801_v8 = vpop.f32.mrb[44].mxu0  ;;  %v1853_v44 = vpop.f32.mrb[44].mxu1 }
 0x14e   : > { %v1438_v2 = vmax.f32 %v2290_v50, %v2530_v24  ;;  %1506 = vst.msk [vmem:[%s2378_s12 + $0x60] sm:$0xff] %vm1493_vm3, %v1480_v22  ;;  %v1458_v33 = vmax.f32 %v1408_v6, %v1433_v3  ;;  %v1334_v60 = vadd.f32 %v2124_v30, %v1227_v13  ;;  %v1232_v43 = vmul.f32 %v1801_v8, %v2105_v21  ;;  %v956_v40 = vpop.f32.mrb[45].mxu0  ;;  %v1164_v46 = vpop.f32.mrb[45].mxu1 }
 0x14f   : > { %v1460_v37 = vmax.f32 %v1410_v25, %v1435_v12  ;;  %1508 = vst.msk [vmem:[%s2378_s12 + $0x70] sm:$0xff] %vm1493_vm3, %v1482_v41  ;;  %v1386_v49 = vadd.f32 %v2124_v30, %v1279_v14  ;;  %v1284_v4 = vmul.f32 %v1853_v44, %v2105_v21  ;;  %v1230_v42 = vmul.f32 %v2105_v21, %v956_v40  ;;  %v1802_v3 = vpop.f32.mrb[46].mxu0  ;;  %v1854_v47 = vpop.f32.mrb[46].mxu1 }
 0x150   : > { %v1282_v10 = vmul.f32 %v2105_v21, %v1164_v46  ;;  %v1483_v61 = vmax.f32 %v1458_v33, 0.0  ;;  %v1409_v7 = vmax.f32 %v2293_v16, %v1334_v60  ;;  %v1339_v52 = vadd.f32 %v2124_v30, %v1232_v43  ;;  %v959_v48 = vpop.f32.mrb[47].mxu0  ;;  %v1167_v58 = vpop.f32.mrb[47].mxu1 }
 0x151   : > { %v1485_v28 = vmax.f32 %v1460_v37, 0.0  ;;  %v1436_v23 = vmax.f32 %v2307_v51, %v1386_v49  ;;  %v1391_v45 = vadd.f32 %v2124_v30, %v1284_v4  ;;  %v1337_v27 = vadd.f32 %v2124_v30, %v1230_v42 }
 0x152   : > { %v1389_v63 = vadd.f32 %v2124_v30, %v1282_v10  ;;  %1509 = vst.msk [vmem:[%s2378_s12 + $0x78] sm:$0xff] %vm1493_vm3, %v1483_v61  ;;  %v1459_v16 = vmax.f32 %v1409_v7, %v1434_v18  ;;  %v1414_v62 = vmax.f32 %v2414_v31, %v1339_v52  ;;  %v1233_v15 = vmul.f32 %v1802_v3, %v2105_v21  ;;  %v2646_v52 = vld [vmem:[#allocation3_spill] sm:$0xff] }
 0x153   : > { %1511 = vst.msk [vmem:[%s2378_s12 + $0x88] sm:$0xff] %vm1493_vm3, %v1485_v28  ;;  %v1285_v51 = vmul.f32 %v1854_v47, %v2105_v21  ;;  %v1461_v54 = vmax.f32 %v1411_v38, %v1436_v23  ;;  %v1441_v39 = vmax.f32 %v2446_v32, %v1391_v45  ;;  %v1412_v59 = vmax.f32 %v2641_v57, %v1337_v27  ;;  %v2643_v47 = vld [vmem:[#allocation2_spill] sm:$0xff] }
 0x154   : > { %v1439_v25 = vmax.f32 %v2642_v34, %v1389_v63  ;;  %v1484_v5 = vmax.f32 %v1459_v16, 0.0  ;;  %v1340_v1 = vadd.f32 %v2124_v30, %v1233_v15  ;;  %v1231_v31 = vmul.f32 %v2105_v21, %v959_v48  ;;  %v2647_v48 = vld [vmem:[#allocation6_spill] sm:$0xff] }
 0x155   : > { %v1392_v26 = vadd.f32 %v2124_v30, %v1285_v51  ;;  %v1486_v29 = vmax.f32 %v1461_v54, 0.0  ;;  %v1462_v18 = vmax.f32 %v1412_v59, %v1437_v0  ;;  %v1283_v17 = vmul.f32 %v2105_v21, %v1167_v58  ;;  %v1805_v22 = vpop.f32.mrb[48].mxu0 }
 0x156   : > { %v1464_v56 = vmax.f32 %v1414_v62, %v1439_v25  ;;  %1510 = vst.msk [vmem:[%s2378_s12 + $0x80] sm:$0xff] %vm1493_vm3, %v1484_v5  ;;  %v1415_v32 = vmax.f32 %v2353_v55, %v1340_v1  ;;  %v1338_v12 = vadd.f32 %v2124_v30, %v1231_v31  ;;  %v1236_v13 = vmul.f32 %v1805_v22, %v2105_v21  ;;  %v972_v41 = vpop.f32.mrb[49].mxu0 }
 0x157   : > { %v1442_v6 = vmax.f32 %v2363_v35, %v1392_v26  ;;  %1512 = vst.msk [vmem:[%s2378_s12 + $0x90] sm:$0xff] %vm1493_vm3, %v1486_v29  ;;  %v1487_v0 = vmax.f32 %v1462_v18, 0.0  ;;  %v1390_v14 = vadd.f32 %v2124_v30, %v1283_v17  ;;  %v1234_v8 = vmul.f32 %v2105_v21, %v972_v41  ;;  %v1806_v44 = vpop.f32.mrb[50].mxu0 }
 0x158   : > { %v1489_v38 = vmax.f32 %v1464_v56, 0.0  ;;  %v1368_v55 = vadd.f32 %v2124_v30, %v2367_v36  ;;  %v1413_v35 = vmax.f32 %v2403_v9, %v1338_v12  ;;  %v1343_v33 = vadd.f32 %v2124_v30, %v1236_v13  ;;  %v975_v60 = vpop.f32.mrb[51].mxu0 }
 0x159   : > { %v1237_v37 = vmul.f32 %v1806_v44, %v2105_v21  ;;  %v1316_v43 = vadd.f32 %v2124_v30, %v2357_v20  ;;  %1513 = vst.msk [vmem:[%s2378_s12 + $0x98] sm:$0xff] %vm1493_vm3, %v1487_v0  ;;  %v1440_v40 = vmax.f32 %v2406_v11, %v1390_v14  ;;  %v1341_v46 = vadd.f32 %v2124_v30, %v1234_v8 }
 0x15a   : > { %1515 = vst.msk [vmem:[%s2378_s12 + $0xa8] sm:$0xff] %vm1493_vm3, %v1489_v38  ;;  %v1235_v36 = vmul.f32 %v2105_v21, %v975_v60  ;;  %v1369_v9 = vadd.f32 %v2124_v30, %v2495_v53  ;;  %v1463_v49 = vmax.f32 %v1413_v35, %v1438_v2  ;;  %v1418_v20 = vmax.f32 %v1343_v33, %v1368_v55  ;;  %v2644_v53 = vld [vmem:[#allocation7_spill] sm:$0xff] }
 0x15b   : > { %v1344_v4 = vadd.f32 %v2124_v30, %v1237_v37  ;;  %v1317_v42 = vadd.f32 %v2124_v30, %v2453_v19  ;;  %v1465_v11 = vmax.f32 %v1415_v32, %v1440_v40  ;;  %v1416_v10 = vmax.f32 %v1316_v43, %v1341_v46 }
 0x15c   : > { %v1342_v21 = vadd.f32 %v2124_v30, %v1235_v36  ;;  %v1488_v3 = vmax.f32 %v1463_v49, 0.0  ;;  %v2645_v61 = vmax.f32 %v2643_v47, %v2644_v53  ;;  %v2648_v58 = vmax.f32 %v2646_v52, %v2647_v48 }
 0x15d   : > { %v1419_v24 = vmax.f32 %v1344_v4, %v1369_v9  ;;  %v1490_v2 = vmax.f32 %v1465_v11, 0.0  ;;  %v1466_v28 = vmax.f32 %v1416_v10, %v1441_v39 }
 0x15e   : > { %v1443_v50 = vmax.f32 %v2645_v61, %v1418_v20  ;;  %v1417_v7 = vmax.f32 %v1317_v42, %v1342_v21  ;;  %1514 = vst.msk [vmem:[%s2378_s12 + $0xa0] sm:$0xff] %vm1493_vm3, %v1488_v3 }
 0x15f   : > { %v1444_v23 = vmax.f32 %v2648_v58, %v1419_v24  ;;  %1516 = vst.msk [vmem:[%s2378_s12 + $0xb0] sm:$0xff] %vm1493_vm3, %v1490_v2  ;;  %v1491_v30 = vmax.f32 %v1466_v28, 0.0 }
 0x160   : > { %v1468_v19 = vmax.f32 %v1443_v50, 0.0  ;;  %v1467_v45 = vmax.f32 %v1417_v7, %v1442_v6 }
 0x161   : > { %v1469_v27 = vmax.f32 %v1444_v23, 0.0  ;;  %1517 = vst.msk [vmem:[%s2378_s12 + $0xb8] sm:$0xff] %vm1493_vm3, %v1491_v30 }
 0x162   : > { %1494 = vst.msk [vmem:[%s2378_s12] sm:$0xff] %vm1493_vm3, %v1468_v19  ;;  %v1492_v63 = vmax.f32 %v1467_v45, 0.0 }
 0x163   : > { %1495 = vst.msk [vmem:[%s2378_s12 + $0x8] sm:$0xff] %vm1493_vm3, %v1469_v27 }
 0x164   : > { %1518 = vst.msk [vmem:[%s2378_s12 + $0xc0] sm:$0xff] %vm1493_vm3, %v1492_v63 }
 0x165 PF: > { %s14_s15 = sadd.s32 1, %s1937_s15  }
 0x166   : > { %p11_p4 = scmp.ge.s32.totalorder %s14_s15, 4  }
 0x168   :  { %13 = sbr.rel (!%p11_p4) target bundleno = 1 (0x1), region = 66 }

// kernel: feature_extractor_digits.4
= control target key start
LH: loop header
LB: loop body
LE: loop exit
PB: predicated region body
PF: predicated region fallthrough
CT: control target
= control target key end

     0   :  { %s3403_s15 = smov 0   ;;  %s3978_s0 = inlined_call_operand.vmem [shape: bf16[2,128,1600], index: 0, kind: input, shape index: {}]   ;;  %s3979_s1 = inlined_call_operand.vmem [shape: bf16[1600,64], index: 1, kind: input, shape index: {}]   ;;  %s3980_s2 = inlined_call_operand.vmem [shape: f32[1,64], index: 2, kind: input, shape index: {}]   ;;  %s3981_s3 = inlined_call_operand.vmem [shape: f32[1,64], index: 3, kind: input, shape index: {}]   ;;  %s3982_s4 = inlined_call_operand.vmem [shape: f32[2,32,64], index: 4, kind: output, shape index: {}]  }
   0x1 LB: > { %s2456_s16 = sadd.s32 4294967295, %s3376_s15   ;;  %p2460_p0 = scmp.ge.s32.totalorder %s3376_s15, 1  ;;  %s3376_s15 = sphi %s3403_s15, %s14_s15  }
   0x2   : > { %p162_p1 = scmp.lt.s32.totalorder %s3376_s15, 3 }
   0x4   : > { %p163_p2 = pnand %p2460_p0, %p162_p1 }
   0x5   : > { %v3118_v0 = vld [vmem:[%s3979_s1 + $0x40] sm:$0xff] (!%p163_p2)   ;;  %v3122_v4 = vld [vmem:[%s3979_s1 + $0x48] sm:$0xff] (!%p163_p2)   ;;  %v3126_v8 = vld [vmem:[%s3979_s1 + $0x50] sm:$0xff] (!%p163_p2)   ;;  %p188_p3 = scmp.lt.s32.totalorder (!%p163_p2), %s2456_s16, 1  ;;  %vm1631_vm0 = vcmask (!%p163_p2), 523264  }
   0x6   : > { %166 = sbr.rel (%p163_p2) target bundleno = 468 (0x1d4), region = 36  ;;  %v3119_v1 = vld [vmem:[%s3979_s1 + $0xc0] sm:$0xff] (!%p163_p2)   ;;  %2681 = vmatprep.subr.bf16.mxu0 (!%p163_p2), %v3118_v0  ;;  %v3123_v5 = vld [vmem:[%s3979_s1 + $0xc8] sm:$0xff] (!%p163_p2)   ;;  %v3127_v9 = vld [vmem:[%s3979_s1 + $0xd0] sm:$0xff] (!%p163_p2)  }
   0x7   : > { %v3120_v2 = vld [vmem:[%s3979_s1] sm:$0xff] (!%p163_p2)   ;;  %2745 = vmatprep.subr.bf16.mxu1 (!%p163_p2), %v3119_v1  ;;  %v3124_v6 = vld [vmem:[%s3979_s1 + $0x8] sm:$0xff] (!%p163_p2)   ;;  %v3128_v10 = vld [vmem:[%s3979_s1 + $0x10] sm:$0xff] (!%p163_p2)  }
   0x8   : > { %v3121_v3 = vld [vmem:[%s3979_s1 + $0x80] sm:$0xff] (!%p163_p2)   ;;  %2682 = vmatpush3.bf16.msra.mxu0 (!%p163_p2), %v3120_v2  ;;  %v3125_v7 = vld [vmem:[%s3979_s1 + $0x88] sm:$0xff] (!%p163_p2)   ;;  %v3129_v11 = vld [vmem:[%s3979_s1 + $0x90] sm:$0xff] (!%p163_p2)  }
   0x9   : > { %2746 = vmatpush3.bf16.msra.mxu1 (!%p163_p2), %v3121_v3  ;;  %2683 = vmatprep.subr.bf16.mxu0 (!%p163_p2), %v3122_v4  ;;  %v3130_v12 = vld [vmem:[%s3979_s1 + $0x58] sm:$0xff] (!%p163_p2)   ;;  %v3134_v16 = vld [vmem:[%s3979_s1 + $0x60] sm:$0xff] (!%p163_p2)   ;;  %v3138_v20 = vld [vmem:[%s3979_s1 + $0x68] sm:$0xff] (!%p163_p2)  }
   0xa   : > { %2747 = vmatprep.subr.bf16.mxu1 (!%p163_p2), %v3123_v5  ;;  %v3131_v13 = vld [vmem:[%s3979_s1 + $0xd8] sm:$0xff] (!%p163_p2)   ;;  %v3135_v17 = vld [vmem:[%s3979_s1 + $0xe0] sm:$0xff] (!%p163_p2)   ;;  %v3139_v21 = vld [vmem:[%s3979_s1 + $0xe8] sm:$0xff] (!%p163_p2)  }
   0xb   : > { %v3132_v14 = vld [vmem:[%s3979_s1 + $0x18] sm:$0xff] (!%p163_p2)   ;;  %v3136_v18 = vld [vmem:[%s3979_s1 + $0x20] sm:$0xff] (!%p163_p2)   ;;  %v3140_v22 = vld [vmem:[%s3979_s1 + $0x28] sm:$0xff] (!%p163_p2)  }
   0xc   : > { %2684 = vmatpush3.bf16.msra.mxu0 (!%p163_p2), %v3124_v6  ;;  %v3133_v15 = vld [vmem:[%s3979_s1 + $0x98] sm:$0xff] (!%p163_p2)   ;;  %v3137_v19 = vld [vmem:[%s3979_s1 + $0xa0] sm:$0xff] (!%p163_p2)   ;;  %v3141_v23 = vld [vmem:[%s3979_s1 + $0xa8] sm:$0xff] (!%p163_p2)  }
   0xd   : > { %2748 = vmatpush3.bf16.msra.mxu1 %v3125_v7  ;;  %2685 = vmatprep.subr.bf16.mxu0 %v3126_v8  ;;  %s3984_s16 = smov (!%p188_p3, %s2456_s16), 1  ;;  %v3142_v24 = vld [vmem:[%s3979_s1 + $0x70] sm:$0xff]   ;;  %v3146_v28 = vld [vmem:[%s3979_s1 + $0x78] sm:$0xff]   ;;  %v3156_v36 = vld [vmem:[%s3979_s1 + $0x140] sm:$0xff]  }
   0xe   : > { %2749 = vmatprep.subr.bf16.mxu1 %v3127_v9  ;;  %v3143_v25 = vld [vmem:[%s3979_s1 + $0xf0] sm:$0xff]   ;;  %s3109_s21 = smul.u32 832, %s3984_s16  ;;  %v3147_v29 = vld [vmem:[%s3979_s1 + $0xf8] sm:$0xff]   ;;  %v3157_v37 = vld [vmem:[%s3979_s1 + $0x1c0] sm:$0xff]   ;;  %s2680_s12 = sshll.u32 %s3984_s16, 5 }
   0xf   : > { %v3144_v26 = vld [vmem:[%s3979_s1 + $0x30] sm:$0xff]   ;;  %v3148_v30 = vld [vmem:[%s3979_s1 + $0x38] sm:$0xff]   ;;  %v3158_v38 = vld [vmem:[%s3979_s1 + $0x100] sm:$0xff]   ;;  %s197_s17 = scalar_lea.vmem %s3982_s4, %s2680_s12 }
  0x10   : > { %2686 = vmatpush3.bf16.msra.mxu0 %v3128_v10  ;;  %v3145_v27 = vld [vmem:[%s3979_s1 + $0xb0] sm:$0xff]   ;;  %s3511_s6 = scalar_lea.vmem %s3978_s0, %s3109_s21  ;;  %v3149_v31 = vld [vmem:[%s3979_s1 + $0xb8] sm:$0xff]   ;;  %v3159_v39 = vld [vmem:[%s3979_s1 + $0x180] sm:$0xff]  }
  0x11   : > { %2750 = vmatpush3.bf16.msra.mxu1 %v3129_v11  ;;  %2687 = vmatprep.subr.bf16.mxu0 %v3130_v12  ;;  %v3150_v32 = vld [vmem:[%s3511_s6] ss:$52 sps:$4 sm:$0xff]   ;;  %v3152_v33 = vld [vmem:[%s3511_s6 + $0x4] ss:$52 sps:$4 sm:$0xff]   ;;  %v3153_v34 = vld [vmem:[%s3511_s6 + $0x8] ss:$52 sps:$4 sm:$0xff]  }
  0x12   : > { %2751 = vmatprep.subr.bf16.mxu1 %v3131_v13  ;;  %v3155_v35 = vld [vmem:[%s3511_s6 + $0xc] ss:$52 sps:$4 sm:$0xff]   ;;  %1688 = vmatprep.mubr.bf16.mxu0 %v3152_v33  ;;  %v3162_v41 = vld [vmem:[%s3511_s6 + $0x74] ss:$52 sps:$4 sm:$0xff]   ;;  %v3165_v43 = vld [vmem:[%s3511_s6 + $0x70] ss:$52 sps:$4 sm:$0xff]  }
  0x13   : > { %1785 = vmatprep.mubr.bf16.mxu1 %v3155_v35  ;;  %v3160_v40 = vld [vmem:[%s3511_s6 + $0x6c] ss:$52 sps:$4 sm:$0xff]   ;;  %v3164_v42 = vld [vmem:[%s3511_s6 + $0x68] ss:$52 sps:$4 sm:$0xff]   ;;  %v3174_v50 = vld [vmem:[%s3511_s6 + $0xd0] ss:$52 sps:$4 sm:$0xff]  }
  0x14   : > { %2688 = vmatpush3.bf16.msra.mxu0 %v3132_v14  ;;  %v3166_v44 = vld [vmem:[%s3979_s1 + $0x148] sm:$0xff]   ;;  %v3172_v49 = vld [vmem:[%s3511_s6 + $0xdc] ss:$52 sps:$4 sm:$0xff]   ;;  %v3182_v57 = vld [vmem:[%s3511_s6 + $0x144] ss:$52 sps:$4 sm:$0xff]  }
  0x15   : > { %2752 = vmatpush3.bf16.msra.mxu1 %v3133_v15  ;;  %2689 = vmatprep.subr.bf16.mxu0 %v3134_v16  ;;  %v3167_v45 = vld [vmem:[%s3979_s1 + $0x1c8] sm:$0xff]   ;;  %v3176_v52 = vld [vmem:[%s3979_s1 + $0x150] sm:$0xff]   ;;  %v3186_v60 = vld [vmem:[%s3979_s1 + $0x158] sm:$0xff]  }
  0x16   : > { %2753 = vmatprep.subr.bf16.mxu1 %v3135_v17  ;;  %v3168_v46 = vld [vmem:[%s3979_s1 + $0x108] sm:$0xff]   ;;  %v3177_v53 = vld [vmem:[%s3979_s1 + $0x1d0] sm:$0xff]   ;;  %v3187_v61 = vld [vmem:[%s3979_s1 + $0x1d8] sm:$0xff]  }
  0x17   : > { %v3169_v47 = vld [vmem:[%s3979_s1 + $0x188] sm:$0xff]   ;;  %v3178_v54 = vld [vmem:[%s3979_s1 + $0x110] sm:$0xff]   ;;  %v3188_v62 = vld [vmem:[%s3979_s1 + $0x118] sm:$0xff]  }
  0x18   : > { %2690 = vmatpush3.bf16.msra.mxu0 %v3136_v18  ;;  %v3170_v48 = vld [vmem:[%s3511_s6 + $0xd4] ss:$52 sps:$4 sm:$0xff]   ;;  %v3175_v51 = vld [vmem:[%s3511_s6 + $0xd8] ss:$52 sps:$4 sm:$0xff]   ;;  %v3180_v56 = vld [vmem:[%s3511_s6 + $0x13c] ss:$52 sps:$4 sm:$0xff]  }
  0x19   : > { %2754 = vmatpush3.bf16.msra.mxu1 %v3137_v19  ;;  %2691 = vmatprep.subr.bf16.mxu0 %v3138_v20  ;;  %v3179_v55 = vld [vmem:[%s3979_s1 + $0x190] sm:$0xff]   ;;  %v3184_v58 = vld [vmem:[%s3511_s6 + $0x138] ss:$52 sps:$4 sm:$0xff]   ;;  %v3196_v3 = vld [vmem:[%s3979_s1 + $0x160] sm:$0xff]  }
  0x1a   : > { %2755 = vmatprep.subr.bf16.mxu1 %v3139_v21  ;;  %v3185_v59 = vld [vmem:[%s3511_s6 + $0x140] ss:$52 sps:$4 sm:$0xff]   ;;  %v3189_v63 = vld [vmem:[%s3979_s1 + $0x198] sm:$0xff]   ;;  %v3206_v10 = vld [vmem:[%s3979_s1 + $0x168] sm:$0xff]  }
  0x1b   : > { %v3190_v0 = vld [vmem:[%s3511_s6 + $0x1a4] ss:$52 sps:$4 sm:$0xff]   ;;  %v3192_v1 = vld [vmem:[%s3511_s6 + $0x1ac] ss:$52 sps:$4 sm:$0xff]   ;;  %v3195_v4 = vld [vmem:[%s3511_s6 + $0x1a8] ss:$52 sps:$4 sm:$0xff]  }
  0x1c   : > { %2692 = vmatpush3.bf16.msra.mxu0 %v3140_v22  ;;  %v3194_v2 = vld [vmem:[%s3511_s6 + $0x1a0] ss:$52 sps:$4 sm:$0xff]   ;;  %v3207_v11 = vld [vmem:[%s3979_s1 + $0x1e8] sm:$0xff]   ;;  %v3205_v15 = vld [vmem:[%s3511_s6 + $0x210] ss:$52 sps:$4 sm:$0xff]  }
  0x1d   : > { %2756 = vmatpush3.bf16.msra.mxu1 %v3141_v23  ;;  %2693 = vmatprep.subr.bf16.mxu0 %v3142_v24  ;;  %v3197_v5 = vld [vmem:[%s3979_s1 + $0x1e0] sm:$0xff]   ;;  %v3202_v9 = vld [vmem:[%s3511_s6 + $0x214] ss:$52 sps:$4 sm:$0xff]   ;;  %v3212_v17 = vld [vmem:[%s3511_s6 + $0x27c] ss:$52 sps:$4 sm:$0xff]  }
  0x1e   : > { %2757 = vmatprep.subr.bf16.mxu1 %v3143_v25  ;;  %v3198_v6 = vld [vmem:[%s3979_s1 + $0x120] sm:$0xff]   ;;  %v3204_v12 = vld [vmem:[%s3511_s6 + $0x208] ss:$52 sps:$4 sm:$0xff]   ;;  %v3216_v18 = vld [vmem:[%s3979_s1 + $0x170] sm:$0xff]  }
  0x1f   : > { %v3199_v7 = vld [vmem:[%s3979_s1 + $0x1a0] sm:$0xff]   ;;  %v3208_v13 = vld [vmem:[%s3979_s1 + $0x128] sm:$0xff]   ;;  %v3217_v19 = vld [vmem:[%s3979_s1 + $0x1f0] sm:$0xff]  }
  0x20   : > { %2694 = vmatpush3.bf16.msra.mxu0 %v3144_v26  ;;  %v3200_v8 = vld [vmem:[%s3511_s6 + $0x20c] ss:$52 sps:$4 sm:$0xff]   ;;  %v3210_v16 = vld [vmem:[%s3511_s6 + $0x274] ss:$52 sps:$4 sm:$0xff]   ;;  %v3214_v22 = vld [vmem:[%s3511_s6 + $0x270] ss:$52 sps:$4 sm:$0xff]  }
  0x21   : > { %2758 = vmatpush3.bf16.msra.mxu1 %v3145_v27  ;;  %2695 = vmatprep.subr.bf16.mxu0 %v3146_v28  ;;  %v3209_v14 = vld [vmem:[%s3979_s1 + $0x1a8] sm:$0xff]   ;;  %v3218_v20 = vld [vmem:[%s3979_s1 + $0x130] sm:$0xff]   ;;  %v3222_v25 = vld [vmem:[%s3511_s6 + $0x2e4] ss:$52 sps:$4 sm:$0xff]  }
  0x22   : > { %2759 = vmatprep.subr.bf16.mxu1 %v3147_v29  ;;  %v3219_v21 = vld [vmem:[%s3979_s1 + $0x1b0] sm:$0xff]   ;;  %v3215_v23 = vld [vmem:[%s3511_s6 + $0x278] ss:$52 sps:$4 sm:$0xff]   ;;  %v3236_v33 = vld [vmem:[%s3979_s1 + $0x240] sm:$0xff]  }
  0x23   : > { %v3220_v24 = vld [vmem:[%s3511_s6 + $0x2dc] ss:$52 sps:$4 sm:$0xff]  }
  0x24   : > { %2696 = vmatpush3.bf16.msra.mxu0 %v3148_v30  ;;  %v3226_v26 = vld [vmem:[%s3979_s1 + $0x178] sm:$0xff]  }
  0x25   : > { %2760 = vmatpush3.bf16.msra.mxu1 %v3149_v31  ;;  %2809 = vmatprep.subr.bf16.mxu0 %v3156_v36  ;;  %v3227_v27 = vld [vmem:[%s3979_s1 + $0x1f8] sm:$0xff]   ;;  %v3225_v31 = vld [vmem:[%s3511_s6 + $0x2e0] ss:$52 sps:$4 sm:$0xff]   ;;  %v3230_v36 = vld [vmem:[%s3511_s6 + $0x10] ss:$52 sps:$4 sm:$0xff]  }
  0x26   : > { %2873 = vmatprep.subr.bf16.mxu1 %v3157_v37  ;;  %v3228_v28 = vld [vmem:[%s3979_s1 + $0x138] sm:$0xff]  }
  0x27   : > { %1689 = vmatmul.mubr.bf16.vlgmr.msra.gmra.mrb[0].mxu0 %v3150_v32  ;;  %v3229_v29 = vld [vmem:[%s3979_s1 + $0x1b8] sm:$0xff]   ;;  %v3232_v32 = vld [vmem:[%s3511_s6 + $0x14] ss:$52 sps:$4 sm:$0xff]  }
  0x28   : > { %1786 = vmatmul.mubr.bf16.vlgmr.msra.gmra.mrb[0].mxu1 %v3153_v34  ;;  %2810 = vmatpush3.bf16.msra.mxu0 %v3158_v38  ;;  %v3224_v30 = vld [vmem:[%s3511_s6 + $0x2d8] ss:$52 sps:$4 sm:$0xff]   ;;  %v3237_v34 = vld [vmem:[%s3979_s1 + $0x2c0] sm:$0xff]   ;;  %v3235_v35 = vld [vmem:[%s3511_s6 + $0x1c] ss:$52 sps:$4 sm:$0xff]  }
  0x29   : > { %2874 = vmatpush3.bf16.msra.mxu1 %v3159_v39  ;;  %1696 = vmatprep.mubr.bf16.mxu0 %v3160_v40  ;;  %v3233_v37 = vld [vmem:[%s3511_s6 + $0x18] ss:$52 sps:$4 sm:$0xff]   ;;  %v3238_v38 = vld [vmem:[%s3979_s1 + $0x200] sm:$0xff]   ;;  %v3240_v40 = vld [vmem:[%s3511_s6 + $0x7c] ss:$52 sps:$4 sm:$0xff]  }
  0x2a   : > { %1793 = vmatprep.mubr.bf16.mxu1 %v3162_v41  ;;  %2811 = vmatprep.subr.bf16.mxu0 %v3166_v44  ;;  %v3239_v39 = vld [vmem:[%s3979_s1 + $0x280] sm:$0xff]   ;;  %v3248_v44 = vld [vmem:[%s3979_s1 + $0x208] sm:$0xff]  }
  0x2b   : > { %2875 = vmatprep.subr.bf16.mxu1 %v3167_v45  ;;  %v3242_v41 = vld [vmem:[%s3511_s6 + $0x84] ss:$52 sps:$4 sm:$0xff]   ;;  %v3249_v45 = vld [vmem:[%s3979_s1 + $0x288] sm:$0xff]  }
  0x2c   : > { %2812 = vmatpush3.bf16.msra.mxu0 %v3168_v46  ;;  %v3244_v46 = vld [vmem:[%s3511_s6 + $0x78] ss:$52 sps:$4 sm:$0xff]  }
  0x2d   : > { %2876 = vmatpush3.bf16.msra.mxu1 %v3169_v47  ;;  %2813 = vmatprep.subr.bf16.mxu0 %v3176_v52  ;;  %v3256_v47 = vld [vmem:[%s3979_s1 + $0x250] sm:$0xff]  }
  0x2e   : > { %2877 = vmatprep.subr.bf16.mxu1 %v3177_v53  ;;  %v3258_v52 = vld [vmem:[%s3979_s1 + $0x210] sm:$0xff]  }
  0x2f   : > { %1697 = vmatmul.mubr.bf16.gmra.mrb[4].mxu0 %v3164_v42  ;;  %v3246_v42 = vld [vmem:[%s3979_s1 + $0x248] sm:$0xff]   ;;  %v3259_v53 = vld [vmem:[%s3979_s1 + $0x290] sm:$0xff]  }
  0x30   : > { %1794 = vmatmul.mubr.bf16.gmra.mrb[4].mxu1 %v3165_v43  ;;  %1704 = vmatprep.mubr.bf16.mxu0 %v3170_v48  ;;  %v3247_v43 = vld [vmem:[%s3979_s1 + $0x2c8] sm:$0xff]   ;;  %v3245_v48 = vld [vmem:[%s3511_s6 + $0x80] ss:$52 sps:$4 sm:$0xff]  }
  0x31   : > { %1801 = vmatprep.mubr.bf16.mxu1 %v3172_v49  ;;  %2814 = vmatpush3.bf16.msra.mxu0 %v3178_v54  ;;  %v3257_v49 = vld [vmem:[%s3979_s1 + $0x2d0] sm:$0xff]   ;;  %v3266_v54 = vld [vmem:[%s3979_s1 + $0x258] sm:$0xff]  }
  0x32   : > { %2878 = vmatpush3.bf16.msra.mxu1 %v3179_v55  ;;  %2815 = vmatprep.subr.bf16.mxu0 %v3186_v60  ;;  %v3267_v55 = vld [vmem:[%s3979_s1 + $0x2d8] sm:$0xff]   ;;  %v3260_v60 = vld [vmem:[%s3511_s6 + $0x14c] ss:$52 sps:$4 sm:$0xff]  }
  0x33   : > { %2879 = vmatprep.subr.bf16.mxu1 %v3187_v61  ;;  %v3262_v61 = vld [vmem:[%s3511_s6 + $0x154] ss:$52 sps:$4 sm:$0xff]  }
  0x35   : > { %2816 = vmatpush3.bf16.msra.mxu0 %v3188_v62  ;;  %v3276_v62 = vld [vmem:[%s3979_s1 + $0x260] sm:$0xff]  }
  0x36   : > { %2880 = vmatpush3.bf16.msra.mxu1 %v3189_v63  ;;  %2817 = vmatprep.subr.bf16.mxu0 %v3196_v3  ;;  %v3277_v63 = vld [vmem:[%s3979_s1 + $0x2e0] sm:$0xff]  }
  0x37   : > { %1705 = vmatmul.mubr.bf16.gmra.mrb[8].mxu0 %v3174_v50  ;;  %2881 = vmatprep.subr.bf16.mxu1 %v3197_v5  ;;  %v3250_v50 = vld [vmem:[%s3511_s6 + $0xe4] ss:$52 sps:$4 sm:$0xff]   ;;  %v3272_v5 = vld [vmem:[%s3511_s6 + $0x1bc] ss:$52 sps:$4 sm:$0xff]  }
  0x38   : > { %1802 = vmatmul.mubr.bf16.gmra.mrb[8].mxu1 %v3175_v51  ;;  %1712 = vmatprep.mubr.bf16.mxu0 %v3180_v56  ;;  %v3252_v51 = vld [vmem:[%s3511_s6 + $0xec] ss:$52 sps:$4 sm:$0xff]   ;;  %v3265_v3 = vld [vmem:[%s3511_s6 + $0x150] ss:$52 sps:$4 sm:$0xff]  }
  0x39   : > { %1809 = vmatprep.mubr.bf16.mxu1 %v3182_v57  ;;  %2818 = vmatpush3.bf16.msra.mxu0 %v3198_v6  ;;  %v3254_v56 = vld [vmem:[%s3511_s6 + $0xe0] ss:$52 sps:$4 sm:$0xff]   ;;  %v3268_v57 = vld [vmem:[%s3979_s1 + $0x218] sm:$0xff]   ;;  %v3286_v6 = vld [vmem:[%s3979_s1 + $0x268] sm:$0xff]  }
  0x3a   : > { %2882 = vmatpush3.bf16.msra.mxu1 %v3199_v7  ;;  %2819 = vmatprep.subr.bf16.mxu0 %v3206_v10  ;;  %v3287_v7 = vld [vmem:[%s3979_s1 + $0x2e8] sm:$0xff]   ;;  %v3274_v10 = vld [vmem:[%s3511_s6 + $0x1b0] ss:$52 sps:$4 sm:$0xff]  }
  0x3b   : > { %2883 = vmatprep.subr.bf16.mxu1 %v3207_v11  ;;  %v3275_v11 = vld [vmem:[%s3511_s6 + $0x1b8] ss:$52 sps:$4 sm:$0xff]  }
  0x3d   : > { %2820 = vmatpush3.bf16.msra.mxu0 %v3208_v13  ;;  %v3282_v13 = vld [vmem:[%s3511_s6 + $0x224] ss:$52 sps:$4 sm:$0xff]  }
  0x3e   : > { %2884 = vmatpush3.bf16.msra.mxu1 %v3209_v14  ;;  %2821 = vmatprep.subr.bf16.mxu0 %v3216_v18  ;;  %v3296_v14 = vld [vmem:[%s3979_s1 + $0x270] sm:$0xff]   ;;  %v3284_v18 = vld [vmem:[%s3511_s6 + $0x218] ss:$52 sps:$4 sm:$0xff]  }
  0x3f   : > { %1713 = vmatmul.mubr.bf16.gmra.mrb[12].mxu0 %v3184_v58  ;;  %2885 = vmatprep.subr.bf16.mxu1 %v3217_v19  ;;  %v3269_v58 = vld [vmem:[%s3979_s1 + $0x298] sm:$0xff]   ;;  %v3285_v19 = vld [vmem:[%s3511_s6 + $0x220] ss:$52 sps:$4 sm:$0xff]  }
  0x40   : > { %1810 = vmatmul.mubr.bf16.gmra.mrb[12].mxu1 %v3185_v59  ;;  %1720 = vmatprep.mubr.bf16.mxu0 %v3190_v0  ;;  %v3255_v59 = vld [vmem:[%s3511_s6 + $0xe8] ss:$52 sps:$4 sm:$0xff]   ;;  %v3278_v0 = vld [vmem:[%s3979_s1 + $0x220] sm:$0xff]  }
  0x41   : > { %1817 = vmatprep.mubr.bf16.mxu1 %v3192_v1  ;;  %2822 = vmatpush3.bf16.msra.mxu0 %v3218_v20  ;;  %v3279_v1 = vld [vmem:[%s3979_s1 + $0x2a0] sm:$0xff]  }
  0x42   : > { %2886 = vmatpush3.bf16.msra.mxu1 %v3219_v21  ;;  %2823 = vmatprep.subr.bf16.mxu0 %v3226_v26  ;;  %v3290_v20 = vld [vmem:[%s3511_s6 + $0x284] ss:$52 sps:$4 sm:$0xff]  }
  0x43   : > { %2887 = vmatprep.subr.bf16.mxu1 %v3227_v27  ;;  %v3306_v21 = vld [vmem:[%s3979_s1 + $0x278] sm:$0xff]   ;;  %v3316_v26 = vld [vmem:[%s3979_s1 + $0x300] sm:$0xff]  }
  0x44   : > { %v3294_v27 = vld [vmem:[%s3511_s6 + $0x280] ss:$52 sps:$4 sm:$0xff]  }
  0x45   : > { %2824 = vmatpush3.bf16.msra.mxu0 %v3228_v28  ;;  %v3295_v28 = vld [vmem:[%s3511_s6 + $0x288] ss:$52 sps:$4 sm:$0xff]  }
  0x46   : > { %2888 = vmatpush3.bf16.msra.mxu1 %v3229_v29  ;;  %2937 = vmatprep.subr.bf16.mxu0 %v3236_v33  ;;  %v3300_v29 = vld [vmem:[%s3511_s6 + $0x2ec] ss:$52 sps:$4 sm:$0xff]   ;;  %v3312_v33 = vld [vmem:[%s3511_s6 + $0x24] ss:$52 sps:$4 sm:$0xff]  }
  0x47   : > { %1721 = vmatmul.mubr.bf16.gmra.mrb[16].mxu0 %v3194_v2  ;;  %3001 = vmatprep.subr.bf16.mxu1 %v3237_v34  ;;  %v3264_v2 = vld [vmem:[%s3511_s6 + $0x148] ss:$52 sps:$4 sm:$0xff]   ;;  %v3315_v34 = vld [vmem:[%s3511_s6 + $0x2c] ss:$52 sps:$4 sm:$0xff]  }
  0x48   : > { %1818 = vmatmul.mubr.bf16.gmra.mrb[16].mxu1 %v3195_v4  ;;  %1728 = vmatprep.mubr.bf16.mxu0 %v3200_v8  ;;  %v3270_v4 = vld [vmem:[%s3511_s6 + $0x1b4] ss:$52 sps:$4 sm:$0xff]  }
  0x49   : > { %1825 = vmatprep.mubr.bf16.mxu1 %v3202_v9  ;;  %v3288_v8 = vld [vmem:[%s3979_s1 + $0x228] sm:$0xff]  }
  0x4a   : > { %v3289_v9 = vld [vmem:[%s3979_s1 + $0x2a8] sm:$0xff]  }
  0x4f   : > { %1729 = vmatmul.mubr.bf16.gmra.mrb[20].mxu0 %v3204_v12  ;;  %v3280_v12 = vld [vmem:[%s3511_s6 + $0x21c] ss:$52 sps:$4 sm:$0xff]  }
  0x50   : > { %1826 = vmatmul.mubr.bf16.gmra.mrb[20].mxu1 %v3205_v15  ;;  %1736 = vmatprep.mubr.bf16.mxu0 %v3210_v16  ;;  %v3297_v15 = vld [vmem:[%s3979_s1 + $0x2f0] sm:$0xff]  }
  0x51   : > { %1833 = vmatprep.mubr.bf16.mxu1 %v3212_v17  ;;  %v3298_v16 = vld [vmem:[%s3979_s1 + $0x230] sm:$0xff]  }
  0x52   : > { %v3299_v17 = vld [vmem:[%s3979_s1 + $0x2b0] sm:$0xff]  }
  0x57   : > { %1737 = vmatmul.mubr.bf16.gmra.mrb[24].mxu0 %v3214_v22  ;;  %v3292_v22 = vld [vmem:[%s3511_s6 + $0x28c] ss:$52 sps:$4 sm:$0xff]  }
  0x58   : > { %1834 = vmatmul.mubr.bf16.gmra.mrb[24].mxu1 %v3215_v23  ;;  %1744 = vmatprep.mubr.bf16.mxu0 %v3220_v24  ;;  %v3307_v23 = vld [vmem:[%s3979_s1 + $0x2f8] sm:$0xff]  }
  0x59   : > { %1841 = vmatprep.mubr.bf16.mxu1 %v3222_v25  ;;  %v3308_v24 = vld [vmem:[%s3979_s1 + $0x238] sm:$0xff]  }
  0x5a   : > { %v3309_v25 = vld [vmem:[%s3979_s1 + $0x2b8] sm:$0xff]  }
  0x5f   : > { %1745 = vmatmul.mubr.bf16.gmra.mrb[28].mxu0 %v3224_v30  ;;  %v3302_v30 = vld [vmem:[%s3511_s6 + $0x2f4] ss:$52 sps:$4 sm:$0xff]  }
  0x60   : > { %1842 = vmatmul.mubr.bf16.gmra.mrb[28].mxu1 %v3225_v31  ;;  %1882 = vmatprep.mubr.bf16.mxu0 %v3232_v32  ;;  %v3304_v31 = vld [vmem:[%s3511_s6 + $0x2e8] ss:$52 sps:$4 sm:$0xff]   ;;  %v3305_v32 = vld [vmem:[%s3511_s6 + $0x2f0] ss:$52 sps:$4 sm:$0xff]  }
  0x61   : > { %1979 = vmatprep.mubr.bf16.mxu1 %v3235_v35  ;;  %v3310_v35 = vld [vmem:[%s3511_s6 + $0x20] ss:$52 sps:$4 sm:$0xff]  }
  0x67   : > { %1883 = vmatmul.mubr.bf16.vlgmr.msra.gmra.mrb[32].mxu0 %v3230_v36  ;;  %v3313_v36 = vld [vmem:[%s3511_s6 + $0x28] ss:$52 sps:$4 sm:$0xff]  }
  0x68   : > { %1980 = vmatmul.mubr.bf16.vlgmr.msra.gmra.mrb[32].mxu1 %v3233_v37  ;;  %2938 = vmatpush3.bf16.msra.mxu0 %v3238_v38  ;;  %v3317_v37 = vld [vmem:[%s3511_s6 + $0x8c] ss:$52 sps:$4 sm:$0xff]   ;;  %v3319_v38 = vld [vmem:[%s3511_s6 + $0x94] ss:$52 sps:$4 sm:$0xff]  }
  0x69   : > { %3002 = vmatpush3.bf16.msra.mxu1 %v3239_v39  ;;  %1890 = vmatprep.mubr.bf16.mxu0 %v3240_v40  ;;  %v3329_v39 = vld [vmem:[%s3979_s1 + $0x308] sm:$0xff]   ;;  %v3342_v40 = vld [vmem:[%s3979_s1 + $0x310] sm:$0xff]  }
  0x6a   : > { %1987 = vmatprep.mubr.bf16.mxu1 %v3242_v41  ;;  %2939 = vmatprep.subr.bf16.mxu0 %v3246_v42  ;;  %v3321_v41 = vld [vmem:[%s3511_s6 + $0x88] ss:$52 sps:$4 sm:$0xff]   ;;  %v3322_v42 = vld [vmem:[%s3511_s6 + $0x90] ss:$52 sps:$4 sm:$0xff]  }
  0x6b   : > { %3003 = vmatprep.subr.bf16.mxu1 %v3247_v43  ;;  %v3323_v43 = vld [vmem:[%s3511_s6 + $0xf4] ss:$52 sps:$4 sm:$0xff]  }
  0x6c   : > { %2940 = vmatpush3.bf16.msra.mxu0 %v3248_v44  ;;  %v3325_v44 = vld [vmem:[%s3511_s6 + $0xfc] ss:$52 sps:$4 sm:$0xff]  }
  0x6d   : > { %3004 = vmatpush3.bf16.msra.mxu1 %v3249_v45  ;;  %2941 = vmatprep.subr.bf16.mxu0 %v3256_v47  ;;  %v3355_v45 = vld [vmem:[%s3979_s1 + $0x318] sm:$0xff]  }
  0x6e   : > { %3005 = vmatprep.subr.bf16.mxu1 %v3257_v49  ;;  %v3328_v47 = vld [vmem:[%s3511_s6 + $0xf8] ss:$52 sps:$4 sm:$0xff]  }
  0x6f   : > { %1891 = vmatmul.mubr.bf16.gmra.mrb[36].mxu0 %v3244_v46  ;;  %v3327_v46 = vld [vmem:[%s3511_s6 + $0xf0] ss:$52 sps:$4 sm:$0xff]  }
  0x70   : > { %1988 = vmatmul.mubr.bf16.gmra.mrb[36].mxu1 %v3245_v48  ;;  %1898 = vmatprep.mubr.bf16.mxu0 %v3250_v50  ;;  %v3330_v48 = vld [vmem:[%s3511_s6 + $0x15c] ss:$52 sps:$4 sm:$0xff]   ;;  %v3332_v49 = vld [vmem:[%s3511_s6 + $0x164] ss:$52 sps:$4 sm:$0xff]  }
  0x71   : > { %1995 = vmatprep.mubr.bf16.mxu1 %v3252_v51  ;;  %2942 = vmatpush3.bf16.msra.mxu0 %v3258_v52  ;;  %v3334_v50 = vld [vmem:[%s3511_s6 + $0x158] ss:$52 sps:$4 sm:$0xff]   ;;  %v3335_v51 = vld [vmem:[%s3511_s6 + $0x160] ss:$52 sps:$4 sm:$0xff]  }
  0x72   : > { %3006 = vmatpush3.bf16.msra.mxu1 %v3259_v53  ;;  %2943 = vmatprep.subr.bf16.mxu0 %v3266_v54  ;;  %v3336_v52 = vld [vmem:[%s3511_s6 + $0x1c4] ss:$52 sps:$4 sm:$0xff]   ;;  %v3338_v53 = vld [vmem:[%s3511_s6 + $0x1cc] ss:$52 sps:$4 sm:$0xff]  }
  0x73   : > { %3007 = vmatprep.subr.bf16.mxu1 %v3267_v55  ;;  %v3340_v54 = vld [vmem:[%s3511_s6 + $0x1c0] ss:$52 sps:$4 sm:$0xff]   ;;  %v3341_v55 = vld [vmem:[%s3511_s6 + $0x1c8] ss:$52 sps:$4 sm:$0xff]  }
  0x75   : > { %2944 = vmatpush3.bf16.msra.mxu0 %v3268_v57  ;;  %v3345_v57 = vld [vmem:[%s3511_s6 + $0x234] ss:$52 sps:$4 sm:$0xff]  }
  0x76   : > { %3008 = vmatpush3.bf16.msra.mxu1 %v3269_v58  ;;  %2945 = vmatprep.subr.bf16.mxu0 %v3276_v62  ;;  %v3347_v58 = vld [vmem:[%s3511_s6 + $0x228] ss:$52 sps:$4 sm:$0xff]   ;;  %v3353_v62 = vld [vmem:[%s3511_s6 + $0x290] ss:$52 sps:$4 sm:$0xff]  }
  0x77   : > { %1899 = vmatmul.mubr.bf16.gmra.mrb[40].mxu0 %v3254_v56  ;;  %3009 = vmatprep.subr.bf16.mxu1 %v3277_v63  ;;  %v3343_v56 = vld [vmem:[%s3511_s6 + $0x22c] ss:$52 sps:$4 sm:$0xff]  }
  0x78   : > { %1996 = vmatmul.mubr.bf16.gmra.mrb[40].mxu1 %v3255_v59  ;;  %1906 = vmatprep.mubr.bf16.mxu0 %v3260_v60  ;;  %v3348_v59 = vld [vmem:[%s3511_s6 + $0x230] ss:$52 sps:$4 sm:$0xff]   ;;  %v3349_v60 = vld [vmem:[%s3511_s6 + $0x294] ss:$52 sps:$4 sm:$0xff]   ;;  %v3354_v63 = vld [vmem:[%s3511_s6 + $0x298] ss:$52 sps:$4 sm:$0xff]  }
  0x79   : > { %2003 = vmatprep.mubr.bf16.mxu1 %v3262_v61  ;;  %2946 = vmatpush3.bf16.msra.mxu0 %v3278_v0  ;;  %v3351_v61 = vld [vmem:[%s3511_s6 + $0x29c] ss:$52 sps:$4 sm:$0xff]  }
  0x7a   : > { %3010 = vmatpush3.bf16.msra.mxu1 %v3279_v1  ;;  %2947 = vmatprep.subr.bf16.mxu0 %v3286_v6  ;;  %v3356_v0 = vld [vmem:[%s3511_s6 + $0x2fc] ss:$52 sps:$4 sm:$0xff]   ;;  %v3358_v1 = vld [vmem:[%s3511_s6 + $0x304] ss:$52 sps:$4 sm:$0xff]  }
  0x7b   : > { %3011 = vmatprep.subr.bf16.mxu1 %v3287_v7  ;;  %v3364_v6 = vld [vmem:[%s3511_s6 + $0x98] ss:$52 sps:$4 sm:$0xff]  }
  0x7c   : > { %v3365_v7 = vld [vmem:[%s3511_s6 + $0x238] ss:$52 sps:$4 sm:$0xff]  }
  0x7d   : > { %2948 = vmatpush3.bf16.msra.mxu0 %v3288_v8  ;;  %v3366_v8 = vld [vmem:[%s3511_s6 + $0x100] ss:$52 sps:$4 sm:$0xff]  }
  0x7e   : > { %3012 = vmatpush3.bf16.msra.mxu1 %v3289_v9  ;;  %2949 = vmatprep.subr.bf16.mxu0 %v3296_v14  ;;  %v3367_v9 = vld [vmem:[%s3511_s6 + $0x2a0] ss:$52 sps:$4 sm:$0xff]  }
  0x7f   : > { %1907 = vmatmul.mubr.bf16.gmra.mrb[44].mxu0 %v3264_v2  ;;  %3013 = vmatprep.subr.bf16.mxu1 %v3297_v15  ;;  %v3360_v2 = vld [vmem:[%s3511_s6 + $0x2f8] ss:$52 sps:$4 sm:$0xff]  }
  0x80   : > { %2004 = vmatmul.mubr.bf16.gmra.mrb[44].mxu1 %v3265_v3  ;;  %1914 = vmatprep.mubr.bf16.mxu0 %v3270_v4  ;;  %v3361_v3 = vld [vmem:[%s3511_s6 + $0x300] ss:$52 sps:$4 sm:$0xff]   ;;  %v3362_v4 = vld [vmem:[%s3511_s6 + $0x30] ss:$52 sps:$4 sm:$0xff]  }
  0x81   : > { %2011 = vmatprep.mubr.bf16.mxu1 %v3272_v5  ;;  %2950 = vmatpush3.bf16.msra.mxu0 %v3298_v16  ;;  %v3363_v5 = vld [vmem:[%s3511_s6 + $0x1d0] ss:$52 sps:$4 sm:$0xff]  }
  0x82   : > { %3014 = vmatpush3.bf16.msra.mxu1 %v3299_v17  ;;  %2951 = vmatprep.subr.bf16.mxu0 %v3306_v21 }
  0x83   : > { %3015 = vmatprep.subr.bf16.mxu1 %v3307_v23 }
  0x85   : > { %2952 = vmatpush3.bf16.msra.mxu0 %v3308_v24 }
  0x86   : > { %3016 = vmatpush3.bf16.msra.mxu1 %v3309_v25  ;;  %3077 = vmatprep.subr.bf16.mxu0 %v3316_v26 }
  0x87   : > { %1915 = vmatmul.mubr.bf16.gmra.mrb[48].mxu0 %v3274_v10  ;;  %3101 = vmatprep.subr.bf16.mxu1 %v3316_v26  ;;  %v3368_v10 = vld [vmem:[%s3511_s6 + $0x168] ss:$52 sps:$4 sm:$0xff]  }
  0x88   : > { %2012 = vmatmul.mubr.bf16.gmra.mrb[48].mxu1 %v3275_v11  ;;  %1922 = vmatprep.mubr.bf16.mxu0 %v3280_v12  ;;  %v3369_v11 = vld [vmem:[%s3511_s6 + $0x308] ss:$52 sps:$4 sm:$0xff]  }
  0x89   : > { %2019 = vmatprep.mubr.bf16.mxu1 %v3282_v13 }
  0x8f   : > { %1923 = vmatmul.mubr.bf16.gmra.mrb[52].mxu0 %v3284_v18 }
  0x90   : > { %2020 = vmatmul.mubr.bf16.gmra.mrb[52].mxu1 %v3285_v19  ;;  %1930 = vmatprep.mubr.bf16.mxu0 %v3290_v20 }
  0x91   : > { %2027 = vmatprep.mubr.bf16.mxu1 %v3292_v22 }
  0x97   : > { %1931 = vmatmul.mubr.bf16.gmra.mrb[56].mxu0 %v3294_v27 }
  0x98   : > { %2028 = vmatmul.mubr.bf16.gmra.mrb[56].mxu1 %v3295_v28  ;;  %1938 = vmatprep.mubr.bf16.mxu0 %v3300_v29 }
  0x99   : > { %2035 = vmatprep.mubr.bf16.mxu1 %v3302_v30 }
  0x9f   : > { %1939 = vmatmul.mubr.bf16.gmra.mrb[60].mxu0 %v3304_v31 }
  0xa0   : > { %2036 = vmatmul.mubr.bf16.gmra.mrb[60].mxu1 %v3305_v32  ;;  %2076 = vmatprep.mubr.bf16.mxu0 %v3312_v33 }
  0xa1   : > { %2173 = vmatprep.mubr.bf16.mxu1 %v3315_v34 }
  0xa7   : > { %2077 = vmatmul.mubr.bf16.vlgmr.msra.gmra.mrb[64].mxu0 %v3310_v35 }
  0xa8   : > { %2174 = vmatmul.mubr.bf16.vlgmr.msra.gmra.mrb[64].mxu1 %v3313_v36  ;;  %3078 = vmatpush3.bf16.msra.mxu0 %v3316_v26 }
  0xa9   : > { %3105 = vmatpush3.bf16.msra.mxu1 %v3316_v26  ;;  %2084 = vmatprep.mubr.bf16.mxu0 %v3317_v37 }
  0xaa   : > { %2181 = vmatprep.mubr.bf16.mxu1 %v3319_v38  ;;  %3079 = vmatprep.subr.bf16.mxu0 %v3329_v39 }
  0xab   : > { %3102 = vmatprep.subr.bf16.mxu1 %v3329_v39 }
  0xac   : > { %3080 = vmatpush3.bf16.msra.mxu0 %v3329_v39 }
  0xad   : > { %3106 = vmatpush3.bf16.msra.mxu1 %v3329_v39  ;;  %3081 = vmatprep.subr.bf16.mxu0 %v3342_v40 }
  0xae   : > { %3103 = vmatprep.subr.bf16.mxu1 %v3342_v40 }
  0xaf   : > { %2085 = vmatmul.mubr.bf16.gmra.mrb[68].mxu0 %v3321_v41 }
  0xb0   : > { %2182 = vmatmul.mubr.bf16.gmra.mrb[68].mxu1 %v3322_v42  ;;  %2092 = vmatprep.mubr.bf16.mxu0 %v3323_v43 }
  0xb1   : > { %2189 = vmatprep.mubr.bf16.mxu1 %v3325_v44  ;;  %3082 = vmatpush3.bf16.msra.mxu0 %v3342_v40 }
  0xb2   : > { %3107 = vmatpush3.bf16.msra.mxu1 %v3342_v40  ;;  %3083 = vmatprep.subr.bf16.mxu0 %v3355_v45 }
  0xb3   : > { %3104 = vmatprep.subr.bf16.mxu1 %v3355_v45 }
  0xb5   : > { %3084 = vmatpush3.bf16.msra.mxu0 %v3355_v45 }
  0xb6   : > { %3108 = vmatpush3.bf16.msra.mxu1 %v3355_v45 }
  0xb7   : > { %2093 = vmatmul.mubr.bf16.gmra.mrb[72].mxu0 %v3327_v46 }
  0xb8   : > { %2190 = vmatmul.mubr.bf16.gmra.mrb[72].mxu1 %v3328_v47  ;;  %2100 = vmatprep.mubr.bf16.mxu0 %v3330_v48 }
  0xb9   : > { %2197 = vmatprep.mubr.bf16.mxu1 %v3332_v49 }
  0xbf   : > { %2101 = vmatmul.mubr.bf16.gmra.mrb[76].mxu0 %v3334_v50 }
  0xc0   : > { %2198 = vmatmul.mubr.bf16.gmra.mrb[76].mxu1 %v3335_v51  ;;  %2108 = vmatprep.mubr.bf16.mxu0 %v3336_v52 }
  0xc1   : > { %2205 = vmatprep.mubr.bf16.mxu1 %v3338_v53 }
  0xc7   : > { %2109 = vmatmul.mubr.bf16.gmra.mrb[80].mxu0 %v3340_v54 }
  0xc8   : > { %2206 = vmatmul.mubr.bf16.gmra.mrb[80].mxu1 %v3341_v55  ;;  %2116 = vmatprep.mubr.bf16.mxu0 %v3343_v56 }
  0xc9   : > { %2213 = vmatprep.mubr.bf16.mxu1 %v3345_v57 }
  0xcf   : > { %2117 = vmatmul.mubr.bf16.gmra.mrb[84].mxu0 %v3347_v58 }
  0xd0   : > { %2214 = vmatmul.mubr.bf16.gmra.mrb[84].mxu1 %v3348_v59  ;;  %2124 = vmatprep.mubr.bf16.mxu0 %v3349_v60 }
  0xd1   : > { %2221 = vmatprep.mubr.bf16.mxu1 %v3351_v61 }
  0xd7   : > { %2125 = vmatmul.mubr.bf16.gmra.mrb[88].mxu0 %v3353_v62 }
  0xd8   : > { %2222 = vmatmul.mubr.bf16.gmra.mrb[88].mxu1 %v3354_v63  ;;  %2132 = vmatprep.mubr.bf16.mxu0 %v3356_v0 }
  0xd9   : > { %2229 = vmatprep.mubr.bf16.mxu1 %v3358_v1 }
  0xdf   : > { %2133 = vmatmul.mubr.bf16.gmra.mrb[92].mxu0 %v3360_v2 }
  0xe0   : > { %2230 = vmatmul.mubr.bf16.gmra.mrb[92].mxu1 %v3361_v3  ;;  %3085 = vmatprep.mubr.msk.bf16.mxu0 %vm1631_vm0, %v3362_v4 }
  0xe1   : > { %3093 = vmatprep.mubr.msk.bf16.mxu1 %vm1631_vm0, %v3363_v5 }
  0xe7   : > { %3086 = vmatmul.mubr.msk.bf16.vlgmr.msra.gmra.mrb[96].mxu0 %vm1631_vm0, %v3364_v6 }
  0xe8   : > { %3094 = vmatmul.mubr.msk.bf16.vlgmr.msra.gmra.mrb[96].mxu1 %vm1631_vm0, %v3365_v7  ;;  %3089 = vmatprep.mubr.msk.bf16.mxu0 %vm1631_vm0, %v3366_v8 }
  0xe9   : > { %3097 = vmatprep.mubr.msk.bf16.mxu1 %vm1631_vm0, %v3367_v9 }
  0xef   : > { %3090 = vmatmul.mubr.msk.bf16.gmra.mrb[100].mxu0 %vm1631_vm0, %v3368_v10 }
  0xf0   : > { %3098 = vmatmul.mubr.msk.bf16.gmra.mrb[100].mxu1 %vm1631_vm0, %v3369_v11 }
  0xfa   : > { %v2697_v12 = vpop.f32.mrb[0].mxu0 }
  0xfb   : > { %v2761_v13 = vpop.f32.mrb[0].mxu1  ;;  %v2698_v14 = vpop.f32.mrb[1].mxu0 }
  0xfc   : > { %v2699_v15 = vadd.f32 %v2698_v14, %v2697_v12  ;;  %v2762_v16 = vpop.f32.mrb[1].mxu1  ;;  %v2700_v17 = vpop.f32.mrb[2].mxu0 }
  0xfd   : > { %v2763_v18 = vadd.f32 %v2762_v16, %v2761_v13  ;;  %v2764_v19 = vpop.f32.mrb[2].mxu1  ;;  %v2701_v20 = vpop.f32.mrb[3].mxu0 }
  0xfe   : > { %v2702_v21 = vadd.f32 %v2701_v20, %v2700_v17  ;;  %v2765_v22 = vpop.f32.mrb[3].mxu1 }
  0xff   : > { %v3835_v23 = vadd.f32 %v2763_v18, %v2699_v15  ;;  %v2766_v24 = vadd.f32 %v2765_v22, %v2764_v19 }
 0x101   : > { %v3837_v25 = vadd.f32 %v2766_v24, %v2702_v21 }
 0x102   : > { %v2703_v26 = vpop.f32.mrb[4].mxu0 }
 0x103   : > { %v2767_v27 = vpop.f32.mrb[4].mxu1  ;;  %v2704_v28 = vpop.f32.mrb[5].mxu0 }
 0x104   : > { %v2705_v29 = vadd.f32 %v2704_v28, %v2703_v26  ;;  %v2768_v30 = vpop.f32.mrb[5].mxu1  ;;  %v2706_v31 = vpop.f32.mrb[6].mxu0 }
 0x105   : > { %v2769_v32 = vadd.f32 %v2768_v30, %v2767_v27  ;;  %v2770_v33 = vpop.f32.mrb[6].mxu1  ;;  %v2707_v34 = vpop.f32.mrb[7].mxu0 }
 0x106   : > { %v2708_v35 = vadd.f32 %v2707_v34, %v2706_v31  ;;  %v2771_v36 = vpop.f32.mrb[7].mxu1 }
 0x107   : > { %v3839_v37 = vadd.f32 %v2769_v32, %v2705_v29  ;;  %v2772_v38 = vadd.f32 %v2771_v36, %v2770_v33 }
 0x109   : > { %v3841_v39 = vadd.f32 %v2772_v38, %v2708_v35 }
 0x10a   : > { %v2709_v40 = vpop.f32.mrb[8].mxu0 }
 0x10b   : > { %v2773_v41 = vpop.f32.mrb[8].mxu1  ;;  %v2710_v42 = vpop.f32.mrb[9].mxu0 }
 0x10c   : > { %v2711_v43 = vadd.f32 %v2710_v42, %v2709_v40  ;;  %v2774_v44 = vpop.f32.mrb[9].mxu1  ;;  %v2712_v45 = vpop.f32.mrb[10].mxu0 }
 0x10d   : > { %v2775_v46 = vadd.f32 %v2774_v44, %v2773_v41  ;;  %v2776_v47 = vpop.f32.mrb[10].mxu1  ;;  %v2713_v48 = vpop.f32.mrb[11].mxu0 }
 0x10e   : > { %v2714_v49 = vadd.f32 %v2713_v48, %v2712_v45  ;;  %v2777_v50 = vpop.f32.mrb[11].mxu1 }
 0x10f   : > { %v3843_v51 = vadd.f32 %v2775_v46, %v2711_v43  ;;  %v2778_v52 = vadd.f32 %v2777_v50, %v2776_v47 }
 0x111   : > { %v3845_v53 = vadd.f32 %v2778_v52, %v2714_v49 }
 0x112   : > { %v2715_v54 = vpop.f32.mrb[12].mxu0 }
 0x113   : > { %v2779_v55 = vpop.f32.mrb[12].mxu1  ;;  %v2716_v56 = vpop.f32.mrb[13].mxu0 }
 0x114   : > { %v2717_v57 = vadd.f32 %v2716_v56, %v2715_v54  ;;  %v2780_v58 = vpop.f32.mrb[13].mxu1  ;;  %v2718_v59 = vpop.f32.mrb[14].mxu0 }
 0x115   : > { %v2781_v60 = vadd.f32 %v2780_v58, %v2779_v55  ;;  %v2782_v61 = vpop.f32.mrb[14].mxu1  ;;  %v2719_v62 = vpop.f32.mrb[15].mxu0 }
 0x116   : > { %v2720_v63 = vadd.f32 %v2719_v62, %v2718_v59  ;;  %v2783_v0 = vpop.f32.mrb[15].mxu1 }
 0x117   : > { %v3847_v1 = vadd.f32 %v2781_v60, %v2717_v57  ;;  %v2784_v2 = vadd.f32 %v2783_v0, %v2782_v61 }
 0x119   : > { %v3849_v3 = vadd.f32 %v2784_v2, %v2720_v63 }
 0x11a   : > { %v2721_v4 = vpop.f32.mrb[16].mxu0 }
 0x11b   : > { %v2785_v5 = vpop.f32.mrb[16].mxu1  ;;  %v2722_v6 = vpop.f32.mrb[17].mxu0 }
 0x11c   : > { %v2723_v7 = vadd.f32 %v2722_v6, %v2721_v4  ;;  %v2786_v8 = vpop.f32.mrb[17].mxu1  ;;  %v2724_v9 = vpop.f32.mrb[18].mxu0 }
 0x11d   : > { %v2787_v10 = vadd.f32 %v2786_v8, %v2785_v5  ;;  %v2788_v11 = vpop.f32.mrb[18].mxu1  ;;  %v2725_v12 = vpop.f32.mrb[19].mxu0 }
 0x11e   : > { %v2726_v13 = vadd.f32 %v2725_v12, %v2724_v9  ;;  %v2789_v14 = vpop.f32.mrb[19].mxu1 }
 0x11f   : > { %v3851_v15 = vadd.f32 %v2787_v10, %v2723_v7  ;;  %v2790_v16 = vadd.f32 %v2789_v14, %v2788_v11 }
 0x121   : > { %v3853_v17 = vadd.f32 %v2790_v16, %v2726_v13 }
 0x122   : > { %v2727_v18 = vpop.f32.mrb[20].mxu0 }
 0x123   : > { %v2791_v19 = vpop.f32.mrb[20].mxu1  ;;  %v2728_v20 = vpop.f32.mrb[21].mxu0 }
 0x124   : > { %v2729_v21 = vadd.f32 %v2728_v20, %v2727_v18  ;;  %v2792_v22 = vpop.f32.mrb[21].mxu1  ;;  %v2730_v24 = vpop.f32.mrb[22].mxu0 }
 0x125   : > { %v2793_v26 = vadd.f32 %v2792_v22, %v2791_v19  ;;  %v2794_v27 = vpop.f32.mrb[22].mxu1  ;;  %v2731_v28 = vpop.f32.mrb[23].mxu0 }
 0x126   : > { %v2732_v29 = vadd.f32 %v2731_v28, %v2730_v24  ;;  %v2795_v30 = vpop.f32.mrb[23].mxu1 }
 0x127   : > { %v3855_v31 = vadd.f32 %v2793_v26, %v2729_v21  ;;  %v2796_v32 = vadd.f32 %v2795_v30, %v2794_v27 }
 0x129   : > { %v3857_v33 = vadd.f32 %v2796_v32, %v2732_v29 }
 0x12a   : > { %v2733_v34 = vpop.f32.mrb[24].mxu0 }
 0x12b   : > { %v2797_v35 = vpop.f32.mrb[24].mxu1  ;;  %v2734_v36 = vpop.f32.mrb[25].mxu0 }
 0x12c   : > { %v2735_v38 = vadd.f32 %v2734_v36, %v2733_v34  ;;  %v2798_v40 = vpop.f32.mrb[25].mxu1  ;;  %v2736_v41 = vpop.f32.mrb[26].mxu0 }
 0x12d   : > { %v2799_v42 = vadd.f32 %v2798_v40, %v2797_v35  ;;  %v2800_v43 = vpop.f32.mrb[26].mxu1  ;;  %v2737_v44 = vpop.f32.mrb[27].mxu0 }
 0x12e   : > { %v2738_v45 = vadd.f32 %v2737_v44, %v2736_v41  ;;  %v2801_v46 = vpop.f32.mrb[27].mxu1 }
 0x12f   : > { %v3859_v47 = vadd.f32 %v2799_v42, %v2735_v38  ;;  %v2802_v48 = vadd.f32 %v2801_v46, %v2800_v43 }
 0x131   : > { %v3861_v49 = vadd.f32 %v2802_v48, %v2738_v45 }
 0x132   : > { %v2739_v50 = vpop.f32.mrb[28].mxu0 }
 0x133   : > { %v2803_v52 = vpop.f32.mrb[28].mxu1  ;;  %v2740_v54 = vpop.f32.mrb[29].mxu0 }
 0x134   : > { %v2741_v55 = vadd.f32 %v2740_v54, %v2739_v50  ;;  %v2804_v56 = vpop.f32.mrb[29].mxu1  ;;  %v2742_v57 = vpop.f32.mrb[30].mxu0 }
 0x135   : > { %v2805_v58 = vadd.f32 %v2804_v56, %v2803_v52  ;;  %v2806_v59 = vpop.f32.mrb[30].mxu1  ;;  %v2743_v60 = vpop.f32.mrb[31].mxu0 }
 0x136   : > { %v2744_v61 = vadd.f32 %v2743_v60, %v2742_v57  ;;  %v2807_v62 = vpop.f32.mrb[31].mxu1 }
 0x137   : > { %v3863_v63 = vadd.f32 %v2805_v58, %v2741_v55  ;;  %v2808_v0 = vadd.f32 %v2807_v62, %v2806_v59 }
 0x139   : > { %v3865_v2 = vadd.f32 %v2808_v0, %v2744_v61 }
 0x13a   : > { %v2825_v4 = vpop.f32.mrb[32].mxu0 }
 0x13b   : > { %v2889_v5 = vpop.f32.mrb[32].mxu1  ;;  %v2826_v6 = vpop.f32.mrb[33].mxu0 }
 0x13c   : > { %v2827_v7 = vadd.f32 %v2826_v6, %v2825_v4  ;;  %v2890_v8 = vpop.f32.mrb[33].mxu1  ;;  %v2828_v9 = vpop.f32.mrb[34].mxu0 }
 0x13d   : > { %v2891_v10 = vadd.f32 %v2890_v8, %v2889_v5  ;;  %v2892_v11 = vpop.f32.mrb[34].mxu1  ;;  %v2829_v12 = vpop.f32.mrb[35].mxu0 }
 0x13e   : > { %v1885_v13 = vadd.f32 %v2827_v7, %v3835_v23  ;;  %v2830_v14 = vadd.f32 %v2829_v12, %v2828_v9  ;;  %v2893_v16 = vpop.f32.mrb[35].mxu1 }
 0x13f   : > { %v2894_v18 = vadd.f32 %v2893_v16, %v2892_v11 }
 0x140   : > { %v3868_v19 = vadd.f32 %v2891_v10, %v1885_v13  ;;  %v1888_v20 = vadd.f32 %v2830_v14, %v3837_v25 }
 0x142   : > { %v3871_v21 = vadd.f32 %v2894_v18, %v1888_v20  ;;  %v2831_v22 = vpop.f32.mrb[36].mxu0 }
 0x143   : > { %v2895_v24 = vpop.f32.mrb[36].mxu1  ;;  %v2832_v26 = vpop.f32.mrb[37].mxu0 }
 0x144   : > { %v2833_v27 = vadd.f32 %v2832_v26, %v2831_v22  ;;  %v2896_v28 = vpop.f32.mrb[37].mxu1  ;;  %v2834_v29 = vpop.f32.mrb[38].mxu0 }
 0x145   : > { %v2897_v30 = vadd.f32 %v2896_v28, %v2895_v24  ;;  %v2898_v32 = vpop.f32.mrb[38].mxu1  ;;  %v2835_v34 = vpop.f32.mrb[39].mxu0 }
 0x146   : > { %v1893_v23 = vadd.f32 %v2833_v27, %v3839_v37  ;;  %v2836_v35 = vadd.f32 %v2835_v34, %v2834_v29  ;;  %v2899_v36 = vpop.f32.mrb[39].mxu1 }
 0x147   : > { %v2900_v38 = vadd.f32 %v2899_v36, %v2898_v32 }
 0x148   : > { %v3874_v40 = vadd.f32 %v2897_v30, %v1893_v23  ;;  %v1896_v25 = vadd.f32 %v2836_v35, %v3841_v39 }
 0x14a   : > { %v3877_v41 = vadd.f32 %v2900_v38, %v1896_v25  ;;  %v2837_v42 = vpop.f32.mrb[40].mxu0 }
 0x14b   : > { %v2901_v43 = vpop.f32.mrb[40].mxu1  ;;  %v2838_v44 = vpop.f32.mrb[41].mxu0 }
 0x14c   : > { %v2839_v45 = vadd.f32 %v2838_v44, %v2837_v42  ;;  %v2902_v46 = vpop.f32.mrb[41].mxu1  ;;  %v2840_v48 = vpop.f32.mrb[42].mxu0 }
 0x14d   : > { %v2903_v50 = vadd.f32 %v2902_v46, %v2901_v43  ;;  %v2904_v52 = vpop.f32.mrb[42].mxu1  ;;  %v2841_v54 = vpop.f32.mrb[43].mxu0 }
 0x14e   : > { %v1901_v37 = vadd.f32 %v2839_v45, %v3843_v51  ;;  %v2842_v55 = vadd.f32 %v2841_v54, %v2840_v48  ;;  %v2905_v56 = vpop.f32.mrb[43].mxu1 }
 0x14f   : > { %v2906_v57 = vadd.f32 %v2905_v56, %v2904_v52 }
 0x150   : > { %v3880_v58 = vadd.f32 %v2903_v50, %v1901_v37  ;;  %v1904_v39 = vadd.f32 %v2842_v55, %v3845_v53 }
 0x152   : > { %v3883_v59 = vadd.f32 %v2906_v57, %v1904_v39  ;;  %v2843_v60 = vpop.f32.mrb[44].mxu0 }
 0x153   : > { %v2907_v61 = vpop.f32.mrb[44].mxu1  ;;  %v2844_v62 = vpop.f32.mrb[45].mxu0 }
 0x154   : > { %v2845_v0 = vadd.f32 %v2844_v62, %v2843_v60  ;;  %v2908_v4 = vpop.f32.mrb[45].mxu1  ;;  %v2846_v5 = vpop.f32.mrb[46].mxu0 }
 0x155   : > { %v2909_v6 = vadd.f32 %v2908_v4, %v2907_v61  ;;  %v2910_v7 = vpop.f32.mrb[46].mxu1  ;;  %v2847_v8 = vpop.f32.mrb[47].mxu0 }
 0x156   : > { %v1909_v51 = vadd.f32 %v2845_v0, %v3847_v1  ;;  %v2848_v9 = vadd.f32 %v2847_v8, %v2846_v5  ;;  %v2911_v10 = vpop.f32.mrb[47].mxu1 }
 0x157   : > { %v2912_v11 = vadd.f32 %v2911_v10, %v2910_v7 }
 0x158   : > { %v3886_v12 = vadd.f32 %v2909_v6, %v1909_v51  ;;  %v1912_v53 = vadd.f32 %v2848_v9, %v3849_v3 }
 0x15a   : > { %v3889_v13 = vadd.f32 %v2912_v11, %v1912_v53  ;;  %v2849_v14 = vpop.f32.mrb[48].mxu0 }
 0x15b   : > { %v2913_v16 = vpop.f32.mrb[48].mxu1  ;;  %v2850_v18 = vpop.f32.mrb[49].mxu0 }
 0x15c   : > { %v2851_v20 = vadd.f32 %v2850_v18, %v2849_v14  ;;  %v2914_v22 = vpop.f32.mrb[49].mxu1  ;;  %v2852_v24 = vpop.f32.mrb[50].mxu0 }
 0x15d   : > { %v2915_v26 = vadd.f32 %v2914_v22, %v2913_v16  ;;  %v2916_v27 = vpop.f32.mrb[50].mxu1  ;;  %v2853_v28 = vpop.f32.mrb[51].mxu0 }
 0x15e   : > { %v1917_v1 = vadd.f32 %v2851_v20, %v3851_v15  ;;  %v2854_v29 = vadd.f32 %v2853_v28, %v2852_v24  ;;  %v2917_v30 = vpop.f32.mrb[51].mxu1 }
 0x15f   : > { %v2918_v32 = vadd.f32 %v2917_v30, %v2916_v27 }
 0x160   : > { %v3892_v34 = vadd.f32 %v2915_v26, %v1917_v1  ;;  %v1920_v3 = vadd.f32 %v2854_v29, %v3853_v17 }
 0x162   : > { %v3895_v23 = vadd.f32 %v2918_v32, %v1920_v3  ;;  %v2855_v35 = vpop.f32.mrb[52].mxu0 }
 0x163   : > { %v2919_v36 = vpop.f32.mrb[52].mxu1  ;;  %v2856_v38 = vpop.f32.mrb[53].mxu0 }
 0x164   : > { %v2857_v25 = vadd.f32 %v2856_v38, %v2855_v35  ;;  %v2920_v42 = vpop.f32.mrb[53].mxu1  ;;  %v2858_v43 = vpop.f32.mrb[54].mxu0 }
 0x165   : > { %v2921_v44 = vadd.f32 %v2920_v42, %v2919_v36  ;;  %v2922_v45 = vpop.f32.mrb[54].mxu1  ;;  %v2859_v46 = vpop.f32.mrb[55].mxu0 }
 0x166   : > { %v1925_v15 = vadd.f32 %v2857_v25, %v3855_v31  ;;  %v2860_v48 = vadd.f32 %v2859_v46, %v2858_v43  ;;  %v2923_v50 = vpop.f32.mrb[55].mxu1 }
 0x167   : > { %v2924_v52 = vadd.f32 %v2923_v50, %v2922_v45 }
 0x168   : > { %v3898_v54 = vadd.f32 %v2921_v44, %v1925_v15  ;;  %v1928_v17 = vadd.f32 %v2860_v48, %v3857_v33 }
 0x16a   : > { %v3901_v37 = vadd.f32 %v2924_v52, %v1928_v17  ;;  %v2861_v55 = vpop.f32.mrb[56].mxu0 }
 0x16b   : > { %v2925_v56 = vpop.f32.mrb[56].mxu1  ;;  %v2862_v57 = vpop.f32.mrb[57].mxu0 }
 0x16c   : > { %v2863_v39 = vadd.f32 %v2862_v57, %v2861_v55  ;;  %v2926_v60 = vpop.f32.mrb[57].mxu1  ;;  %v2864_v61 = vpop.f32.mrb[58].mxu0 }
 0x16d   : > { %v2927_v62 = vadd.f32 %v2926_v60, %v2925_v56  ;;  %v2928_v0 = vpop.f32.mrb[58].mxu1  ;;  %v2865_v4 = vpop.f32.mrb[59].mxu0 }
 0x16e   : > { %v1933_v31 = vadd.f32 %v2863_v39, %v3859_v47  ;;  %v2866_v5 = vadd.f32 %v2865_v4, %v2864_v61  ;;  %v2929_v6 = vpop.f32.mrb[59].mxu1 }
 0x16f   : > { %v2930_v7 = vadd.f32 %v2929_v6, %v2928_v0 }
 0x170   : > { %v3904_v8 = vadd.f32 %v2927_v62, %v1933_v31  ;;  %v1936_v33 = vadd.f32 %v2866_v5, %v3861_v49 }
 0x172   : > { %v3907_v51 = vadd.f32 %v2930_v7, %v1936_v33  ;;  %v2867_v9 = vpop.f32.mrb[60].mxu0 }
 0x173   : > { %v2931_v10 = vpop.f32.mrb[60].mxu1  ;;  %v2868_v11 = vpop.f32.mrb[61].mxu0 }
 0x174   : > { %v2869_v53 = vadd.f32 %v2868_v11, %v2867_v9  ;;  %v2932_v14 = vpop.f32.mrb[61].mxu1  ;;  %v2870_v16 = vpop.f32.mrb[62].mxu0 }
 0x175   : > { %v2933_v18 = vadd.f32 %v2932_v14, %v2931_v10  ;;  %v2934_v20 = vpop.f32.mrb[62].mxu1  ;;  %v2871_v22 = vpop.f32.mrb[63].mxu0 }
 0x176   : > { %v1941_v47 = vadd.f32 %v2869_v53, %v3863_v63  ;;  %v2872_v24 = vadd.f32 %v2871_v22, %v2870_v16  ;;  %v2935_v26 = vpop.f32.mrb[63].mxu1 }
 0x177   : > { %v2936_v27 = vadd.f32 %v2935_v26, %v2934_v20 }
 0x178   : > { %v3910_v28 = vadd.f32 %v2933_v18, %v1941_v47  ;;  %v1944_v49 = vadd.f32 %v2872_v24, %v3865_v2 }
 0x17a   : > { %v3913_v1 = vadd.f32 %v2936_v27, %v1944_v49  ;;  %v2953_v29 = vpop.f32.mrb[64].mxu0 }
 0x17b   : > { %v3017_v30 = vpop.f32.mrb[64].mxu1  ;;  %v2954_v32 = vpop.f32.mrb[65].mxu0 }
 0x17c   : > { %v2955_v3 = vadd.f32 %v2954_v32, %v2953_v29  ;;  %v3018_v35 = vpop.f32.mrb[65].mxu1  ;;  %v2956_v36 = vpop.f32.mrb[66].mxu0 }
 0x17d   : > { %v3019_v38 = vadd.f32 %v3018_v35, %v3017_v30  ;;  %v3020_v25 = vpop.f32.mrb[66].mxu1  ;;  %v2957_v42 = vpop.f32.mrb[67].mxu0 }
 0x17e   : > { %v2079_v63 = vadd.f32 %v2955_v3, %v3868_v19  ;;  %v2958_v43 = vadd.f32 %v2957_v42, %v2956_v36  ;;  %v3021_v44 = vpop.f32.mrb[67].mxu1 }
 0x17f   : > { %v3022_v45 = vadd.f32 %v3021_v44, %v3020_v25 }
 0x180   : > { %v2082_v46 = vadd.f32 %v2958_v43, %v3871_v21  ;;  %v3917_v15 = vadd.f32 %v3019_v38, %v2079_v63 }
 0x182   : > { %v2959_v2 = vpop.f32.mrb[68].mxu0  ;;  %v3919_v48 = vadd.f32 %v3022_v45, %v2082_v46 }
 0x183   : > { %v3023_v50 = vpop.f32.mrb[68].mxu1  ;;  %v2960_v52 = vpop.f32.mrb[69].mxu0 }
 0x184   : > { %v2961_v17 = vadd.f32 %v2960_v52, %v2959_v2  ;;  %v3024_v55 = vpop.f32.mrb[69].mxu1  ;;  %v2962_v56 = vpop.f32.mrb[70].mxu0 }
 0x185   : > { %v3025_v57 = vadd.f32 %v3024_v55, %v3023_v50  ;;  %v3026_v39 = vpop.f32.mrb[70].mxu1  ;;  %v2963_v60 = vpop.f32.mrb[71].mxu0 }
 0x186   : > { %v2087_v19 = vadd.f32 %v2961_v17, %v3874_v40  ;;  %v2964_v61 = vadd.f32 %v2963_v60, %v2962_v56  ;;  %v3027_v62 = vpop.f32.mrb[71].mxu1 }
 0x187   : > { %v3028_v0 = vadd.f32 %v3027_v62, %v3026_v39 }
 0x188   : > { %v2090_v21 = vadd.f32 %v2964_v61, %v3877_v41  ;;  %v3923_v4 = vadd.f32 %v3025_v57, %v2087_v19 }
 0x18a   : > { %v2965_v31 = vpop.f32.mrb[72].mxu0  ;;  %v3925_v5 = vadd.f32 %v3028_v0, %v2090_v21 }
 0x18b   : > { %v3029_v6 = vpop.f32.mrb[72].mxu1  ;;  %v2966_v7 = vpop.f32.mrb[73].mxu0 }
 0x18c   : > { %v2967_v33 = vadd.f32 %v2966_v7, %v2965_v31  ;;  %v3030_v9 = vpop.f32.mrb[73].mxu1  ;;  %v2968_v10 = vpop.f32.mrb[74].mxu0 }
 0x18d   : > { %v3031_v11 = vadd.f32 %v3030_v9, %v3029_v6  ;;  %v3032_v53 = vpop.f32.mrb[74].mxu1  ;;  %v2969_v14 = vpop.f32.mrb[75].mxu0 }
 0x18e   : > { %v2095_v40 = vadd.f32 %v2967_v33, %v3880_v58  ;;  %v2970_v16 = vadd.f32 %v2969_v14, %v2968_v10  ;;  %v3033_v18 = vpop.f32.mrb[75].mxu1 }
 0x18f   : > { %v3034_v20 = vadd.f32 %v3033_v18, %v3032_v53 }
 0x190   : > { %v2098_v41 = vadd.f32 %v2970_v16, %v3883_v59  ;;  %v3929_v22 = vadd.f32 %v3031_v11, %v2095_v40 }
 0x192   : > { %v2971_v47 = vpop.f32.mrb[76].mxu0  ;;  %v3931_v24 = vadd.f32 %v3034_v20, %v2098_v41 }
 0x193   : > { %v3035_v26 = vpop.f32.mrb[76].mxu1  ;;  %v2972_v27 = vpop.f32.mrb[77].mxu0 }
 0x194   : > { %v2973_v49 = vadd.f32 %v2972_v27, %v2971_v47  ;;  %v3036_v29 = vpop.f32.mrb[77].mxu1  ;;  %v2974_v30 = vpop.f32.mrb[78].mxu0 }
 0x195   : > { %v3037_v32 = vadd.f32 %v3036_v29, %v3035_v26  ;;  %v3038_v3 = vpop.f32.mrb[78].mxu1  ;;  %v2975_v35 = vpop.f32.mrb[79].mxu0 }
 0x196   : > { %v2103_v58 = vadd.f32 %v2973_v49, %v3886_v12  ;;  %v2976_v36 = vadd.f32 %v2975_v35, %v2974_v30  ;;  %v3039_v38 = vpop.f32.mrb[79].mxu1 }
 0x197   : > { %v3040_v25 = vadd.f32 %v3039_v38, %v3038_v3 }
 0x198   : > { %v2106_v59 = vadd.f32 %v2976_v36, %v3889_v13  ;;  %v3935_v42 = vadd.f32 %v3037_v32, %v2103_v58 }
 0x19a   : > { %v2977_v63 = vpop.f32.mrb[80].mxu0  ;;  %v3937_v43 = vadd.f32 %v3040_v25, %v2106_v59 }
 0x19b   : > { %v3041_v44 = vpop.f32.mrb[80].mxu1  ;;  %v2978_v45 = vpop.f32.mrb[81].mxu0 }
 0x19c   : > { %v2979_v46 = vadd.f32 %v2978_v45, %v2977_v63  ;;  %v3042_v2 = vpop.f32.mrb[81].mxu1  ;;  %v2980_v50 = vpop.f32.mrb[82].mxu0 }
 0x19d   : > { %v3043_v52 = vadd.f32 %v3042_v2, %v3041_v44  ;;  %v3044_v17 = vpop.f32.mrb[82].mxu1  ;;  %v2981_v55 = vpop.f32.mrb[83].mxu0 }
 0x19e   : > { %v2111_v12 = vadd.f32 %v2979_v46, %v3892_v34  ;;  %v2982_v56 = vadd.f32 %v2981_v55, %v2980_v50  ;;  %v3045_v57 = vpop.f32.mrb[83].mxu1 }
 0x19f   : > { %v3046_v39 = vadd.f32 %v3045_v57, %v3044_v17 }
 0x1a0   : > { %v2114_v13 = vadd.f32 %v2982_v56, %v3895_v23  ;;  %v2208_v60 = vadd.f32 %v3043_v52, %v2111_v12 }
 0x1a2   : > { %v2983_v19 = vpop.f32.mrb[84].mxu0  ;;  %v3941_v61 = vadd.f32 %v3046_v39, %v2114_v13  ;;  %v2676_v39 = vld [vmem:[%s3980_s2] ss:$0 sm:$0xff] }
 0x1a3   : > { %v3047_v62 = vpop.f32.mrb[84].mxu1  ;;  %v2984_v0 = vpop.f32.mrb[85].mxu0 }
 0x1a4   : > { %v2985_v21 = vadd.f32 %v2984_v0, %v2983_v19  ;;  %v3048_v31 = vpop.f32.mrb[85].mxu1  ;;  %v2986_v6 = vpop.f32.mrb[86].mxu0 }
 0x1a5   : > { %v3049_v7 = vadd.f32 %v3048_v31, %v3047_v62  ;;  %v3050_v33 = vpop.f32.mrb[86].mxu1  ;;  %v2987_v9 = vpop.f32.mrb[87].mxu0 }
 0x1a6   : > { %v2119_v10 = vadd.f32 %v2985_v21, %v3898_v54  ;;  %v2988_v34 = vadd.f32 %v2987_v9, %v2986_v6  ;;  %v3051_v11 = vpop.f32.mrb[87].mxu1 }
 0x1a7   : > { %v3052_v53 = vadd.f32 %v3051_v11, %v3050_v33  ;;  %v2677_v11 = vld [vmem:[%s3981_s3] ss:$0 sm:$0xff] }
 0x1a8   : > { %v2122_v14 = vadd.f32 %v2988_v34, %v3901_v37  ;;  %v2216_v23 = vadd.f32 %v3049_v7, %v2119_v10 }
 0x1aa   : > { %v2989_v40 = vpop.f32.mrb[88].mxu0  ;;  %v2219_v16 = vadd.f32 %v3052_v53, %v2122_v14 }
 0x1ab   : > { %v3053_v18 = vpop.f32.mrb[88].mxu1  ;;  %v2990_v20 = vpop.f32.mrb[89].mxu0 }
 0x1ac   : > { %v2991_v41 = vadd.f32 %v2990_v20, %v2989_v40  ;;  %v3054_v47 = vpop.f32.mrb[89].mxu1  ;;  %v2992_v26 = vpop.f32.mrb[90].mxu0 }
 0x1ad   : > { %v3055_v27 = vadd.f32 %v3054_v47, %v3053_v18  ;;  %v3056_v49 = vpop.f32.mrb[90].mxu1  ;;  %v2993_v29 = vpop.f32.mrb[91].mxu0 }
 0x1ae   : > { %v2127_v30 = vadd.f32 %v2991_v41, %v3904_v8  ;;  %v2994_v32 = vadd.f32 %v2993_v29, %v2992_v26  ;;  %v3057_v54 = vpop.f32.mrb[91].mxu1 }
 0x1af   : > { %v3058_v3 = vadd.f32 %v3057_v54, %v3056_v49 }
 0x1b0   : > { %v2130_v35 = vadd.f32 %v2994_v32, %v3907_v51  ;;  %v2224_v58 = vadd.f32 %v3055_v27, %v2127_v30 }
 0x1b2   : > { %v2995_v37 = vpop.f32.mrb[92].mxu0  ;;  %v3947_v36 = vadd.f32 %v3058_v3, %v2130_v35 }
 0x1b3   : > { %v3059_v38 = vpop.f32.mrb[92].mxu1  ;;  %v2996_v25 = vpop.f32.mrb[93].mxu0 }
 0x1b4   : > { %v2997_v59 = vadd.f32 %v2996_v25, %v2995_v37  ;;  %v3060_v63 = vpop.f32.mrb[93].mxu1  ;;  %v2998_v44 = vpop.f32.mrb[94].mxu0 }
 0x1b5   : > { %v3061_v45 = vadd.f32 %v3060_v63, %v3059_v38  ;;  %v3062_v46 = vpop.f32.mrb[94].mxu1  ;;  %v2999_v2 = vpop.f32.mrb[95].mxu0 }
 0x1b6   : > { %v2135_v50 = vadd.f32 %v2997_v59, %v3910_v28  ;;  %v3000_v8 = vadd.f32 %v2999_v2, %v2998_v44  ;;  %v3063_v52 = vpop.f32.mrb[95].mxu1 }
 0x1b7   : > { %v3064_v17 = vadd.f32 %v3063_v52, %v3062_v46 }
 0x1b8   : > { %v2138_v55 = vadd.f32 %v3000_v8, %v3913_v1  ;;  %v2232_v51 = vadd.f32 %v3061_v45, %v2135_v50 }
 0x1ba   : > { %v3087_v12 = vpop.f32.mrb[96].mxu0  ;;  %v2235_v56 = vadd.f32 %v3064_v17, %v2138_v55 }
 0x1bb   : > { %v2281_v57 = vadd.f32 %v3087_v12, %v3923_v4  ;;  %v3095_v13 = vpop.f32.mrb[96].mxu1  ;;  %v2272_v19 = vpop.f32.mrb[97].mxu0 }
 0x1bc   : > { %v2313_v62 = vadd.f32 %v3095_v13, %v2216_v23  ;;  %v2273_v0 = vadd.f32 %v2272_v19, %v3917_v15  ;;  %v2304_v28 = vpop.f32.mrb[97].mxu1  ;;  %v3088_v21 = vpop.f32.mrb[98].mxu0 }
 0x1bd   : > { %v2305_v31 = vadd.f32 %v2304_v28, %v2208_v60  ;;  %v2284_v6 = vadd.f32 %v3088_v21, %v3925_v5  ;;  %v3096_v1 = vpop.f32.mrb[98].mxu1  ;;  %v2275_v7 = vpop.f32.mrb[99].mxu0  ;;  %v2344_v33 = vmul.f32 %v2676_v39, %v2281_v57 }
 0x1be   : > { %v2352_v9 = vmul.f32 %v2676_v39, %v2313_v62  ;;  %v2316_v10 = vadd.f32 %v3096_v1, %v2219_v16  ;;  %v2276_v4 = vadd.f32 %v2275_v7, %v3919_v48  ;;  %v2307_v34 = vpop.f32.mrb[99].mxu1  ;;  %v2342_v53 = vmul.f32 %v2676_v39, %v2273_v0 }
 0x1bf   : > { %v2350_v14 = vmul.f32 %v2676_v39, %v2305_v31  ;;  %v2345_v15 = vmul.f32 %v2676_v39, %v2284_v6  ;;  %v2308_v23 = vadd.f32 %v2307_v34, %v3941_v61  ;;  %v2367_v5 = vadd.f32 %v2677_v11, %v2344_v33 }
 0x1c0   : > { %v2353_v60 = vmul.f32 %v2676_v39, %v2316_v10  ;;  %v2343_v40 = vmul.f32 %v2676_v39, %v2276_v4  ;;  %v2375_v18 = vadd.f32 %v2677_v11, %v2352_v9  ;;  %v2365_v41 = vadd.f32 %v2677_v11, %v2342_v53 }
 0x1c1   : > { %v2373_v47 = vadd.f32 %v2677_v11, %v2350_v14  ;;  %v2368_v16 = vadd.f32 %v2677_v11, %v2345_v15  ;;  %v2351_v29 = vmul.f32 %v2676_v39, %v2308_v23 }
 0x1c2   : > { %v3091_v20 = vpop.f32.mrb[100].mxu0  ;;  %v2376_v49 = vadd.f32 %v2677_v11, %v2353_v60  ;;  %v2366_v61 = vadd.f32 %v2677_v11, %v2343_v40 }
 0x1c3   : > { %v2297_v48 = vadd.f32 %v3091_v20, %v3935_v42  ;;  %v3099_v26 = vpop.f32.mrb[100].mxu1  ;;  %v2288_v27 = vpop.f32.mrb[101].mxu0 }
 0x1c4   : > { %v2329_v30 = vadd.f32 %v3099_v26, %v2232_v51  ;;  %v2289_v32 = vadd.f32 %v2288_v27, %v3929_v22  ;;  %v2320_v54 = vpop.f32.mrb[101].mxu1  ;;  %v3092_v3 = vpop.f32.mrb[102].mxu0 }
 0x1c5   : > { %v2348_v35 = vmul.f32 %v2676_v39, %v2297_v48  ;;  %v2321_v37 = vadd.f32 %v2320_v54, %v2224_v58  ;;  %v2300_v38 = vadd.f32 %v3092_v3, %v3937_v43  ;;  %v3100_v25 = vpop.f32.mrb[102].mxu1  ;;  %v2291_v59 = vpop.f32.mrb[103].mxu0 }
 0x1c6   : > { %v2356_v63 = vmul.f32 %v2676_v39, %v2329_v30  ;;  %v2346_v44 = vmul.f32 %v2676_v39, %v2289_v32  ;;  %v2332_v42 = vadd.f32 %v3100_v25, %v2235_v56  ;;  %v2292_v45 = vadd.f32 %v2291_v59, %v3931_v24  ;;  %v2323_v46 = vpop.f32.mrb[103].mxu1 }
 0x1c7   : > { %v2371_v2 = vadd.f32 %v2677_v11, %v2348_v35  ;;  %v2354_v50 = vmul.f32 %v2676_v39, %v2321_v37  ;;  %v2349_v8 = vmul.f32 %v2676_v39, %v2300_v38  ;;  %v2324_v22 = vadd.f32 %v2323_v46, %v3947_v36 }
 0x1c8   : > { %v2379_v52 = vadd.f32 %v2677_v11, %v2356_v63  ;;  %v2369_v17 = vadd.f32 %v2677_v11, %v2346_v44  ;;  %v2357_v55 = vmul.f32 %v2676_v39, %v2332_v42  ;;  %v2347_v58 = vmul.f32 %v2676_v39, %v2292_v45 }
 0x1c9   : > { %v2383_v51 = vmax.f32 %v2367_v5, %v2371_v2  ;;  %v2377_v43 = vadd.f32 %v2677_v11, %v2354_v50  ;;  %v2372_v12 = vadd.f32 %v2677_v11, %v2349_v8  ;;  %v2355_v57 = vmul.f32 %v2676_v39, %v2324_v22 }
 0x1ca   : > { %v2387_v13 = vmax.f32 %v2375_v18, %v2379_v52  ;;  %v2381_v19 = vmax.f32 %v2365_v41, %v2369_v17  ;;  %v2380_v56 = vadd.f32 %v2677_v11, %v2357_v55  ;;  %v2370_v62 = vadd.f32 %v2677_v11, %v2347_v58 }
 0x1cb   : > { %v2374_v24 = vadd.f32 %v2677_v11, %v2351_v29  ;;  %v2385_v0 = vmax.f32 %v2373_v47, %v2377_v43  ;;  %v2384_v28 = vmax.f32 %v2368_v16, %v2372_v12  ;;  %v2378_v21 = vadd.f32 %v2677_v11, %v2355_v57 }
 0x1cc   : > { %v2391_v31 = vmax.f32 %v2383_v51, %v2387_v13  ;;  %v2388_v6 = vmax.f32 %v2376_v49, %v2380_v56  ;;  %v2382_v36 = vmax.f32 %v2366_v61, %v2370_v62 }
 0x1cd   : > { %v2389_v1 = vmax.f32 %v2381_v19, %v2385_v0  ;;  %v2386_v7 = vmax.f32 %v2374_v24, %v2378_v21 }
 0x1ce   : > { %v2395_v33 = vmax.f32 %v2391_v31, 0.0  ;;  %v2392_v39 = vmax.f32 %v2384_v28, %v2388_v6 }
 0x1cf   : > { %v2393_v9 = vmax.f32 %v2389_v1, 0.0  ;;  %v2390_v10 = vmax.f32 %v2382_v36, %v2386_v7 }
 0x1d0   : > { %2399 = vst.msk [vmem:[%s197_s17 + $0x10] sm:$0xff] %vm1631_vm0, %v2395_v33  ;;  %v2396_v4 = vmax.f32 %v2392_v39, 0.0 }
 0x1d1   : > { %2397 = vst.msk [vmem:[%s197_s17] sm:$0xff] %vm1631_vm0, %v2393_v9  ;;  %v2394_v34 = vmax.f32 %v2390_v10, 0.0 }
 0x1d2   : > { %2400 = vst.msk [vmem:[%s197_s17 + $0x18] sm:$0xff] %vm1631_vm0, %v2396_v4 }
 0x1d3   : > { %2398 = vst.msk [vmem:[%s197_s17 + $0x8] sm:$0xff] %vm1631_vm0, %v2394_v34 }
 0x1d4 PF: > { %s14_s15 = sadd.s32 1, %s3376_s15  }
 0x1d5   : > { %p11_p4 = scmp.ge.s32.totalorder %s14_s15, 4  }
 0x1d7   :  { %13 = sbr.rel (!%p11_p4) target bundleno = 1 (0x1), region = 66 }

// kernel: feature_extractor_digits.5
= control target key start
LH: loop header
LB: loop body
LE: loop exit
PB: predicated region body
PF: predicated region fallthrough
CT: control target
= control target key end

     0   :  { %v227_v29 = vlaneseq  ;;  %v1634_v35 = vmov 1966171168   ;;  %s2005_s0 = inlined_call_operand.vmem [shape: bf16[2,1600], index: 0, kind: input, shape index: {}]   ;;  %s2006_s1 = inlined_call_operand.vmem [shape: bf16[1600,128], index: 1, kind: input, shape index: {}]   ;;  %s2007_s2 = inlined_call_operand.vmem [shape: f32[1,128], index: 2, kind: input, shape index: {}]   ;;  %s2008_s3 = inlined_call_operand.vmem [shape: f32[1,128], index: 3, kind: input, shape index: {}]   ;;  %s2009_s4 = inlined_call_operand.hbm [shape: f32[2,128], index: 4, kind: output, shape index: {}]  }
   0x1   :  { %v1504_v0 = vld [vmem:[%s2006_s1 + $0x40] sm:$0xff]   ;;  %v1508_v4 = vld [vmem:[%s2006_s1 + $0x48] sm:$0xff]   ;;  %v1512_v8 = vld [vmem:[%s2006_s1 + $0x50] sm:$0xff]   ;;  %v225_v36 = vunpack.c.l.s4 %v1634_v35 }
   0x2   :  { %v1505_v1 = vld [vmem:[%s2006_s1 + $0xc0] sm:$0xff]   ;;  %1351 = vmatprep.subr.bf16.mxu0 %v1504_v0  ;;  %v1509_v5 = vld [vmem:[%s2006_s1 + $0xc8] sm:$0xff]   ;;  %v1513_v9 = vld [vmem:[%s2006_s1 + $0xd0] sm:$0xff]   ;;  %v228_v33 = vshrl.u32 %v227_v29, 7 }
   0x3   :  { %v1506_v2 = vld [vmem:[%s2006_s1] sm:$0xff]   ;;  %1373 = vmatprep.subr.bf16.mxu1 %v1505_v1  ;;  %v1510_v6 = vld [vmem:[%s2006_s1 + $0x8] sm:$0xff]   ;;  %v1514_v10 = vld [vmem:[%s2006_s1 + $0x10] sm:$0xff]   ;;  %v226_v39 = vunpack.c.0.s8 %v225_v36 }
   0x4   :  { %v1507_v3 = vld [vmem:[%s2006_s1 + $0x80] sm:$0xff]   ;;  %1352 = vmatpush3.bf16.msra.mxu0 %v1506_v2  ;;  %v1511_v7 = vld [vmem:[%s2006_s1 + $0x88] sm:$0xff]   ;;  %v1515_v11 = vld [vmem:[%s2006_s1 + $0x90] sm:$0xff]  }
   0x5   :  { %1374 = vmatpush3.bf16.msra.mxu1 %v1507_v3  ;;  %1353 = vmatprep.subr.bf16.mxu0 %v1508_v4  ;;  %v1516_v12 = vld [vmem:[%s2006_s1 + $0x58] sm:$0xff]   ;;  %v1520_v16 = vld [vmem:[%s2006_s1 + $0x60] sm:$0xff]   ;;  %v1524_v20 = vld [vmem:[%s2006_s1 + $0x68] sm:$0xff]   ;;  %v1768_v41 = vsub.s32 %v226_v39, %v228_v33 }
   0x6   :  { %1375 = vmatprep.subr.bf16.mxu1 %v1509_v5  ;;  %v1517_v13 = vld [vmem:[%s2006_s1 + $0xd8] sm:$0xff]   ;;  %v1521_v17 = vld [vmem:[%s2006_s1 + $0xe0] sm:$0xff]   ;;  %v1525_v21 = vld [vmem:[%s2006_s1 + $0xe8] sm:$0xff]  }
   0x7   :  { %v1518_v14 = vld [vmem:[%s2006_s1 + $0x18] sm:$0xff]   ;;  %v1522_v18 = vld [vmem:[%s2006_s1 + $0x20] sm:$0xff]   ;;  %v1526_v22 = vld [vmem:[%s2006_s1 + $0x28] sm:$0xff]  }
   0x8   :  { %1354 = vmatpush3.bf16.msra.mxu0 %v1510_v6  ;;  %v1519_v15 = vld [vmem:[%s2006_s1 + $0x98] sm:$0xff]   ;;  %v1523_v19 = vld [vmem:[%s2006_s1 + $0xa0] sm:$0xff]   ;;  %v1527_v23 = vld [vmem:[%s2006_s1 + $0xa8] sm:$0xff]  }
   0x9   :  { %1376 = vmatpush3.bf16.msra.mxu1 %v1511_v7  ;;  %1355 = vmatprep.subr.bf16.mxu0 %v1512_v8  ;;  %v1528_v24 = vld [vmem:[%s2006_s1 + $0x70] sm:$0xff]   ;;  %v1532_v28 = vld [vmem:[%s2006_s1 + $0x78] sm:$0xff]   ;;  %v1537_v34 = vld [vmem:[%s2006_s1 + $0x140] sm:$0xff]  }
   0xa   :  { %1377 = vmatprep.subr.bf16.mxu1 %v1513_v9  ;;  %v1529_v25 = vld [vmem:[%s2006_s1 + $0xf0] sm:$0xff]   ;;  %v1533_v30 = vld [vmem:[%s2006_s1 + $0xf8] sm:$0xff]   ;;  %v19_v37 = vld [vmem:[%s2005_s0] sm:$0xff] }
   0xb   :  { %v1530_v26 = vld [vmem:[%s2006_s1 + $0x30] sm:$0xff]   ;;  %v1534_v31 = vld [vmem:[%s2006_s1 + $0x38] sm:$0xff]   ;;  %v223_v38 = vcombine.high %v19_v37, %v19_v37  ;;  %v1539_v40 = vld [vmem:[%s2006_s1 + $0x1c0] sm:$0xff]   ;;  %v230_v42 = vrot.slane %v19_v37, %v1768_v41 }
   0xc   :  { %1356 = vmatpush3.bf16.msra.mxu0 %v1514_v10  ;;  %v1531_v27 = vld [vmem:[%s2006_s1 + $0xb0] sm:$0xff]   ;;  %v1535_v32 = vld [vmem:[%s2006_s1 + $0xb8] sm:$0xff]   ;;  %v1538_v48 = vld [vmem:[%s2006_s1 + $0x100] sm:$0xff]  }
   0xd   :  { %1378 = vmatpush3.bf16.msra.mxu1 %v1515_v11  ;;  %1357 = vmatprep.subr.bf16.mxu0 %v1516_v12  ;;  %v1772_v43 = vrot.slane %v223_v38, %v1768_v41  ;;  %v238_v44 = vcombine.high %v230_v42, %v230_v42  ;;  %v246_v45 = vrot.slane %v230_v42, %v1768_v41  ;;  %v1541_v51 = vld [vmem:[%s2006_s1 + $0x148] sm:$0xff]   ;;  %v1540_v53 = vld [vmem:[%s2006_s1 + $0x180] sm:$0xff]   ;;  %v1545_v57 = vld [vmem:[%s2006_s1 + $0x150] sm:$0xff]  }
   0xe   :  { %1379 = vmatprep.subr.bf16.mxu1 %v1517_v13  ;;  %v1543_v54 = vld [vmem:[%s2006_s1 + $0x1c8] sm:$0xff]   ;;  %v1547_v59 = vld [vmem:[%s2006_s1 + $0x1d0] sm:$0xff]   ;;  %v1549_v61 = vld [vmem:[%s2006_s1 + $0x158] sm:$0xff]  }
   0xf   :  { %v239_v46 = vcombine.high %v1772_v43, %v1772_v43  ;;  %v260_v47 = vrot.slane %v238_v44, %v1768_v41  ;;  %v268_v50 = vcombine.high %v246_v45, %v246_v45  ;;  %v1542_v56 = vld [vmem:[%s2006_s1 + $0x108] sm:$0xff]   ;;  %v1546_v60 = vld [vmem:[%s2006_s1 + $0x110] sm:$0xff]   ;;  %v1551_v63 = vld [vmem:[%s2006_s1 + $0x1d8] sm:$0xff]  }
  0x10   :  { %1358 = vmatpush3.bf16.msra.mxu0 %v1518_v14  ;;  %v1544_v58 = vld [vmem:[%s2006_s1 + $0x188] sm:$0xff]   ;;  %v1548_v62 = vld [vmem:[%s2006_s1 + $0x190] sm:$0xff]   ;;  %v1550_v0 = vld [vmem:[%s2006_s1 + $0x118] sm:$0xff]  }
  0x11   :  { %1380 = vmatpush3.bf16.msra.mxu1 %v1519_v15  ;;  %1359 = vmatprep.subr.bf16.mxu0 %v1520_v16  ;;  %v267_v49 = vrot.slane %v239_v46, %v1768_v41  ;;  %v270_v52 = vcombine.high %v260_v47, %v260_v47  ;;  %v1553_v1 = vld [vmem:[%s2006_s1 + $0x160] sm:$0xff]   ;;  %v1552_v2 = vld [vmem:[%s2006_s1 + $0x198] sm:$0xff]   ;;  %v1557_v5 = vld [vmem:[%s2006_s1 + $0x168] sm:$0xff]  }
  0x12   :  { %1381 = vmatprep.subr.bf16.mxu1 %v1521_v17  ;;  %959 = vmatprep.mubr.bf16.mxu0 %v260_v47  ;;  %v1555_v3 = vld [vmem:[%s2006_s1 + $0x1e0] sm:$0xff]   ;;  %v1559_v7 = vld [vmem:[%s2006_s1 + $0x1e8] sm:$0xff]   ;;  %v1561_v9 = vld [vmem:[%s2006_s1 + $0x170] sm:$0xff]   ;;  %v253_v17 = vrot.slane %v1772_v43, %v1768_v41 }
  0x13   :  { %v271_v55 = vcombine.high %v267_v49, %v267_v49  ;;  %999 = vmatprep.mubr.bf16.mxu1 %v270_v52  ;;  %v1554_v4 = vld [vmem:[%s2006_s1 + $0x120] sm:$0xff]   ;;  %v1558_v8 = vld [vmem:[%s2006_s1 + $0x128] sm:$0xff]   ;;  %v1563_v11 = vld [vmem:[%s2006_s1 + $0x1f0] sm:$0xff]  }
  0x14   :  { %1360 = vmatpush3.bf16.msra.mxu0 %v1522_v18  ;;  %v1556_v6 = vld [vmem:[%s2006_s1 + $0x1a0] sm:$0xff]   ;;  %v1560_v10 = vld [vmem:[%s2006_s1 + $0x1a8] sm:$0xff]   ;;  %v1562_v12 = vld [vmem:[%s2006_s1 + $0x130] sm:$0xff]  }
  0x15   :  { %1382 = vmatpush3.bf16.msra.mxu1 %v1523_v19  ;;  %1361 = vmatprep.subr.bf16.mxu0 %v1524_v20  ;;  %v1565_v13 = vld [vmem:[%s2006_s1 + $0x178] sm:$0xff]   ;;  %v1564_v14 = vld [vmem:[%s2006_s1 + $0x1b0] sm:$0xff]   ;;  %v1569_v18 = vld [vmem:[%s2006_s1 + $0x240] sm:$0xff]  }
  0x16   :  { %1383 = vmatprep.subr.bf16.mxu1 %v1525_v21  ;;  %v1567_v15 = vld [vmem:[%s2006_s1 + $0x1f8] sm:$0xff]   ;;  %v1571_v20 = vld [vmem:[%s2006_s1 + $0x2c0] sm:$0xff]   ;;  %v1579_v29 = vld [vmem:[%s2006_s1 + $0x2d0] sm:$0xff]  }
  0x17   :  { %v1566_v16 = vld [vmem:[%s2006_s1 + $0x138] sm:$0xff]   ;;  %v1570_v21 = vld [vmem:[%s2006_s1 + $0x200] sm:$0xff]   ;;  %v1589_v39 = vld [vmem:[%s2006_s1 + $0x268] sm:$0xff]  }
  0x18   :  { %1362 = vmatpush3.bf16.msra.mxu0 %v1526_v22  ;;  %v1568_v19 = vld [vmem:[%s2006_s1 + $0x1b8] sm:$0xff]   ;;  %v269_v22 = vcombine.high %v253_v17, %v253_v17  ;;  %v1585_v35 = vld [vmem:[%s2006_s1 + $0x260] sm:$0xff]   ;;  %v1591_v42 = vld [vmem:[%s2006_s1 + $0x2e8] sm:$0xff]  }
  0x19   :  { %1384 = vmatpush3.bf16.msra.mxu1 %v1527_v23  ;;  %1363 = vmatprep.subr.bf16.mxu0 %v1528_v24  ;;  %v1573_v23 = vld [vmem:[%s2006_s1 + $0x248] sm:$0xff]   ;;  %v1572_v24 = vld [vmem:[%s2006_s1 + $0x280] sm:$0xff]   ;;  %v1583_v33 = vld [vmem:[%s2006_s1 + $0x2d8] sm:$0xff]  }
  0x1a   :  { %1385 = vmatprep.subr.bf16.mxu1 %v1529_v25  ;;  %v1575_v25 = vld [vmem:[%s2006_s1 + $0x2c8] sm:$0xff]   ;;  %v1584_v36 = vld [vmem:[%s2006_s1 + $0x298] sm:$0xff]   ;;  %v1587_v37 = vld [vmem:[%s2006_s1 + $0x2e0] sm:$0xff]  }
  0x1b   :  { %v1586_v38 = vld [vmem:[%s2006_s1 + $0x220] sm:$0xff]   ;;  %v1590_v43 = vld [vmem:[%s2006_s1 + $0x228] sm:$0xff]  }
  0x1c   :  { %1364 = vmatpush3.bf16.msra.mxu0 %v1530_v26  ;;  %v1574_v26 = vld [vmem:[%s2006_s1 + $0x208] sm:$0xff]  }
  0x1d   :  { %1386 = vmatpush3.bf16.msra.mxu1 %v1531_v27  ;;  %1365 = vmatprep.subr.bf16.mxu0 %v1532_v28  ;;  %v1577_v27 = vld [vmem:[%s2006_s1 + $0x250] sm:$0xff]   ;;  %v1576_v28 = vld [vmem:[%s2006_s1 + $0x288] sm:$0xff]  }
  0x1e   :  { %1387 = vmatprep.subr.bf16.mxu1 %v1533_v30  ;;  %v1578_v30 = vld [vmem:[%s2006_s1 + $0x210] sm:$0xff]   ;;  %v20_v44 = vld [vmem:[%s2005_s0 + $0x8] sm:$0x1f] }
  0x1f   :  { %v279_v46 = vrot.slane %v20_v44, %v1768_v41  ;;  %v1592_v47 = vld [vmem:[%s2006_s1 + $0x2a8] sm:$0xff]  }
  0x20   :  { %1366 = vmatpush3.bf16.msra.mxu0 %v1534_v31  ;;  %v1581_v31 = vld [vmem:[%s2006_s1 + $0x258] sm:$0xff]  }
  0x21   :  { %1388 = vmatpush3.bf16.msra.mxu1 %v1535_v32  ;;  %1395 = vmatprep.subr.bf16.mxu0 %v1537_v34  ;;  %v1580_v32 = vld [vmem:[%s2006_s1 + $0x290] sm:$0xff]   ;;  %v1582_v34 = vld [vmem:[%s2006_s1 + $0x218] sm:$0xff]  }
  0x22   :  { %1417 = vmatprep.subr.bf16.mxu1 %v1539_v40  ;;  %v1588_v40 = vld [vmem:[%s2006_s1 + $0x2a0] sm:$0xff]  }
  0x23   :  { %960 = vmatmul.mubr.bf16.vlgmr.msra.gmra.mrb[0].mxu0 %v246_v45  ;;  %v1593_v45 = vld [vmem:[%s2006_s1 + $0x270] sm:$0xff]  }
  0x24   :  { %1396 = vmatpush3.bf16.msra.mxu0 %v1538_v48  ;;  %1000 = vmatmul.mubr.bf16.vlgmr.msra.gmra.mrb[0].mxu1 %v268_v50  ;;  %v1595_v48 = vld [vmem:[%s2006_s1 + $0x2f0] sm:$0xff]  }
  0x25   :  { %1397 = vmatprep.subr.bf16.mxu0 %v1541_v51  ;;  %1418 = vmatpush3.bf16.msra.mxu1 %v1540_v53  ;;  %v1594_v50 = vld [vmem:[%s2006_s1 + $0x230] sm:$0xff]   ;;  %v1597_v51 = vld [vmem:[%s2006_s1 + $0x278] sm:$0xff]  }
  0x26   :  { %1039 = vmatprep.mubr.bf16.mxu0 %v267_v49  ;;  %1419 = vmatprep.subr.bf16.mxu1 %v1543_v54  ;;  %v287_v49 = vcombine.high %v279_v46, %v279_v46 }
  0x27   :  { %1079 = vmatprep.mubr.bf16.mxu1 %v271_v55 }
  0x28   :  { %1398 = vmatpush3.bf16.msra.mxu0 %v1542_v56  ;;  %v308_v52 = vrot.slane %v287_v49, %v1768_v41 }
  0x29   :  { %1399 = vmatprep.subr.bf16.mxu0 %v1545_v57  ;;  %1420 = vmatpush3.bf16.msra.mxu1 %v1544_v58 }
  0x2a   :  { %1421 = vmatprep.subr.bf16.mxu1 %v1547_v59 }
  0x2c   :  { %1400 = vmatpush3.bf16.msra.mxu0 %v1546_v60 }
  0x2d   :  { %1401 = vmatprep.subr.bf16.mxu0 %v1549_v61  ;;  %1422 = vmatpush3.bf16.msra.mxu1 %v1548_v62 }
  0x2e   :  { %1423 = vmatprep.subr.bf16.mxu1 %v1551_v63 }
  0x30   :  { %1402 = vmatpush3.bf16.msra.mxu0 %v1550_v0 }
  0x31   :  { %1403 = vmatprep.subr.bf16.mxu0 %v1553_v1  ;;  %1424 = vmatpush3.bf16.msra.mxu1 %v1552_v2 }
  0x32   :  { %1425 = vmatprep.subr.bf16.mxu1 %v1555_v3 }
  0x34   :  { %1404 = vmatpush3.bf16.msra.mxu0 %v1554_v4 }
  0x35   :  { %1405 = vmatprep.subr.bf16.mxu0 %v1557_v5  ;;  %1426 = vmatpush3.bf16.msra.mxu1 %v1556_v6 }
  0x36   :  { %1427 = vmatprep.subr.bf16.mxu1 %v1559_v7 }
  0x38   :  { %1406 = vmatpush3.bf16.msra.mxu0 %v1558_v8 }
  0x39   :  { %1407 = vmatprep.subr.bf16.mxu0 %v1561_v9  ;;  %1428 = vmatpush3.bf16.msra.mxu1 %v1560_v10 }
  0x3a   :  { %1429 = vmatprep.subr.bf16.mxu1 %v1563_v11 }
  0x3c   :  { %1408 = vmatpush3.bf16.msra.mxu0 %v1562_v12 }
  0x3d   :  { %1409 = vmatprep.subr.bf16.mxu0 %v1565_v13  ;;  %1430 = vmatpush3.bf16.msra.mxu1 %v1564_v14 }
  0x3e   :  { %1431 = vmatprep.subr.bf16.mxu1 %v1567_v15 }
  0x40   :  { %1410 = vmatpush3.bf16.msra.mxu0 %v1566_v16 }
  0x41   :  { %1439 = vmatprep.subr.bf16.mxu0 %v1569_v18  ;;  %1432 = vmatpush3.bf16.msra.mxu1 %v1568_v19 }
  0x42   :  { %1461 = vmatprep.subr.bf16.mxu1 %v1571_v20 }
  0x43   :  { %1040 = vmatmul.mubr.bf16.vlgmr.msra.gmra.mrb[4].mxu0 %v253_v17 }
  0x44   :  { %1440 = vmatpush3.bf16.msra.mxu0 %v1570_v21  ;;  %1080 = vmatmul.mubr.bf16.vlgmr.msra.gmra.mrb[4].mxu1 %v269_v22 }
  0x45   :  { %1441 = vmatprep.subr.bf16.mxu0 %v1573_v23  ;;  %1462 = vmatpush3.bf16.msra.mxu1 %v1572_v24 }
  0x46   :  { %1463 = vmatprep.subr.bf16.mxu1 %v1575_v25 }
  0x48   :  { %1442 = vmatpush3.bf16.msra.mxu0 %v1574_v26 }
  0x49   :  { %1443 = vmatprep.subr.bf16.mxu0 %v1577_v27  ;;  %1464 = vmatpush3.bf16.msra.mxu1 %v1576_v28 }
  0x4a   :  { %1465 = vmatprep.subr.bf16.mxu1 %v1579_v29 }
  0x4c   :  { %1444 = vmatpush3.bf16.msra.mxu0 %v1578_v30 }
  0x4d   :  { %1445 = vmatprep.subr.bf16.mxu0 %v1581_v31  ;;  %1466 = vmatpush3.bf16.msra.mxu1 %v1580_v32 }
  0x4e   :  { %1467 = vmatprep.subr.bf16.mxu1 %v1583_v33 }
  0x50   :  { %1446 = vmatpush3.bf16.msra.mxu0 %v1582_v34 }
  0x51   :  { %1447 = vmatprep.subr.bf16.mxu0 %v1585_v35  ;;  %1468 = vmatpush3.bf16.msra.mxu1 %v1584_v36 }
  0x52   :  { %1469 = vmatprep.subr.bf16.mxu1 %v1587_v37 }
  0x54   :  { %1448 = vmatpush3.bf16.msra.mxu0 %v1586_v38 }
  0x55   :  { %1449 = vmatprep.subr.bf16.mxu0 %v1589_v39  ;;  %1470 = vmatpush3.bf16.msra.mxu1 %v1588_v40 }
  0x56   :  { %1471 = vmatprep.subr.bf16.mxu1 %v1591_v42 }
  0x58   :  { %1450 = vmatpush3.bf16.msra.mxu0 %v1590_v43 }
  0x59   :  { %1451 = vmatprep.subr.bf16.mxu0 %v1593_v45 }
  0x5a   :  { %9 = vsyncpa [#allocation3], 0  ;;  %1472 = vmatpush3.bf16.msra.mxu1 %v1592_v47  ;;  %v1596_v53 = vld [vmem:[%s2006_s1 + $0x2b0] sm:$0xff]   ;;  %v1599_v54 = vld [vmem:[%s2006_s1 + $0x2f8] sm:$0xff]   ;;  %1119 = vmatprep.mubr.bf16.mxu0 %v308_v52  ;;  %v310_v55 = vcombine.high %v308_v52, %v308_v52  ;;  %v294_v57 = vrot.slane %v279_v46, %v1768_v41  ;;  %v1635_v60 = vmov 0.0   ;;  %vm1636_vm0 = vmmov 0  }
  0x5b   :  { %1473 = vmatprep.subr.bf16.mxu1 %v1595_v48  ;;  %v1598_v56 = vld [vmem:[%s2006_s1 + $0x238] sm:$0xff]   ;;  %v1602_v59 = vld [vmem:[%s2006_s1 + $0x300] sm:$0xff]   ;;  %v1603_v62 = vld [vmem:[%s2006_s1 + $0x308] sm:$0xff]   ;;  %v272_v63 = vcombine.high %v20_v44, %v20_v44  ;;  %vm923_vm1 = vcmask 523264   ;;  %s1637_s13 = smov [#allocation2]  }
  0x5c   :  { %1452 = vmatpush3.bf16.msra.mxu0 %v1594_v50  ;;  %1159 = vmatprep.mubr.bf16.mxu1 %v310_v55  ;;  %v1601_v58 = vld [vmem:[%s2006_s1 + $0x2b8] sm:$0xff]   ;;  %v309_v61 = vcombine.high %v294_v57, %v294_v57  ;;  %v1604_v0 = vld [vmem:[%s2006_s1 + $0x310] sm:$0xff]   ;;  %v1349_v39 = vld [vmem:[%s2007_s2] ss:$0 sm:$0xff]  ;;  %s1240_s14 = sshll.u32 %s1637_s13, 4  ;;  %s1241_s14 = int_to_ptr.vmem [resolvable:$true] %s1240_s14 }
  0x5d   :  { %1453 = vmatprep.subr.bf16.mxu0 %v1597_v51  ;;  %v286_v1 = vrot.slane %v272_v63, %v1768_v41  ;;  %v1605_v2 = vld [vmem:[%s2006_s1 + $0x318] sm:$0xff]   ;;  %v1350_v43 = vld [vmem:[%s2008_s3] ss:$0 sm:$0xff]  ;;  %s1610_s2 = scalar_lea.vmem %s1241_s14, 32  ;;  %p1615_p1 = scmp.lt.s32.totalorder %s1241_s14, %s1241_s14 }
  0x5e   :  { %1474 = vmatpush3.bf16.msra.mxu1 %v1596_v53  ;;  %p1611_p0 = scmp.ne.s32.totalorder %s1241_s14, %s1610_s2  ;;  %p1616_p2 = scmp.lt.s32.totalorder %s1610_s2, %s1610_s2 }
  0x5f   :  { %1475 = vmatprep.subr.bf16.mxu1 %v1599_v54  ;;  %v301_v3 = vrot.slane %v286_v1, %v1768_v41 }
  0x60   :  { %1454 = vmatpush3.bf16.msra.mxu0 %v1598_v56  ;;  %p1617_p3 = por %p1616_p2, %p1615_p1 }
  0x61   :  { %1488 = vmatprep.subr.bf16.mxu0 %v1635_v60 }
  0x62   :  { %1476 = vmatpush3.bf16.msra.mxu1 %v1601_v58  ;;  %p1618_p4 = pnand %p1617_p3, %p1611_p0 }
  0x63   :  { %1120 = vmatmul.mubr.bf16.vlgmr.msra.gmra.mrb[8].mxu0 %v294_v57 }
  0x64   :  { %1489 = vmatpush3.bf16.msra.mxu0 %v1602_v59  ;;  %1496 = vmatprep.mubr.msk.bf16.mxu0 %vm1636_vm0, %v1635_v60 }
  0x65   :  { %1160 = vmatmul.mubr.bf16.vlgmr.msra.gmra.mrb[8].mxu1 %v309_v61  ;;  %1490 = vmatprep.subr.bf16.mxu0 %v1635_v60 }
  0x68   :  { %1491 = vmatpush3.bf16.msra.mxu0 %v1603_v62 }
  0x69   :  { %1492 = vmatprep.subr.bf16.mxu0 %v1635_v60 }
  0x6c   :  { %1493 = vmatpush3.bf16.msra.mxu0 %v1604_v0 }
  0x6d   :  { %1494 = vmatprep.subr.bf16.mxu0 %v1635_v60 }
  0x70   :  { %1495 = vmatpush3.bf16.msra.mxu0 %v1605_v2 }
  0x73   :  { %1497 = vmatmul.mubr.msk.bf16.vlgmr.msra.gmra.mrb[12].mxu0 %vm923_vm1, %v301_v3 }
  0xf6   :  { %v1367_v4 = vpop.f32.mrb[0].mxu0 }
  0xf7   :  { %v1368_v5 = vpop.f32.mrb[1].mxu0  ;;  %v1389_v6 = vpop.f32.mrb[0].mxu1 }
  0xf8   :  { %v1369_v7 = vadd.f32 %v1368_v5, %v1367_v4  ;;  %v1370_v8 = vpop.f32.mrb[2].mxu0  ;;  %v1390_v9 = vpop.f32.mrb[1].mxu1 }
  0xf9   :  { %v1371_v10 = vpop.f32.mrb[3].mxu0  ;;  %v1391_v11 = vadd.f32 %v1390_v9, %v1389_v6  ;;  %v1392_v12 = vpop.f32.mrb[2].mxu1 }
  0xfa   :  { %v1393_v13 = vpop.f32.mrb[3].mxu1 }
  0xfb   :  { %v1002_v14 = vadd.f32 %v1391_v11, %v1369_v7 }
 0x116   :  { %v1411_v15 = vpop.f32.mrb[4].mxu0 }
 0x117   :  { %v1412_v16 = vpop.f32.mrb[5].mxu0  ;;  %v1433_v19 = vpop.f32.mrb[4].mxu1 }
 0x118   :  { %v1413_v17 = vadd.f32 %v1412_v16, %v1411_v15  ;;  %v1414_v18 = vpop.f32.mrb[6].mxu0  ;;  %v1434_v20 = vpop.f32.mrb[5].mxu1 }
 0x119   :  { %v1415_v41 = vpop.f32.mrb[7].mxu0  ;;  %v1435_v22 = vadd.f32 %v1434_v20, %v1433_v19  ;;  %v1436_v23 = vpop.f32.mrb[6].mxu1 }
 0x11a   :  { %v1042_v21 = vadd.f32 %v1413_v17, %v1002_v14  ;;  %v1437_v24 = vpop.f32.mrb[7].mxu1 }
 0x11c   :  { %v1082_v25 = vadd.f32 %v1435_v22, %v1042_v21 }
 0x136   :  { %v1455_v26 = vpop.f32.mrb[8].mxu0 }
 0x137   :  { %v1456_v27 = vpop.f32.mrb[9].mxu0 }
 0x138   :  { %v1457_v28 = vadd.f32 %v1456_v27, %v1455_v26  ;;  %v1458_v29 = vpop.f32.mrb[10].mxu0  ;;  %v1477_v30 = vpop.f32.mrb[8].mxu1 }
 0x139   :  { %v1459_v31 = vpop.f32.mrb[11].mxu0  ;;  %v1478_v32 = vpop.f32.mrb[9].mxu1 }
 0x13a   :  { %v1122_v33 = vadd.f32 %v1457_v28, %v1082_v25  ;;  %v1479_v34 = vadd.f32 %v1478_v32, %v1477_v30  ;;  %v1480_v35 = vpop.f32.mrb[10].mxu1 }
 0x13b   :  { %v1481_v36 = vpop.f32.mrb[11].mxu1 }
 0x13c   :  { %v1162_v37 = vadd.f32 %v1479_v34, %v1122_v33 }
 0x146   :  { %v1201_v38 = vpop.f32.mrb[12].mxu0 }
 0x147   :  { %v1202_v40 = vadd.f32 %v1201_v38, %v1162_v37  ;;  %v1498_v42 = vpop.f32.mrb[13].mxu0 }
 0x148   :  { %v1204_v44 = vpop.f32.mrb[14].mxu0 }
 0x149   :  { %v1214_v45 = vmul.f32 %v1349_v39, %v1202_v40  ;;  %v1499_v46 = vpop.f32.mrb[15].mxu0 }
 0x14b   :  { %v1222_v47 = vadd.f32 %v1350_v43, %v1214_v45 }
 0x14d   :  { %v1223_v48 = vand.u32 2147483647, %v1222_v47  ;;  %vm1227_vm2 = vcmp.ge.f32.partialorder %v1222_v47, 0.0 }
 0x14f   :  { %v1224_v49 = vsub.f32 0.0, %v1223_v48 }
 0x151   :  { %v1225_v50 = vmul.f32 1.442695, %v1224_v49 }
 0x153   :  { %1606 = vpow2.f32 %v1225_v50 }
 0x15d   :  { %v1607_v51 = vpop.eup %1606 }
 0x15e   :  { %v1228_v52 = vadd.f32 1.0, %v1607_v51 }
 0x160   :  { %1608 = vrcp.f32 %v1228_v52 }
 0x16a   :  { %v1609_v53 = vpop.eup %1608 }
 0x16b   :  { %v1231_v54 = vmul.f32 %v1609_v53, %v1607_v51 }
 0x16d   :  { %v1232_v55 = vsel %vm1227_vm2, %v1609_v53, %v1231_v54 }
 0x16e   :  { %1233 = vst [vmem:[#allocation2] sm:$0x3] %v1232_v55 }
 0x16f   :  { %1621 = shalt.err (!%p1618_p4)
}
 0x170   :  { %s1622_s16 = scalar_lea.hbm %s2009_s4, 32 }
 0x171   :  { %p1623_p5 = scmp.ne.s32.totalorder %s2009_s4, %s1622_s16  ;;  %p1626_p6 = scmp.lt.u32.totalorder %s1622_s16, %s2009_s4 }
 0x173   :  { %p1628_p7 = pnand %p1626_p6, %p1623_p5 }
 0x175   :  { %1631 = shalt.err (!%p1628_p7)
}
 0x176   :  { %1243 = dma.vmem_to_hbm [thread:$0]  %s1241_s14, 32, %s2009_s4, [#allocation3]  }
 0x177   :  { %1632 = dma.done.wait [#allocation3], 32  }
 0x178   :  { %1633 = vsyncadd [#allocation3], 4294967264 }
 0x179   :  { %1247 = vsyncpa [#allocation3], 1 }

</bundles_post_ra>
